<compile_context>
chip_gen: v7x
topology: tpu7x:2x2x1
jax: 0.10.0
libtpu: 0.0.40
codegen_flags: <defaults>
</compile_context>

<pallas_src>
import functools

import jax
import jax.numpy as jnp
import numpy as np
from jax import lax
from jax.experimental import pallas as pl
from jax.experimental.pallas import tpu as pltpu


# ---------------------------------------------------------------------------
# Kernel
# ---------------------------------------------------------------------------
def _tslstm3_kernel(x_ref,
                    wih1_ref, whh1_ref, b1_ref,
                    wih2_ref, whh2_ref, b2_ref,
                    wih3_ref, whh3_ref, b3_ref,
                    out_ref,
                    xg_ref,
                    *, seq_len, future, hidden):
    H = hidden
    batch = x_ref.shape[1]
    f32 = jnp.float32

    # ---- hoist all loop-invariant weights into vregs (vreg pressure is tiny) ----
    wih1_row = wih1_ref[...]          # (1, 4H)  lstm1 input row (feat==1), 0.5-scaled i/f/o
    whh1_t = whh1_ref[...]            # (H, 4H)
    b1 = b1_ref[...]                  # (1, 4H)
    wih2_t = wih2_ref[...]            # (H, 4H)
    whh2_t = whh2_ref[...]            # (H, 4H)
    b2 = b2_ref[...]                  # (1, 4H)
    wih3_t = wih3_ref[...]            # (H, 128) lstm3 input weights, cols 0..3 live
    whh3_row = whh3_ref[...]          # (1, 128)
    b3_row = b3_ref[...]              # (1, 128)

    # ---- per-lane affine fixup rows for the single-tanh sigmoid trick ----------
    # sigmoid lanes (i, f, o): tanh(0.5*z)*0.5 + 0.5 ; tanh lane (g): tanh(z)*1 + 0.
    lane4h = lax.broadcasted_iota(jnp.int32, (1, 4 * H), 1)
    is_g = (lane4h >= 2 * H) & (lane4h < 3 * H)          # torch gate order (i, f, g, o)
    gate_mul = jnp.where(is_g, 1.0, 0.5).astype(f32)
    gate_add = jnp.where(is_g, 0.0, 0.5).astype(f32)
    lane3 = lax.broadcasted_iota(jnp.int32, (1, wih3_ref.shape[1]), 1)
    mul3 = jnp.where(lane3 == 2, 1.0, 0.5).astype(f32)   # lane 2 = lstm3 g gate
    add3 = jnp.where(lane3 == 2, 0.0, 0.5).astype(f32)

    def cell_post(gates, c_prev):
        # One EUP push over the whole (B, 4H) gates tile; the 0.5 pre-scale of the
        # i/f/o columns was folded into the weights offline.
        act = jnp.tanh(gates) * gate_mul + gate_add
        i = act[:, :H]
        f = act[:, H:2 * H]
        g = act[:, 2 * H:3 * H]
        o = act[:, 3 * H:]
        c_new = f * c_prev + i * g
        return o * jnp.tanh(c_new), c_new

    def step(xg1, state):
        h1, c1, h2, c2, h3, c3 = state
        # Chain-independent recurrent contributions: issued first so they overlap
        # lstm1's dependent work (biases folded here, off the critical path).
        rec2 = jnp.dot(h2, whh2_t, preferred_element_type=f32) + b2        # (B, 4H)
        rec3 = h3 * whh3_row + b3_row                                      # (B, 128)
        # lstm1: input projection + bias + 0.5 pre-scale already folded into xg1.
        h1, c1 = cell_post(xg1 + jnp.dot(h1, whh1_t, preferred_element_type=f32), c1)
        # lstm2: only the dependent K=H matmul remains on the chain (no concat).
        h2, c2 = cell_post(jnp.dot(c1, wih2_t, preferred_element_type=f32) + rec2, c2)
        # lstm3 (feeds c2, per the torch chaining quirk): one small MXU matmul +
        # ONE tanh; i/f/o sigmoids recovered by the (mul3, add3) fixup.
        act3 = jnp.tanh(jnp.dot(c2, wih3_t, preferred_element_type=f32) + rec3)
        act3 = act3 * mul3 + add3
        i3 = act3[:, 0:1]
        f3 = act3[:, 1:2]
        g3 = act3[:, 2:3]
        o3 = act3[:, 3:4]
        c3 = f3 * c3 + i3 * g3
        h3 = o3 * jnp.tanh(c3)
        return (h1, c1, h2, c2, h3, c3)

    zeros = lambda w: jnp.zeros((batch, w), f32)
    state = (zeros(H), zeros(H), zeros(H), zeros(H), zeros(1), zeros(1))

    # --- warm-up: hoist lstm1's input projection (incl. bias) for the whole seq ---
    # feat == 1 -> one broadcast outer product (seq, B, 1) * (1, 4H) + b1, done once.
    xg_ref[...] = x_ref[...] * wih1_row + b1

    def body_seq(t, st):
        return step(xg_ref[t], st)

    state = lax.fori_loop(0, seq_len, body_seq, state, unroll=True)

    # --- autoregressive future rollout: c_t3 fed back as lstm1 input --------------
    acc0 = jnp.zeros((batch, future), f32)
    fut_lane = lax.broadcasted_iota(jnp.int32, (1, future), 1)   # hoisted (no per-iter iota)

    def body_fut(t, carry):
        st, acc = carry
        c3_prev = st[5]                                    # (B, 1)
        new_st = step(c3_prev * wih1_row + b1, st)         # rank-1 input proj on the VPU
        acc = acc + jnp.where(fut_lane == t, new_st[5], 0.0)   # scatter c_t3 into lane t
        return (new_st, acc)

    _, acc = lax.fori_loop(0, future, body_fut, (state, acc0), unroll=True)

    out_ref[...] = acc                                     # single store, (batch, future)


# ---------------------------------------------------------------------------
# Wrapper: weight preparation + pallas_call
# ---------------------------------------------------------------------------
def tslstm3_forward(x, params, *, future, cell_num):
    """x: (seq, batch, 1) float32 -> (batch, future) float32."""
    seq_len, batch, feat = x.shape
    assert feat == 1, "TsLstm3 feeds the width-1 c_t3 back into lstm1; feature_num must be 1"
    (wih1, whh1, b1), (wih2, whh2, b2), (wih3, whh3, b3) = params
    H = cell_num
    f32 = jnp.float32

    # Fold the 0.5 sigmoid pre-scale (sigmoid(z) = 0.5*tanh(0.5*z)+0.5, exact) into the
    # i/f/o weight columns and biases; the g block keeps scale 1.  Torch gate order
    # (i, f, g, o) is preserved, so no gate permutation is needed.
    s4 = np.full(4 * H, 0.5, np.float32)
    s4[2 * H:3 * H] = 1.0
    s4 = jnp.asarray(s4)

    wih1_row = (jnp.transpose(wih1) * s4).astype(f32)            # (1, 4H)
    whh1_t = (jnp.transpose(whh1) * s4).astype(f32)              # (H, 4H)
    b1r = (b1 * s4)[None, :].astype(f32)                         # (1, 4H)

    wih2_t = (jnp.transpose(wih2) * s4).astype(f32)              # (H, 4H)
    whh2_t = (jnp.transpose(whh2) * s4).astype(f32)              # (H, 4H)
    b2r = (b2 * s4)[None, :].astype(f32)                         # (1, 4H)

    # lstm3 (hidden = 1): pad the 4 gate columns to a full 128-lane tile so the kernel
    # does one (B,H)@(H,128) matmul and one full-vreg tanh; lanes 4..127 are zero.
    PAD = 128
    s3 = jnp.asarray(np.array([0.5, 0.5, 1.0, 0.5], np.float32))  # torch order (i, f, g, o)
    wih3_t = jnp.zeros((H, PAD), f32).at[:, :4].set(jnp.transpose(wih3).astype(f32) * s3)
    whh3_row = jnp.zeros((1, PAD), f32).at[0, :4].set(whh3[:, 0].astype(f32) * s3)
    b3_row = jnp.zeros((1, PAD), f32).at[0, :4].set(b3.astype(f32) * s3)

    vmem = pl.BlockSpec(memory_space=pltpu.MemorySpace.VMEM)

    kernel = functools.partial(_tslstm3_kernel,
                               seq_len=seq_len, future=future, hidden=H)

    out = pl.pallas_call(
        kernel,
        out_shape=jax.ShapeDtypeStruct((batch, future), jnp.float32),
        in_specs=[vmem,                      # x
                  vmem, vmem, vmem,          # lstm1: wih1_row, whh1_t, b1
                  vmem, vmem, vmem,          # lstm2: wih2_t, whh2_t, b2
                  vmem, vmem, vmem],         # lstm3: wih3_t, whh3_row, b3_row
        out_specs=vmem,
        scratch_shapes=[pltpu.VMEM((seq_len, batch, 4 * H), jnp.float32)],  # hoisted xg
    )(x.astype(f32),
      wih1_row, whh1_t, b1r,
      wih2_t, whh2_t, b2r,
      wih3_t, whh3_row, b3_row)

    return out


# ---------------------------------------------------------------------------
# Pure-JAX reference (torch semantics, original gate order) for correctness check
# ---------------------------------------------------------------------------
def _lstm_cell_ref(x, h, c, w_ih, w_hh, b):
    gates = x @ w_ih.T + h @ w_hh.T + b
    hid = w_hh.shape[1]
    i = jax.nn.sigmoid(gates[:, 0 * hid:1 * hid])
    f = jax.nn.sigmoid(gates[:, 1 * hid:2 * hid])
    g = jnp.tanh(gates[:, 2 * hid:3 * hid])
    o = jax.nn.sigmoid(gates[:, 3 * hid:4 * hid])
    c_new = f * c + i * g
    return o * jnp.tanh(c_new), c_new


def tslstm3_ref(x, params, *, future, cell_num):
    seq_len, batch, _ = x.shape
    (wih1, whh1, b1), (wih2, whh2, b2), (wih3, whh3, b3) = params
    h1 = c1 = jnp.zeros((batch, cell_num), jnp.float32)
    h2 = c2 = jnp.zeros((batch, cell_num), jnp.float32)
    h3 = c3 = jnp.zeros((batch, 1), jnp.float32)

    def step(x_t, s):
        h1, c1, h2, c2, h3, c3 = s
        h1, c1 = _lstm_cell_ref(x_t, h1, c1, wih1, whh1, b1)
        h2, c2 = _lstm_cell_ref(c1, h2, c2, wih2, whh2, b2)
        h3, c3 = _lstm_cell_ref(c2, h3, c3, wih3, whh3, b3)
        return (h1, c1, h2, c2, h3, c3)

    s = (h1, c1, h2, c2, h3, c3)
    for t in range(seq_len):
        s = step(x[t], s)
    outs = []
    for _ in range(future):
        s = step(s[5], s)
        outs.append(s[5])
    return jnp.stack(outs, 1)[:, :, 0]


# ---------------------------------------------------------------------------
# Parameter init (deterministic; mirrors nn.LSTMCell uniform(-1/sqrt(H), 1/sqrt(H)))
# ---------------------------------------------------------------------------
def init_lstm_cell_params(key, input_size, hidden_size):
    bound = 1.0 / float(np.sqrt(hidden_size))
    k0, k1, k2, k3 = jax.random.split(key, 4)
    w_ih = jax.random.uniform(k0, (4 * hidden_size, input_size), jnp.float32, -bound, bound)
    w_hh = jax.random.uniform(k1, (4 * hidden_size, hidden_size), jnp.float32, -bound, bound)
    b_ih = jax.random.uniform(k2, (4 * hidden_size,), jnp.float32, -bound, bound)
    b_hh = jax.random.uniform(k3, (4 * hidden_size,), jnp.float32, -bound, bound)
    return w_ih, w_hh, b_ih + b_hh


if __name__ == "__main__":
    # Small shapes consistent with the module's forward:
    #   feature_num = 1 (required: width-1 c_t3 is fed back into lstm1),
    #   cell_num scaled 100 -> 32, seq = 8, batch = 8, future = 4.
    seq_len, batch, feature_num, cell_num, future = 8, 8, 1, 32, 4

    key = jax.random.PRNGKey(0)
    kx, k1, k2, k3 = jax.random.split(key, 4)

    params = (
        init_lstm_cell_params(k1, feature_num, cell_num),   # lstm1
        init_lstm_cell_params(k2, cell_num, cell_num),      # lstm2
        init_lstm_cell_params(k3, cell_num, 1),             # lstm3
    )
    x = jax.random.normal(kx, (seq_len, batch, feature_num), jnp.float32)

    out = tslstm3_forward(x, params, future=future, cell_num=cell_num)
    out = jax.block_until_ready(out)

    ref = tslstm3_ref(x, params, future=future, cell_num=cell_num)
    assert out.shape == (batch, future), out.shape
    assert jnp.allclose(out, ref, atol=2e-3, rtol=2e-3), (
        f"max abs err {jnp.max(jnp.abs(out - ref))}")

    print("KERNEL_OK")
</pallas_src>

<mosaic_0001>
module attributes {stable_mosaic.version = 11 : i64} {
  func.func @_tslstm3_kernel(%arg0: memref<8x8x1xf32, #tpu.memory_space<vmem>>, %arg1: memref<1x128xf32, #tpu.memory_space<vmem>>, %arg2: memref<32x128xf32, #tpu.memory_space<vmem>>, %arg3: memref<1x128xf32, #tpu.memory_space<vmem>>, %arg4: memref<32x128xf32, #tpu.memory_space<vmem>>, %arg5: memref<32x128xf32, #tpu.memory_space<vmem>>, %arg6: memref<1x128xf32, #tpu.memory_space<vmem>>, %arg7: memref<32x128xf32, #tpu.memory_space<vmem>>, %arg8: memref<1x128xf32, #tpu.memory_space<vmem>>, %arg9: memref<1x128xf32, #tpu.memory_space<vmem>>, %arg10: memref<8x4xf32, #tpu.memory_space<vmem>>, %arg11: memref<8x8x128xf32, #tpu.memory_space<vmem>>) attributes {dimension_semantics = [], scalar_prefetch = 0 : i64, scratch_operands = 1 : i64, tpu.core_type = #tpu.core_type<tc>} {
    %c0 = arith.constant 0 : index
    %c0_0 = arith.constant 0 : index
    %0 = vector.load %arg1[%c0, %c0_0] : memref<1x128xf32, #tpu.memory_space<vmem>>, vector<1x128xf32>
    %c0_1 = arith.constant 0 : index
    %c0_2 = arith.constant 0 : index
    %1 = vector.load %arg2[%c0_1, %c0_2] : memref<32x128xf32, #tpu.memory_space<vmem>>, vector<32x128xf32>
    %c0_3 = arith.constant 0 : index
    %c0_4 = arith.constant 0 : index
    %2 = vector.load %arg3[%c0_3, %c0_4] : memref<1x128xf32, #tpu.memory_space<vmem>>, vector<1x128xf32>
    %c0_5 = arith.constant 0 : index
    %c0_6 = arith.constant 0 : index
    %3 = vector.load %arg4[%c0_5, %c0_6] : memref<32x128xf32, #tpu.memory_space<vmem>>, vector<32x128xf32>
    %c0_7 = arith.constant 0 : index
    %c0_8 = arith.constant 0 : index
    %4 = vector.load %arg5[%c0_7, %c0_8] : memref<32x128xf32, #tpu.memory_space<vmem>>, vector<32x128xf32>
    %c0_9 = arith.constant 0 : index
    %c0_10 = arith.constant 0 : index
    %5 = vector.load %arg6[%c0_9, %c0_10] : memref<1x128xf32, #tpu.memory_space<vmem>>, vector<1x128xf32>
    %c0_11 = arith.constant 0 : index
    %c0_12 = arith.constant 0 : index
    %6 = vector.load %arg7[%c0_11, %c0_12] : memref<32x128xf32, #tpu.memory_space<vmem>>, vector<32x128xf32>
    %c0_13 = arith.constant 0 : index
    %c0_14 = arith.constant 0 : index
    %7 = vector.load %arg8[%c0_13, %c0_14] : memref<1x128xf32, #tpu.memory_space<vmem>>, vector<1x128xf32>
    %c0_15 = arith.constant 0 : index
    %c0_16 = arith.constant 0 : index
    %8 = vector.load %arg9[%c0_15, %c0_16] : memref<1x128xf32, #tpu.memory_space<vmem>>, vector<1x128xf32>
    %9 = tpu.iota {dimensions = array<i32: 1>} : vector<1x128xi32>
    %c64_i32 = arith.constant 64 : i32
    %10 = vector.broadcast %c64_i32 : i32 to vector<1x128xi32>
    %11 = arith.cmpi sge, %9, %10 : vector<1x128xi32>
    %c96_i32 = arith.constant 96 : i32
    %12 = vector.broadcast %c96_i32 : i32 to vector<1x128xi32>
    %13 = arith.cmpi slt, %9, %12 : vector<1x128xi32>
    %14 = arith.andi %11, %13 : vector<1x128xi1>
    %cst = arith.constant 1.000000e+00 : f32
    %cst_17 = arith.constant 5.000000e-01 : f32
    %15 = vector.broadcast %cst : f32 to vector<1x128xf32>
    %16 = vector.broadcast %cst_17 : f32 to vector<1x128xf32>
    %17 = arith.select %14, %15, %16 : vector<1x128xi1>, vector<1x128xf32>
    %cst_18 = arith.constant 0.000000e+00 : f32
    %cst_19 = arith.constant 5.000000e-01 : f32
    %18 = vector.broadcast %cst_18 : f32 to vector<1x128xf32>
    %19 = vector.broadcast %cst_19 : f32 to vector<1x128xf32>
    %20 = arith.select %14, %18, %19 : vector<1x128xi1>, vector<1x128xf32>
    %21 = tpu.iota {dimensions = array<i32: 1>} : vector<1x128xi32>
    %c2_i32 = arith.constant 2 : i32
    %22 = vector.broadcast %c2_i32 : i32 to vector<1x128xi32>
    %23 = arith.cmpi eq, %21, %22 : vector<1x128xi32>
    %cst_20 = arith.constant 1.000000e+00 : f32
    %cst_21 = arith.constant 5.000000e-01 : f32
    %24 = vector.broadcast %cst_20 : f32 to vector<1x128xf32>
    %25 = vector.broadcast %cst_21 : f32 to vector<1x128xf32>
    %26 = arith.select %23, %24, %25 : vector<1x128xi1>, vector<1x128xf32>
    %c2_i32_22 = arith.constant 2 : i32
    %27 = vector.broadcast %c2_i32_22 : i32 to vector<1x128xi32>
    %28 = arith.cmpi eq, %21, %27 : vector<1x128xi32>
    %cst_23 = arith.constant 0.000000e+00 : f32
    %cst_24 = arith.constant 5.000000e-01 : f32
    %29 = vector.broadcast %cst_23 : f32 to vector<1x128xf32>
    %30 = vector.broadcast %cst_24 : f32 to vector<1x128xf32>
    %31 = arith.select %28, %29, %30 : vector<1x128xi1>, vector<1x128xf32>
    %cst_25 = arith.constant 0.000000e+00 : f32
    %32 = vector.broadcast %cst_25 : f32 to vector<8x32xf32>
    %cst_26 = arith.constant 0.000000e+00 : f32
    %33 = vector.broadcast %cst_26 : f32 to vector<8x32xf32>
    %cst_27 = arith.constant 0.000000e+00 : f32
    %34 = vector.broadcast %cst_27 : f32 to vector<8x32xf32>
    %cst_28 = arith.constant 0.000000e+00 : f32
    %35 = vector.broadcast %cst_28 : f32 to vector<8x32xf32>
    %cst_29 = arith.constant 0.000000e+00 : f32
    %36 = vector.broadcast %cst_29 : f32 to vector<8x1xf32>
    %cst_30 = arith.constant 0.000000e+00 : f32
    %37 = vector.broadcast %cst_30 : f32 to vector<8x1xf32>
    %c0_31 = arith.constant 0 : index
    %c0_32 = arith.constant 0 : index
    %c0_33 = arith.constant 0 : index
    %38 = vector.load %arg0[%c0_31, %c0_32, %c0_33] : memref<8x8x1xf32, #tpu.memory_space<vmem>>, vector<8x8x1xf32>
    %39 = vector.shape_cast %0 : vector<1x128xf32> to vector<1x1x128xf32>
    %40 = vector.broadcast %38 : vector<8x8x1xf32> to vector<8x8x128xf32>
    %41 = vector.broadcast %39 : vector<1x1x128xf32> to vector<8x8x128xf32>
    %42 = arith.mulf %40, %41 : vector<8x8x128xf32>
    %43 = vector.shape_cast %2 : vector<1x128xf32> to vector<1x1x128xf32>
    %44 = vector.broadcast %43 : vector<1x1x128xf32> to vector<8x8x128xf32>
    %45 = arith.addf %42, %44 : vector<8x8x128xf32>
    %c0_34 = arith.constant 0 : index
    %c0_35 = arith.constant 0 : index
    %c0_36 = arith.constant 0 : index
    %46 = vector.load %arg11[%c0_34, %c0_35, %c0_36] : memref<8x8x128xf32, #tpu.memory_space<vmem>>, vector<8x8x128xf32>
    tpu.vector_store %arg11[%c0_34, %c0_35, %c0_36], %45 {strides = array<i32>} : memref<8x8x128xf32, #tpu.memory_space<vmem>>, vector<8x8x128xf32>,
    %c0_i32 = arith.constant 0 : i32
    %47 = arith.index_cast %c0_i32 : i32 to index
    %c0_37 = arith.constant 0 : index
    %c0_38 = arith.constant 0 : index
    %48 = vector.load %arg11[%47, %c0_37, %c0_38] : memref<8x8x128xf32, #tpu.memory_space<vmem>>, vector<1x8x128xf32>
    %49 = vector.shape_cast %48 : vector<1x8x128xf32> to vector<8x128xf32>
    %cst_39 = arith.constant dense<0.000000e+00> : vector<8x128xf32>
    %50 = tpu.matmul %34, %4, %cst_39 {dimension_numbers = #tpu.dot_dimension_numbers<[1], [0], [0], [1], [0, 0, 1, 1], [], []>} : vector<8x32xf32>, vector<32x128xf32>, vector<8x128xf32> -> vector<8x128xf32>
    %51 = vector.broadcast %5 : vector<1x128xf32> to vector<8x128xf32>
    %52 = arith.addf %50, %51 : vector<8x128xf32>
    %53 = vector.broadcast %36 : vector<8x1xf32> to vector<8x128xf32>
    %54 = vector.broadcast %7 : vector<1x128xf32> to vector<8x128xf32>
    %55 = arith.mulf %53, %54 : vector<8x128xf32>
    %56 = vector.broadcast %8 : vector<1x128xf32> to vector<8x128xf32>
    %57 = arith.addf %55, %56 : vector<8x128xf32>
    %cst_40 = arith.constant dense<0.000000e+00> : vector<8x128xf32>
    %58 = tpu.matmul %32, %1, %cst_40 {dimension_numbers = #tpu.dot_dimension_numbers<[1], [0], [0], [1], [0, 0, 1, 1], [], []>} : vector<8x32xf32>, vector<32x128xf32>, vector<8x128xf32> -> vector<8x128xf32>
    %59 = arith.addf %49, %58 : vector<8x128xf32>
    %60 = math.tanh %59 : vector<8x128xf32>
    %61 = vector.broadcast %17 : vector<1x128xf32> to vector<8x128xf32>
    %62 = arith.mulf %60, %61 : vector<8x128xf32>
    %63 = vector.broadcast %20 : vector<1x128xf32> to vector<8x128xf32>
    %64 = arith.addf %62, %63 : vector<8x128xf32>
    %65 = vector.extract_strided_slice %64 {offsets = [0, 0], sizes = [8, 32], strides = [1, 1]} : vector<8x128xf32> to vector<8x32xf32>
    %66 = vector.extract_strided_slice %64 {offsets = [0, 32], sizes = [8, 32], strides = [1, 1]} : vector<8x128xf32> to vector<8x32xf32>
    %67 = vector.extract_strided_slice %64 {offsets = [0, 64], sizes = [8, 32], strides = [1, 1]} : vector<8x128xf32> to vector<8x32xf32>
    %68 = vector.extract_strided_slice %64 {offsets = [0, 96], sizes = [8, 32], strides = [1, 1]} : vector<8x128xf32> to vector<8x32xf32>
    %69 = arith.mulf %66, %33 : vector<8x32xf32>
    %70 = arith.mulf %65, %67 : vector<8x32xf32>
    %71 = arith.addf %69, %70 : vector<8x32xf32>
    %72 = math.tanh %71 : vector<8x32xf32>
    %73 = arith.mulf %68, %72 : vector<8x32xf32>
    %cst_41 = arith.constant dense<0.000000e+00> : vector<8x128xf32>
    %74 = tpu.matmul %71, %3, %cst_41 {dimension_numbers = #tpu.dot_dimension_numbers<[1], [0], [0], [1], [0, 0, 1, 1], [], []>} : vector<8x32xf32>, vector<32x128xf32>, vector<8x128xf32> -> vector<8x128xf32>
    %75 = arith.addf %74, %52 : vector<8x128xf32>
    %76 = math.tanh %75 : vector<8x128xf32>
    %77 = vector.broadcast %17 : vector<1x128xf32> to vector<8x128xf32>
    %78 = arith.mulf %76, %77 : vector<8x128xf32>
    %79 = vector.broadcast %20 : vector<1x128xf32> to vector<8x128xf32>
    %80 = arith.addf %78, %79 : vector<8x128xf32>
    %81 = vector.extract_strided_slice %80 {offsets = [0, 0], sizes = [8, 32], strides = [1, 1]} : vector<8x128xf32> to vector<8x32xf32>
    %82 = vector.extract_strided_slice %80 {offsets = [0, 32], sizes = [8, 32], strides = [1, 1]} : vector<8x128xf32> to vector<8x32xf32>
    %83 = vector.extract_strided_slice %80 {offsets = [0, 64], sizes = [8, 32], strides = [1, 1]} : vector<8x128xf32> to vector<8x32xf32>
    %84 = vector.extract_strided_slice %80 {offsets = [0, 96], sizes = [8, 32], strides = [1, 1]} : vector<8x128xf32> to vector<8x32xf32>
    %85 = arith.mulf %82, %35 : vector<8x32xf32>
    %86 = arith.mulf %81, %83 : vector<8x32xf32>
    %87 = arith.addf %85, %86 : vector<8x32xf32>
    %88 = math.tanh %87 : vector<8x32xf32>
    %89 = arith.mulf %84, %88 : vector<8x32xf32>
    %cst_42 = arith.constant dense<0.000000e+00> : vector<8x128xf32>
    %90 = tpu.matmul %87, %6, %cst_42 {dimension_numbers = #tpu.dot_dimension_numbers<[1], [0], [0], [1], [0, 0, 1, 1], [], []>} : vector<8x32xf32>, vector<32x128xf32>, vector<8x128xf32> -> vector<8x128xf32>
    %91 = arith.addf %90, %57 : vector<8x128xf32>
    %92 = math.tanh %91 : vector<8x128xf32>
    %93 = vector.broadcast %26 : vector<1x128xf32> to vector<8x128xf32>
    %94 = arith.mulf %92, %93 : vector<8x128xf32>
    %95 = vector.broadcast %31 : vector<1x128xf32> to vector<8x128xf32>
    %96 = arith.addf %94, %95 : vector<8x128xf32>
    %97 = vector.extract_strided_slice %96 {offsets = [0, 0], sizes = [8, 1], strides = [1, 1]} : vector<8x128xf32> to vector<8x1xf32>
    %98 = vector.extract_strided_slice %96 {offsets = [0, 1], sizes = [8, 1], strides = [1, 1]} : vector<8x128xf32> to vector<8x1xf32>
    %99 = vector.extract_strided_slice %96 {offsets = [0, 2], sizes = [8, 1], strides = [1, 1]} : vector<8x128xf32> to vector<8x1xf32>
    %100 = vector.extract_strided_slice %96 {offsets = [0, 3], sizes = [8, 1], strides = [1, 1]} : vector<8x128xf32> to vector<8x1xf32>
    %101 = arith.mulf %98, %37 : vector<8x1xf32>
    %102 = arith.mulf %97, %99 : vector<8x1xf32>
    %103 = arith.addf %101, %102 : vector<8x1xf32>
    %104 = math.tanh %103 : vector<8x1xf32>
    %105 = arith.mulf %100, %104 : vector<8x1xf32>
    %c1_i32 = arith.constant 1 : i32
    %106 = arith.index_cast %c1_i32 : i32 to index
    %c0_43 = arith.constant 0 : index
    %c0_44 = arith.constant 0 : index
    %107 = vector.load %arg11[%106, %c0_43, %c0_44] : memref<8x8x128xf32, #tpu.memory_space<vmem>>, vector<1x8x128xf32>
    %108 = vector.shape_cast %107 : vector<1x8x128xf32> to vector<8x128xf32>
    %cst_45 = arith.constant dense<0.000000e+00> : vector<8x128xf32>
    %109 = tpu.matmul %89, %4, %cst_45 {dimension_numbers = #tpu.dot_dimension_numbers<[1], [0], [0], [1], [0, 0, 1, 1], [], []>} : vector<8x32xf32>, vector<32x128xf32>, vector<8x128xf32> -> vector<8x128xf32>
    %110 = vector.broadcast %5 : vector<1x128xf32> to vector<8x128xf32>
    %111 = arith.addf %109, %110 : vector<8x128xf32>
    %112 = vector.broadcast %105 : vector<8x1xf32> to vector<8x128xf32>
    %113 = vector.broadcast %7 : vector<1x128xf32> to vector<8x128xf32>
    %114 = arith.mulf %112, %113 : vector<8x128xf32>
    %115 = vector.broadcast %8 : vector<1x128xf32> to vector<8x128xf32>
    %116 = arith.addf %114, %115 : vector<8x128xf32>
    %cst_46 = arith.constant dense<0.000000e+00> : vector<8x128xf32>
    %117 = tpu.matmul %73, %1, %cst_46 {dimension_numbers = #tpu.dot_dimension_numbers<[1], [0], [0], [1], [0, 0, 1, 1], [], []>} : vector<8x32xf32>, vector<32x128xf32>, vector<8x128xf32> -> vector<8x128xf32>
    %118 = arith.addf %108, %117 : vector<8x128xf32>
    %119 = math.tanh %118 : vector<8x128xf32>
    %120 = vector.broadcast %17 : vector<1x128xf32> to vector<8x128xf32>
    %121 = arith.mulf %119, %120 : vector<8x128xf32>
    %122 = vector.broadcast %20 : vector<1x128xf32> to vector<8x128xf32>
    %123 = arith.addf %121, %122 : vector<8x128xf32>
    %124 = vector.extract_strided_slice %123 {offsets = [0, 0], sizes = [8, 32], strides = [1, 1]} : vector<8x128xf32> to vector<8x32xf32>
    %125 = vector.extract_strided_slice %123 {offsets = [0, 32], sizes = [8, 32], strides = [1, 1]} : vector<8x128xf32> to vector<8x32xf32>
    %126 = vector.extract_strided_slice %123 {offsets = [0, 64], sizes = [8, 32], strides = [1, 1]} : vector<8x128xf32> to vector<8x32xf32>
    %127 = vector.extract_strided_slice %123 {offsets = [0, 96], sizes = [8, 32], strides = [1, 1]} : vector<8x128xf32> to vector<8x32xf32>
    %128 = arith.mulf %125, %71 : vector<8x32xf32>
    %129 = arith.mulf %124, %126 : vector<8x32xf32>
    %130 = arith.addf %128, %129 : vector<8x32xf32>
    %131 = math.tanh %130 : vector<8x32xf32>
    %132 = arith.mulf %127, %131 : vector<8x32xf32>
    %cst_47 = arith.constant dense<0.000000e+00> : vector<8x128xf32>
    %133 = tpu.matmul %130, %3, %cst_47 {dimension_numbers = #tpu.dot_dimension_numbers<[1], [0], [0], [1], [0, 0, 1, 1], [], []>} : vector<8x32xf32>, vector<32x128xf32>, vector<8x128xf32> -> vector<8x128xf32>
    %134 = arith.addf %133, %111 : vector<8x128xf32>
    %135 = math.tanh %134 : vector<8x128xf32>
    %136 = vector.broadcast %17 : vector<1x128xf32> to vector<8x128xf32>
    %137 = arith.mulf %135, %136 : vector<8x128xf32>
    %138 = vector.broadcast %20 : vector<1x128xf32> to vector<8x128xf32>
    %139 = arith.addf %137, %138 : vector<8x128xf32>
    %140 = vector.extract_strided_slice %139 {offsets = [0, 0], sizes = [8, 32], strides = [1, 1]} : vector<8x128xf32> to vector<8x32xf32>
    %141 = vector.extract_strided_slice %139 {offsets = [0, 32], sizes = [8, 32], strides = [1, 1]} : vector<8x128xf32> to vector<8x32xf32>
    %142 = vector.extract_strided_slice %139 {offsets = [0, 64], sizes = [8, 32], strides = [1, 1]} : vector<8x128xf32> to vector<8x32xf32>
    %143 = vector.extract_strided_slice %139 {offsets = [0, 96], sizes = [8, 32], strides = [1, 1]} : vector<8x128xf32> to vector<8x32xf32>
    %144 = arith.mulf %141, %87 : vector<8x32xf32>
    %145 = arith.mulf %140, %142 : vector<8x32xf32>
    %146 = arith.addf %144, %145 : vector<8x32xf32>
    %147 = math.tanh %146 : vector<8x32xf32>
    %148 = arith.mulf %143, %147 : vector<8x32xf32>
    %cst_48 = arith.constant dense<0.000000e+00> : vector<8x128xf32>
    %149 = tpu.matmul %146, %6, %cst_48 {dimension_numbers = #tpu.dot_dimension_numbers<[1], [0], [0], [1], [0, 0, 1, 1], [], []>} : vector<8x32xf32>, vector<32x128xf32>, vector<8x128xf32> -> vector<8x128xf32>
    %150 = arith.addf %149, %116 : vector<8x128xf32>
    %151 = math.tanh %150 : vector<8x128xf32>
    %152 = vector.broadcast %26 : vector<1x128xf32> to vector<8x128xf32>
    %153 = arith.mulf %151, %152 : vector<8x128xf32>
    %154 = vector.broadcast %31 : vector<1x128xf32> to vector<8x128xf32>
    %155 = arith.addf %153, %154 : vector<8x128xf32>
    %156 = vector.extract_strided_slice %155 {offsets = [0, 0], sizes = [8, 1], strides = [1, 1]} : vector<8x128xf32> to vector<8x1xf32>
    %157 = vector.extract_strided_slice %155 {offsets = [0, 1], sizes = [8, 1], strides = [1, 1]} : vector<8x128xf32> to vector<8x1xf32>
    %158 = vector.extract_strided_slice %155 {offsets = [0, 2], sizes = [8, 1], strides = [1, 1]} : vector<8x128xf32> to vector<8x1xf32>
    %159 = vector.extract_strided_slice %155 {offsets = [0, 3], sizes = [8, 1], strides = [1, 1]} : vector<8x128xf32> to vector<8x1xf32>
    %160 = arith.mulf %157, %103 : vector<8x1xf32>
    %161 = arith.mulf %156, %158 : vector<8x1xf32>
    %162 = arith.addf %160, %161 : vector<8x1xf32>
    %163 = math.tanh %162 : vector<8x1xf32>
    %164 = arith.mulf %159, %163 : vector<8x1xf32>
    %c2_i32_49 = arith.constant 2 : i32
    %165 = arith.index_cast %c2_i32_49 : i32 to index
    %c0_50 = arith.constant 0 : index
    %c0_51 = arith.constant 0 : index
    %166 = vector.load %arg11[%165, %c0_50, %c0_51] : memref<8x8x128xf32, #tpu.memory_space<vmem>>, vector<1x8x128xf32>
    %167 = vector.shape_cast %166 : vector<1x8x128xf32> to vector<8x128xf32>
    %cst_52 = arith.constant dense<0.000000e+00> : vector<8x128xf32>
    %168 = tpu.matmul %148, %4, %cst_52 {dimension_numbers = #tpu.dot_dimension_numbers<[1], [0], [0], [1], [0, 0, 1, 1], [], []>} : vector<8x32xf32>, vector<32x128xf32>, vector<8x128xf32> -> vector<8x128xf32>
    %169 = vector.broadcast %5 : vector<1x128xf32> to vector<8x128xf32>
    %170 = arith.addf %168, %169 : vector<8x128xf32>
    %171 = vector.broadcast %164 : vector<8x1xf32> to vector<8x128xf32>
    %172 = vector.broadcast %7 : vector<1x128xf32> to vector<8x128xf32>
    %173 = arith.mulf %171, %172 : vector<8x128xf32>
    %174 = vector.broadcast %8 : vector<1x128xf32> to vector<8x128xf32>
    %175 = arith.addf %173, %174 : vector<8x128xf32>
    %cst_53 = arith.constant dense<0.000000e+00> : vector<8x128xf32>
    %176 = tpu.matmul %132, %1, %cst_53 {dimension_numbers = #tpu.dot_dimension_numbers<[1], [0], [0], [1], [0, 0, 1, 1], [], []>} : vector<8x32xf32>, vector<32x128xf32>, vector<8x128xf32> -> vector<8x128xf32>
    %177 = arith.addf %167, %176 : vector<8x128xf32>
    %178 = math.tanh %177 : vector<8x128xf32>
    %179 = vector.broadcast %17 : vector<1x128xf32> to vector<8x128xf32>
    %180 = arith.mulf %178, %179 : vector<8x128xf32>
    %181 = vector.broadcast %20 : vector<1x128xf32> to vector<8x128xf32>
    %182 = arith.addf %180, %181 : vector<8x128xf32>
    %183 = vector.extract_strided_slice %182 {offsets = [0, 0], sizes = [8, 32], strides = [1, 1]} : vector<8x128xf32> to vector<8x32xf32>
    %184 = vector.extract_strided_slice %182 {offsets = [0, 32], sizes = [8, 32], strides = [1, 1]} : vector<8x128xf32> to vector<8x32xf32>
    %185 = vector.extract_strided_slice %182 {offsets = [0, 64], sizes = [8, 32], strides = [1, 1]} : vector<8x128xf32> to vector<8x32xf32>
    %186 = vector.extract_strided_slice %182 {offsets = [0, 96], sizes = [8, 32], strides = [1, 1]} : vector<8x128xf32> to vector<8x32xf32>
    %187 = arith.mulf %184, %130 : vector<8x32xf32>
    %188 = arith.mulf %183, %185 : vector<8x32xf32>
    %189 = arith.addf %187, %188 : vector<8x32xf32>
    %190 = math.tanh %189 : vector<8x32xf32>
    %191 = arith.mulf %186, %190 : vector<8x32xf32>
    %cst_54 = arith.constant dense<0.000000e+00> : vector<8x128xf32>
    %192 = tpu.matmul %189, %3, %cst_54 {dimension_numbers = #tpu.dot_dimension_numbers<[1], [0], [0], [1], [0, 0, 1, 1], [], []>} : vector<8x32xf32>, vector<32x128xf32>, vector<8x128xf32> -> vector<8x128xf32>
    %193 = arith.addf %192, %170 : vector<8x128xf32>
    %194 = math.tanh %193 : vector<8x128xf32>
    %195 = vector.broadcast %17 : vector<1x128xf32> to vector<8x128xf32>
    %196 = arith.mulf %194, %195 : vector<8x128xf32>
    %197 = vector.broadcast %20 : vector<1x128xf32> to vector<8x128xf32>
    %198 = arith.addf %196, %197 : vector<8x128xf32>
    %199 = vector.extract_strided_slice %198 {offsets = [0, 0], sizes = [8, 32], strides = [1, 1]} : vector<8x128xf32> to vector<8x32xf32>
    %200 = vector.extract_strided_slice %198 {offsets = [0, 32], sizes = [8, 32], strides = [1, 1]} : vector<8x128xf32> to vector<8x32xf32>
    %201 = vector.extract_strided_slice %198 {offsets = [0, 64], sizes = [8, 32], strides = [1, 1]} : vector<8x128xf32> to vector<8x32xf32>
    %202 = vector.extract_strided_slice %198 {offsets = [0, 96], sizes = [8, 32], strides = [1, 1]} : vector<8x128xf32> to vector<8x32xf32>
    %203 = arith.mulf %200, %146 : vector<8x32xf32>
    %204 = arith.mulf %199, %201 : vector<8x32xf32>
    %205 = arith.addf %203, %204 : vector<8x32xf32>
    %206 = math.tanh %205 : vector<8x32xf32>
    %207 = arith.mulf %202, %206 : vector<8x32xf32>
    %cst_55 = arith.constant dense<0.000000e+00> : vector<8x128xf32>
    %208 = tpu.matmul %205, %6, %cst_55 {dimension_numbers = #tpu.dot_dimension_numbers<[1], [0], [0], [1], [0, 0, 1, 1], [], []>} : vector<8x32xf32>, vector<32x128xf32>, vector<8x128xf32> -> vector<8x128xf32>
    %209 = arith.addf %208, %175 : vector<8x128xf32>
    %210 = math.tanh %209 : vector<8x128xf32>
    %211 = vector.broadcast %26 : vector<1x128xf32> to vector<8x128xf32>
    %212 = arith.mulf %210, %211 : vector<8x128xf32>
    %213 = vector.broadcast %31 : vector<1x128xf32> to vector<8x128xf32>
    %214 = arith.addf %212, %213 : vector<8x128xf32>
    %215 = vector.extract_strided_slice %214 {offsets = [0, 0], sizes = [8, 1], strides = [1, 1]} : vector<8x128xf32> to vector<8x1xf32>
    %216 = vector.extract_strided_slice %214 {offsets = [0, 1], sizes = [8, 1], strides = [1, 1]} : vector<8x128xf32> to vector<8x1xf32>
    %217 = vector.extract_strided_slice %214 {offsets = [0, 2], sizes = [8, 1], strides = [1, 1]} : vector<8x128xf32> to vector<8x1xf32>
    %218 = vector.extract_strided_slice %214 {offsets = [0, 3], sizes = [8, 1], strides = [1, 1]} : vector<8x128xf32> to vector<8x1xf32>
    %219 = arith.mulf %216, %162 : vector<8x1xf32>
    %220 = arith.mulf %215, %217 : vector<8x1xf32>
    %221 = arith.addf %219, %220 : vector<8x1xf32>
    %222 = math.tanh %221 : vector<8x1xf32>
    %223 = arith.mulf %218, %222 : vector<8x1xf32>
    %c3_i32 = arith.constant 3 : i32
    %224 = arith.index_cast %c3_i32 : i32 to index
    %c0_56 = arith.constant 0 : index
    %c0_57 = arith.constant 0 : index
    %225 = vector.load %arg11[%224, %c0_56, %c0_57] : memref<8x8x128xf32, #tpu.memory_space<vmem>>, vector<1x8x128xf32>
    %226 = vector.shape_cast %225 : vector<1x8x128xf32> to vector<8x128xf32>
    %cst_58 = arith.constant dense<0.000000e+00> : vector<8x128xf32>
    %227 = tpu.matmul %207, %4, %cst_58 {dimension_numbers = #tpu.dot_dimension_numbers<[1], [0], [0], [1], [0, 0, 1, 1], [], []>} : vector<8x32xf32>, vector<32x128xf32>, vector<8x128xf32> -> vector<8x128xf32>
    %228 = vector.broadcast %5 : vector<1x128xf32> to vector<8x128xf32>
    %229 = arith.addf %227, %228 : vector<8x128xf32>
    %230 = vector.broadcast %223 : vector<8x1xf32> to vector<8x128xf32>
    %231 = vector.broadcast %7 : vector<1x128xf32> to vector<8x128xf32>
    %232 = arith.mulf %230, %231 : vector<8x128xf32>
    %233 = vector.broadcast %8 : vector<1x128xf32> to vector<8x128xf32>
    %234 = arith.addf %232, %233 : vector<8x128xf32>
    %cst_59 = arith.constant dense<0.000000e+00> : vector<8x128xf32>
    %235 = tpu.matmul %191, %1, %cst_59 {dimension_numbers = #tpu.dot_dimension_numbers<[1], [0], [0], [1], [0, 0, 1, 1], [], []>} : vector<8x32xf32>, vector<32x128xf32>, vector<8x128xf32> -> vector<8x128xf32>
    %236 = arith.addf %226, %235 : vector<8x128xf32>
    %237 = math.tanh %236 : vector<8x128xf32>
    %238 = vector.broadcast %17 : vector<1x128xf32> to vector<8x128xf32>
    %239 = arith.mulf %237, %238 : vector<8x128xf32>
    %240 = vector.broadcast %20 : vector<1x128xf32> to vector<8x128xf32>
    %241 = arith.addf %239, %240 : vector<8x128xf32>
    %242 = vector.extract_strided_slice %241 {offsets = [0, 0], sizes = [8, 32], strides = [1, 1]} : vector<8x128xf32> to vector<8x32xf32>
    %243 = vector.extract_strided_slice %241 {offsets = [0, 32], sizes = [8, 32], strides = [1, 1]} : vector<8x128xf32> to vector<8x32xf32>
    %244 = vector.extract_strided_slice %241 {offsets = [0, 64], sizes = [8, 32], strides = [1, 1]} : vector<8x128xf32> to vector<8x32xf32>
    %245 = vector.extract_strided_slice %241 {offsets = [0, 96], sizes = [8, 32], strides = [1, 1]} : vector<8x128xf32> to vector<8x32xf32>
    %246 = arith.mulf %243, %189 : vector<8x32xf32>
    %247 = arith.mulf %242, %244 : vector<8x32xf32>
    %248 = arith.addf %246, %247 : vector<8x32xf32>
    %249 = math.tanh %248 : vector<8x32xf32>
    %250 = arith.mulf %245, %249 : vector<8x32xf32>
    %cst_60 = arith.constant dense<0.000000e+00> : vector<8x128xf32>
    %251 = tpu.matmul %248, %3, %cst_60 {dimension_numbers = #tpu.dot_dimension_numbers<[1], [0], [0], [1], [0, 0, 1, 1], [], []>} : vector<8x32xf32>, vector<32x128xf32>, vector<8x128xf32> -> vector<8x128xf32>
    %252 = arith.addf %251, %229 : vector<8x128xf32>
    %253 = math.tanh %252 : vector<8x128xf32>
    %254 = vector.broadcast %17 : vector<1x128xf32> to vector<8x128xf32>
    %255 = arith.mulf %253, %254 : vector<8x128xf32>
    %256 = vector.broadcast %20 : vector<1x128xf32> to vector<8x128xf32>
    %257 = arith.addf %255, %256 : vector<8x128xf32>
    %258 = vector.extract_strided_slice %257 {offsets = [0, 0], sizes = [8, 32], strides = [1, 1]} : vector<8x128xf32> to vector<8x32xf32>
    %259 = vector.extract_strided_slice %257 {offsets = [0, 32], sizes = [8, 32], strides = [1, 1]} : vector<8x128xf32> to vector<8x32xf32>
    %260 = vector.extract_strided_slice %257 {offsets = [0, 64], sizes = [8, 32], strides = [1, 1]} : vector<8x128xf32> to vector<8x32xf32>
    %261 = vector.extract_strided_slice %257 {offsets = [0, 96], sizes = [8, 32], strides = [1, 1]} : vector<8x128xf32> to vector<8x32xf32>
    %262 = arith.mulf %259, %205 : vector<8x32xf32>
    %263 = arith.mulf %258, %260 : vector<8x32xf32>
    %264 = arith.addf %262, %263 : vector<8x32xf32>
    %265 = math.tanh %264 : vector<8x32xf32>
    %266 = arith.mulf %261, %265 : vector<8x32xf32>
    %cst_61 = arith.constant dense<0.000000e+00> : vector<8x128xf32>
    %267 = tpu.matmul %264, %6, %cst_61 {dimension_numbers = #tpu.dot_dimension_numbers<[1], [0], [0], [1], [0, 0, 1, 1], [], []>} : vector<8x32xf32>, vector<32x128xf32>, vector<8x128xf32> -> vector<8x128xf32>
    %268 = arith.addf %267, %234 : vector<8x128xf32>
    %269 = math.tanh %268 : vector<8x128xf32>
    %270 = vector.broadcast %26 : vector<1x128xf32> to vector<8x128xf32>
    %271 = arith.mulf %269, %270 : vector<8x128xf32>
    %272 = vector.broadcast %31 : vector<1x128xf32> to vector<8x128xf32>
    %273 = arith.addf %271, %272 : vector<8x128xf32>
    %274 = vector.extract_strided_slice %273 {offsets = [0, 0], sizes = [8, 1], strides = [1, 1]} : vector<8x128xf32> to vector<8x1xf32>
    %275 = vector.extract_strided_slice %273 {offsets = [0, 1], sizes = [8, 1], strides = [1, 1]} : vector<8x128xf32> to vector<8x1xf32>
    %276 = vector.extract_strided_slice %273 {offsets = [0, 2], sizes = [8, 1], strides = [1, 1]} : vector<8x128xf32> to vector<8x1xf32>
    %277 = vector.extract_strided_slice %273 {offsets = [0, 3], sizes = [8, 1], strides = [1, 1]} : vector<8x128xf32> to vector<8x1xf32>
    %278 = arith.mulf %275, %221 : vector<8x1xf32>
    %279 = arith.mulf %274, %276 : vector<8x1xf32>
    %280 = arith.addf %278, %279 : vector<8x1xf32>
    %281 = math.tanh %280 : vector<8x1xf32>
    %282 = arith.mulf %277, %281 : vector<8x1xf32>
    %c4_i32 = arith.constant 4 : i32
    %283 = arith.index_cast %c4_i32 : i32 to index
    %c0_62 = arith.constant 0 : index
    %c0_63 = arith.constant 0 : index
    %284 = vector.load %arg11[%283, %c0_62, %c0_63] : memref<8x8x128xf32, #tpu.memory_space<vmem>>, vector<1x8x128xf32>
    %285 = vector.shape_cast %284 : vector<1x8x128xf32> to vector<8x128xf32>
    %cst_64 = arith.constant dense<0.000000e+00> : vector<8x128xf32>
    %286 = tpu.matmul %266, %4, %cst_64 {dimension_numbers = #tpu.dot_dimension_numbers<[1], [0], [0], [1], [0, 0, 1, 1], [], []>} : vector<8x32xf32>, vector<32x128xf32>, vector<8x128xf32> -> vector<8x128xf32>
    %287 = vector.broadcast %5 : vector<1x128xf32> to vector<8x128xf32>
    %288 = arith.addf %286, %287 : vector<8x128xf32>
    %289 = vector.broadcast %282 : vector<8x1xf32> to vector<8x128xf32>
    %290 = vector.broadcast %7 : vector<1x128xf32> to vector<8x128xf32>
    %291 = arith.mulf %289, %290 : vector<8x128xf32>
    %292 = vector.broadcast %8 : vector<1x128xf32> to vector<8x128xf32>
    %293 = arith.addf %291, %292 : vector<8x128xf32>
    %cst_65 = arith.constant dense<0.000000e+00> : vector<8x128xf32>
    %294 = tpu.matmul %250, %1, %cst_65 {dimension_numbers = #tpu.dot_dimension_numbers<[1], [0], [0], [1], [0, 0, 1, 1], [], []>} : vector<8x32xf32>, vector<32x128xf32>, vector<8x128xf32> -> vector<8x128xf32>
    %295 = arith.addf %285, %294 : vector<8x128xf32>
    %296 = math.tanh %295 : vector<8x128xf32>
    %297 = vector.broadcast %17 : vector<1x128xf32> to vector<8x128xf32>
    %298 = arith.mulf %296, %297 : vector<8x128xf32>
    %299 = vector.broadcast %20 : vector<1x128xf32> to vector<8x128xf32>
    %300 = arith.addf %298, %299 : vector<8x128xf32>
    %301 = vector.extract_strided_slice %300 {offsets = [0, 0], sizes = [8, 32], strides = [1, 1]} : vector<8x128xf32> to vector<8x32xf32>
    %302 = vector.extract_strided_slice %300 {offsets = [0, 32], sizes = [8, 32], strides = [1, 1]} : vector<8x128xf32> to vector<8x32xf32>
    %303 = vector.extract_strided_slice %300 {offsets = [0, 64], sizes = [8, 32], strides = [1, 1]} : vector<8x128xf32> to vector<8x32xf32>
    %304 = vector.extract_strided_slice %300 {offsets = [0, 96], sizes = [8, 32], strides = [1, 1]} : vector<8x128xf32> to vector<8x32xf32>
    %305 = arith.mulf %302, %248 : vector<8x32xf32>
    %306 = arith.mulf %301, %303 : vector<8x32xf32>
    %307 = arith.addf %305, %306 : vector<8x32xf32>
    %308 = math.tanh %307 : vector<8x32xf32>
    %309 = arith.mulf %304, %308 : vector<8x32xf32>
    %cst_66 = arith.constant dense<0.000000e+00> : vector<8x128xf32>
    %310 = tpu.matmul %307, %3, %cst_66 {dimension_numbers = #tpu.dot_dimension_numbers<[1], [0], [0], [1], [0, 0, 1, 1], [], []>} : vector<8x32xf32>, vector<32x128xf32>, vector<8x128xf32> -> vector<8x128xf32>
    %311 = arith.addf %310, %288 : vector<8x128xf32>
    %312 = math.tanh %311 : vector<8x128xf32>
    %313 = vector.broadcast %17 : vector<1x128xf32> to vector<8x128xf32>
    %314 = arith.mulf %312, %313 : vector<8x128xf32>
    %315 = vector.broadcast %20 : vector<1x128xf32> to vector<8x128xf32>
    %316 = arith.addf %314, %315 : vector<8x128xf32>
    %317 = vector.extract_strided_slice %316 {offsets = [0, 0], sizes = [8, 32], strides = [1, 1]} : vector<8x128xf32> to vector<8x32xf32>
    %318 = vector.extract_strided_slice %316 {offsets = [0, 32], sizes = [8, 32], strides = [1, 1]} : vector<8x128xf32> to vector<8x32xf32>
    %319 = vector.extract_strided_slice %316 {offsets = [0, 64], sizes = [8, 32], strides = [1, 1]} : vector<8x128xf32> to vector<8x32xf32>
    %320 = vector.extract_strided_slice %316 {offsets = [0, 96], sizes = [8, 32], strides = [1, 1]} : vector<8x128xf32> to vector<8x32xf32>
    %321 = arith.mulf %318, %264 : vector<8x32xf32>
    %322 = arith.mulf %317, %319 : vector<8x32xf32>
    %323 = arith.addf %321, %322 : vector<8x32xf32>
    %324 = math.tanh %323 : vector<8x32xf32>
    %325 = arith.mulf %320, %324 : vector<8x32xf32>
    %cst_67 = arith.constant dense<0.000000e+00> : vector<8x128xf32>
    %326 = tpu.matmul %323, %6, %cst_67 {dimension_numbers = #tpu.dot_dimension_numbers<[1], [0], [0], [1], [0, 0, 1, 1], [], []>} : vector<8x32xf32>, vector<32x128xf32>, vector<8x128xf32> -> vector<8x128xf32>
    %327 = arith.addf %326, %293 : vector<8x128xf32>
    %328 = math.tanh %327 : vector<8x128xf32>
    %329 = vector.broadcast %26 : vector<1x128xf32> to vector<8x128xf32>
    %330 = arith.mulf %328, %329 : vector<8x128xf32>
    %331 = vector.broadcast %31 : vector<1x128xf32> to vector<8x128xf32>
    %332 = arith.addf %330, %331 : vector<8x128xf32>
    %333 = vector.extract_strided_slice %332 {offsets = [0, 0], sizes = [8, 1], strides = [1, 1]} : vector<8x128xf32> to vector<8x1xf32>
    %334 = vector.extract_strided_slice %332 {offsets = [0, 1], sizes = [8, 1], strides = [1, 1]} : vector<8x128xf32> to vector<8x1xf32>
    %335 = vector.extract_strided_slice %332 {offsets = [0, 2], sizes = [8, 1], strides = [1, 1]} : vector<8x128xf32> to vector<8x1xf32>
    %336 = vector.extract_strided_slice %332 {offsets = [0, 3], sizes = [8, 1], strides = [1, 1]} : vector<8x128xf32> to vector<8x1xf32>
    %337 = arith.mulf %334, %280 : vector<8x1xf32>
    %338 = arith.mulf %333, %335 : vector<8x1xf32>
    %339 = arith.addf %337, %338 : vector<8x1xf32>
    %340 = math.tanh %339 : vector<8x1xf32>
    %341 = arith.mulf %336, %340 : vector<8x1xf32>
    %c5_i32 = arith.constant 5 : i32
    %342 = arith.index_cast %c5_i32 : i32 to index
    %c0_68 = arith.constant 0 : index
    %c0_69 = arith.constant 0 : index
    %343 = vector.load %arg11[%342, %c0_68, %c0_69] : memref<8x8x128xf32, #tpu.memory_space<vmem>>, vector<1x8x128xf32>
    %344 = vector.shape_cast %343 : vector<1x8x128xf32> to vector<8x128xf32>
    %cst_70 = arith.constant dense<0.000000e+00> : vector<8x128xf32>
    %345 = tpu.matmul %325, %4, %cst_70 {dimension_numbers = #tpu.dot_dimension_numbers<[1], [0], [0], [1], [0, 0, 1, 1], [], []>} : vector<8x32xf32>, vector<32x128xf32>, vector<8x128xf32> -> vector<8x128xf32>
    %346 = vector.broadcast %5 : vector<1x128xf32> to vector<8x128xf32>
    %347 = arith.addf %345, %346 : vector<8x128xf32>
    %348 = vector.broadcast %341 : vector<8x1xf32> to vector<8x128xf32>
    %349 = vector.broadcast %7 : vector<1x128xf32> to vector<8x128xf32>
    %350 = arith.mulf %348, %349 : vector<8x128xf32>
    %351 = vector.broadcast %8 : vector<1x128xf32> to vector<8x128xf32>
    %352 = arith.addf %350, %351 : vector<8x128xf32>
    %cst_71 = arith.constant dense<0.000000e+00> : vector<8x128xf32>
    %353 = tpu.matmul %309, %1, %cst_71 {dimension_numbers = #tpu.dot_dimension_numbers<[1], [0], [0], [1], [0, 0, 1, 1], [], []>} : vector<8x32xf32>, vector<32x128xf32>, vector<8x128xf32> -> vector<8x128xf32>
    %354 = arith.addf %344, %353 : vector<8x128xf32>
    %355 = math.tanh %354 : vector<8x128xf32>
    %356 = vector.broadcast %17 : vector<1x128xf32> to vector<8x128xf32>
    %357 = arith.mulf %355, %356 : vector<8x128xf32>
    %358 = vector.broadcast %20 : vector<1x128xf32> to vector<8x128xf32>
    %359 = arith.addf %357, %358 : vector<8x128xf32>
    %360 = vector.extract_strided_slice %359 {offsets = [0, 0], sizes = [8, 32], strides = [1, 1]} : vector<8x128xf32> to vector<8x32xf32>
    %361 = vector.extract_strided_slice %359 {offsets = [0, 32], sizes = [8, 32], strides = [1, 1]} : vector<8x128xf32> to vector<8x32xf32>
    %362 = vector.extract_strided_slice %359 {offsets = [0, 64], sizes = [8, 32], strides = [1, 1]} : vector<8x128xf32> to vector<8x32xf32>
    %363 = vector.extract_strided_slice %359 {offsets = [0, 96], sizes = [8, 32], strides = [1, 1]} : vector<8x128xf32> to vector<8x32xf32>
    %364 = arith.mulf %361, %307 : vector<8x32xf32>
    %365 = arith.mulf %360, %362 : vector<8x32xf32>
    %366 = arith.addf %364, %365 : vector<8x32xf32>
    %367 = math.tanh %366 : vector<8x32xf32>
    %368 = arith.mulf %363, %367 : vector<8x32xf32>
    %cst_72 = arith.constant dense<0.000000e+00> : vector<8x128xf32>
    %369 = tpu.matmul %366, %3, %cst_72 {dimension_numbers = #tpu.dot_dimension_numbers<[1], [0], [0], [1], [0, 0, 1, 1], [], []>} : vector<8x32xf32>, vector<32x128xf32>, vector<8x128xf32> -> vector<8x128xf32>
    %370 = arith.addf %369, %347 : vector<8x128xf32>
    %371 = math.tanh %370 : vector<8x128xf32>
    %372 = vector.broadcast %17 : vector<1x128xf32> to vector<8x128xf32>
    %373 = arith.mulf %371, %372 : vector<8x128xf32>
    %374 = vector.broadcast %20 : vector<1x128xf32> to vector<8x128xf32>
    %375 = arith.addf %373, %374 : vector<8x128xf32>
    %376 = vector.extract_strided_slice %375 {offsets = [0, 0], sizes = [8, 32], strides = [1, 1]} : vector<8x128xf32> to vector<8x32xf32>
    %377 = vector.extract_strided_slice %375 {offsets = [0, 32], sizes = [8, 32], strides = [1, 1]} : vector<8x128xf32> to vector<8x32xf32>
    %378 = vector.extract_strided_slice %375 {offsets = [0, 64], sizes = [8, 32], strides = [1, 1]} : vector<8x128xf32> to vector<8x32xf32>
    %379 = vector.extract_strided_slice %375 {offsets = [0, 96], sizes = [8, 32], strides = [1, 1]} : vector<8x128xf32> to vector<8x32xf32>
    %380 = arith.mulf %377, %323 : vector<8x32xf32>
    %381 = arith.mulf %376, %378 : vector<8x32xf32>
    %382 = arith.addf %380, %381 : vector<8x32xf32>
    %383 = math.tanh %382 : vector<8x32xf32>
    %384 = arith.mulf %379, %383 : vector<8x32xf32>
    %cst_73 = arith.constant dense<0.000000e+00> : vector<8x128xf32>
    %385 = tpu.matmul %382, %6, %cst_73 {dimension_numbers = #tpu.dot_dimension_numbers<[1], [0], [0], [1], [0, 0, 1, 1], [], []>} : vector<8x32xf32>, vector<32x128xf32>, vector<8x128xf32> -> vector<8x128xf32>
    %386 = arith.addf %385, %352 : vector<8x128xf32>
    %387 = math.tanh %386 : vector<8x128xf32>
    %388 = vector.broadcast %26 : vector<1x128xf32> to vector<8x128xf32>
    %389 = arith.mulf %387, %388 : vector<8x128xf32>
    %390 = vector.broadcast %31 : vector<1x128xf32> to vector<8x128xf32>
    %391 = arith.addf %389, %390 : vector<8x128xf32>
    %392 = vector.extract_strided_slice %391 {offsets = [0, 0], sizes = [8, 1], strides = [1, 1]} : vector<8x128xf32> to vector<8x1xf32>
    %393 = vector.extract_strided_slice %391 {offsets = [0, 1], sizes = [8, 1], strides = [1, 1]} : vector<8x128xf32> to vector<8x1xf32>
    %394 = vector.extract_strided_slice %391 {offsets = [0, 2], sizes = [8, 1], strides = [1, 1]} : vector<8x128xf32> to vector<8x1xf32>
    %395 = vector.extract_strided_slice %391 {offsets = [0, 3], sizes = [8, 1], strides = [1, 1]} : vector<8x128xf32> to vector<8x1xf32>
    %396 = arith.mulf %393, %339 : vector<8x1xf32>
    %397 = arith.mulf %392, %394 : vector<8x1xf32>
    %398 = arith.addf %396, %397 : vector<8x1xf32>
    %399 = math.tanh %398 : vector<8x1xf32>
    %400 = arith.mulf %395, %399 : vector<8x1xf32>
    %c6_i32 = arith.constant 6 : i32
    %401 = arith.index_cast %c6_i32 : i32 to index
    %c0_74 = arith.constant 0 : index
    %c0_75 = arith.constant 0 : index
    %402 = vector.load %arg11[%401, %c0_74, %c0_75] : memref<8x8x128xf32, #tpu.memory_space<vmem>>, vector<1x8x128xf32>
    %403 = vector.shape_cast %402 : vector<1x8x128xf32> to vector<8x128xf32>
    %cst_76 = arith.constant dense<0.000000e+00> : vector<8x128xf32>
    %404 = tpu.matmul %384, %4, %cst_76 {dimension_numbers = #tpu.dot_dimension_numbers<[1], [0], [0], [1], [0, 0, 1, 1], [], []>} : vector<8x32xf32>, vector<32x128xf32>, vector<8x128xf32> -> vector<8x128xf32>
    %405 = vector.broadcast %5 : vector<1x128xf32> to vector<8x128xf32>
    %406 = arith.addf %404, %405 : vector<8x128xf32>
    %407 = vector.broadcast %400 : vector<8x1xf32> to vector<8x128xf32>
    %408 = vector.broadcast %7 : vector<1x128xf32> to vector<8x128xf32>
    %409 = arith.mulf %407, %408 : vector<8x128xf32>
    %410 = vector.broadcast %8 : vector<1x128xf32> to vector<8x128xf32>
    %411 = arith.addf %409, %410 : vector<8x128xf32>
    %cst_77 = arith.constant dense<0.000000e+00> : vector<8x128xf32>
    %412 = tpu.matmul %368, %1, %cst_77 {dimension_numbers = #tpu.dot_dimension_numbers<[1], [0], [0], [1], [0, 0, 1, 1], [], []>} : vector<8x32xf32>, vector<32x128xf32>, vector<8x128xf32> -> vector<8x128xf32>
    %413 = arith.addf %403, %412 : vector<8x128xf32>
    %414 = math.tanh %413 : vector<8x128xf32>
    %415 = vector.broadcast %17 : vector<1x128xf32> to vector<8x128xf32>
    %416 = arith.mulf %414, %415 : vector<8x128xf32>
    %417 = vector.broadcast %20 : vector<1x128xf32> to vector<8x128xf32>
    %418 = arith.addf %416, %417 : vector<8x128xf32>
    %419 = vector.extract_strided_slice %418 {offsets = [0, 0], sizes = [8, 32], strides = [1, 1]} : vector<8x128xf32> to vector<8x32xf32>
    %420 = vector.extract_strided_slice %418 {offsets = [0, 32], sizes = [8, 32], strides = [1, 1]} : vector<8x128xf32> to vector<8x32xf32>
    %421 = vector.extract_strided_slice %418 {offsets = [0, 64], sizes = [8, 32], strides = [1, 1]} : vector<8x128xf32> to vector<8x32xf32>
    %422 = vector.extract_strided_slice %418 {offsets = [0, 96], sizes = [8, 32], strides = [1, 1]} : vector<8x128xf32> to vector<8x32xf32>
    %423 = arith.mulf %420, %366 : vector<8x32xf32>
    %424 = arith.mulf %419, %421 : vector<8x32xf32>
    %425 = arith.addf %423, %424 : vector<8x32xf32>
    %426 = math.tanh %425 : vector<8x32xf32>
    %427 = arith.mulf %422, %426 : vector<8x32xf32>
    %cst_78 = arith.constant dense<0.000000e+00> : vector<8x128xf32>
    %428 = tpu.matmul %425, %3, %cst_78 {dimension_numbers = #tpu.dot_dimension_numbers<[1], [0], [0], [1], [0, 0, 1, 1], [], []>} : vector<8x32xf32>, vector<32x128xf32>, vector<8x128xf32> -> vector<8x128xf32>
    %429 = arith.addf %428, %406 : vector<8x128xf32>
    %430 = math.tanh %429 : vector<8x128xf32>
    %431 = vector.broadcast %17 : vector<1x128xf32> to vector<8x128xf32>
    %432 = arith.mulf %430, %431 : vector<8x128xf32>
    %433 = vector.broadcast %20 : vector<1x128xf32> to vector<8x128xf32>
    %434 = arith.addf %432, %433 : vector<8x128xf32>
    %435 = vector.extract_strided_slice %434 {offsets = [0, 0], sizes = [8, 32], strides = [1, 1]} : vector<8x128xf32> to vector<8x32xf32>
    %436 = vector.extract_strided_slice %434 {offsets = [0, 32], sizes = [8, 32], strides = [1, 1]} : vector<8x128xf32> to vector<8x32xf32>
    %437 = vector.extract_strided_slice %434 {offsets = [0, 64], sizes = [8, 32], strides = [1, 1]} : vector<8x128xf32> to vector<8x32xf32>
    %438 = vector.extract_strided_slice %434 {offsets = [0, 96], sizes = [8, 32], strides = [1, 1]} : vector<8x128xf32> to vector<8x32xf32>
    %439 = arith.mulf %436, %382 : vector<8x32xf32>
    %440 = arith.mulf %435, %437 : vector<8x32xf32>
    %441 = arith.addf %439, %440 : vector<8x32xf32>
    %442 = math.tanh %441 : vector<8x32xf32>
    %443 = arith.mulf %438, %442 : vector<8x32xf32>
    %cst_79 = arith.constant dense<0.000000e+00> : vector<8x128xf32>
    %444 = tpu.matmul %441, %6, %cst_79 {dimension_numbers = #tpu.dot_dimension_numbers<[1], [0], [0], [1], [0, 0, 1, 1], [], []>} : vector<8x32xf32>, vector<32x128xf32>, vector<8x128xf32> -> vector<8x128xf32>
    %445 = arith.addf %444, %411 : vector<8x128xf32>
    %446 = math.tanh %445 : vector<8x128xf32>
    %447 = vector.broadcast %26 : vector<1x128xf32> to vector<8x128xf32>
    %448 = arith.mulf %446, %447 : vector<8x128xf32>
    %449 = vector.broadcast %31 : vector<1x128xf32> to vector<8x128xf32>
    %450 = arith.addf %448, %449 : vector<8x128xf32>
    %451 = vector.extract_strided_slice %450 {offsets = [0, 0], sizes = [8, 1], strides = [1, 1]} : vector<8x128xf32> to vector<8x1xf32>
    %452 = vector.extract_strided_slice %450 {offsets = [0, 1], sizes = [8, 1], strides = [1, 1]} : vector<8x128xf32> to vector<8x1xf32>
    %453 = vector.extract_strided_slice %450 {offsets = [0, 2], sizes = [8, 1], strides = [1, 1]} : vector<8x128xf32> to vector<8x1xf32>
    %454 = vector.extract_strided_slice %450 {offsets = [0, 3], sizes = [8, 1], strides = [1, 1]} : vector<8x128xf32> to vector<8x1xf32>
    %455 = arith.mulf %452, %398 : vector<8x1xf32>
    %456 = arith.mulf %451, %453 : vector<8x1xf32>
    %457 = arith.addf %455, %456 : vector<8x1xf32>
    %458 = math.tanh %457 : vector<8x1xf32>
    %459 = arith.mulf %454, %458 : vector<8x1xf32>
    %c7_i32 = arith.constant 7 : i32
    %460 = arith.index_cast %c7_i32 : i32 to index
    %c0_80 = arith.constant 0 : index
    %c0_81 = arith.constant 0 : index
    %461 = vector.load %arg11[%460, %c0_80, %c0_81] : memref<8x8x128xf32, #tpu.memory_space<vmem>>, vector<1x8x128xf32>
    %462 = vector.shape_cast %461 : vector<1x8x128xf32> to vector<8x128xf32>
    %cst_82 = arith.constant dense<0.000000e+00> : vector<8x128xf32>
    %463 = tpu.matmul %443, %4, %cst_82 {dimension_numbers = #tpu.dot_dimension_numbers<[1], [0], [0], [1], [0, 0, 1, 1], [], []>} : vector<8x32xf32>, vector<32x128xf32>, vector<8x128xf32> -> vector<8x128xf32>
    %464 = vector.broadcast %5 : vector<1x128xf32> to vector<8x128xf32>
    %465 = arith.addf %463, %464 : vector<8x128xf32>
    %466 = vector.broadcast %459 : vector<8x1xf32> to vector<8x128xf32>
    %467 = vector.broadcast %7 : vector<1x128xf32> to vector<8x128xf32>
    %468 = arith.mulf %466, %467 : vector<8x128xf32>
    %469 = vector.broadcast %8 : vector<1x128xf32> to vector<8x128xf32>
    %470 = arith.addf %468, %469 : vector<8x128xf32>
    %cst_83 = arith.constant dense<0.000000e+00> : vector<8x128xf32>
    %471 = tpu.matmul %427, %1, %cst_83 {dimension_numbers = #tpu.dot_dimension_numbers<[1], [0], [0], [1], [0, 0, 1, 1], [], []>} : vector<8x32xf32>, vector<32x128xf32>, vector<8x128xf32> -> vector<8x128xf32>
    %472 = arith.addf %462, %471 : vector<8x128xf32>
    %473 = math.tanh %472 : vector<8x128xf32>
    %474 = vector.broadcast %17 : vector<1x128xf32> to vector<8x128xf32>
    %475 = arith.mulf %473, %474 : vector<8x128xf32>
    %476 = vector.broadcast %20 : vector<1x128xf32> to vector<8x128xf32>
    %477 = arith.addf %475, %476 : vector<8x128xf32>
    %478 = vector.extract_strided_slice %477 {offsets = [0, 0], sizes = [8, 32], strides = [1, 1]} : vector<8x128xf32> to vector<8x32xf32>
    %479 = vector.extract_strided_slice %477 {offsets = [0, 32], sizes = [8, 32], strides = [1, 1]} : vector<8x128xf32> to vector<8x32xf32>
    %480 = vector.extract_strided_slice %477 {offsets = [0, 64], sizes = [8, 32], strides = [1, 1]} : vector<8x128xf32> to vector<8x32xf32>
    %481 = vector.extract_strided_slice %477 {offsets = [0, 96], sizes = [8, 32], strides = [1, 1]} : vector<8x128xf32> to vector<8x32xf32>
    %482 = arith.mulf %479, %425 : vector<8x32xf32>
    %483 = arith.mulf %478, %480 : vector<8x32xf32>
    %484 = arith.addf %482, %483 : vector<8x32xf32>
    %485 = math.tanh %484 : vector<8x32xf32>
    %486 = arith.mulf %481, %485 : vector<8x32xf32>
    %cst_84 = arith.constant dense<0.000000e+00> : vector<8x128xf32>
    %487 = tpu.matmul %484, %3, %cst_84 {dimension_numbers = #tpu.dot_dimension_numbers<[1], [0], [0], [1], [0, 0, 1, 1], [], []>} : vector<8x32xf32>, vector<32x128xf32>, vector<8x128xf32> -> vector<8x128xf32>
    %488 = arith.addf %487, %465 : vector<8x128xf32>
    %489 = math.tanh %488 : vector<8x128xf32>
    %490 = vector.broadcast %17 : vector<1x128xf32> to vector<8x128xf32>
    %491 = arith.mulf %489, %490 : vector<8x128xf32>
    %492 = vector.broadcast %20 : vector<1x128xf32> to vector<8x128xf32>
    %493 = arith.addf %491, %492 : vector<8x128xf32>
    %494 = vector.extract_strided_slice %493 {offsets = [0, 0], sizes = [8, 32], strides = [1, 1]} : vector<8x128xf32> to vector<8x32xf32>
    %495 = vector.extract_strided_slice %493 {offsets = [0, 32], sizes = [8, 32], strides = [1, 1]} : vector<8x128xf32> to vector<8x32xf32>
    %496 = vector.extract_strided_slice %493 {offsets = [0, 64], sizes = [8, 32], strides = [1, 1]} : vector<8x128xf32> to vector<8x32xf32>
    %497 = vector.extract_strided_slice %493 {offsets = [0, 96], sizes = [8, 32], strides = [1, 1]} : vector<8x128xf32> to vector<8x32xf32>
    %498 = arith.mulf %495, %441 : vector<8x32xf32>
    %499 = arith.mulf %494, %496 : vector<8x32xf32>
    %500 = arith.addf %498, %499 : vector<8x32xf32>
    %501 = math.tanh %500 : vector<8x32xf32>
    %502 = arith.mulf %497, %501 : vector<8x32xf32>
    %cst_85 = arith.constant dense<0.000000e+00> : vector<8x128xf32>
    %503 = tpu.matmul %500, %6, %cst_85 {dimension_numbers = #tpu.dot_dimension_numbers<[1], [0], [0], [1], [0, 0, 1, 1], [], []>} : vector<8x32xf32>, vector<32x128xf32>, vector<8x128xf32> -> vector<8x128xf32>
    %504 = arith.addf %503, %470 : vector<8x128xf32>
    %505 = math.tanh %504 : vector<8x128xf32>
    %506 = vector.broadcast %26 : vector<1x128xf32> to vector<8x128xf32>
    %507 = arith.mulf %505, %506 : vector<8x128xf32>
    %508 = vector.broadcast %31 : vector<1x128xf32> to vector<8x128xf32>
    %509 = arith.addf %507, %508 : vector<8x128xf32>
    %510 = vector.extract_strided_slice %509 {offsets = [0, 0], sizes = [8, 1], strides = [1, 1]} : vector<8x128xf32> to vector<8x1xf32>
    %511 = vector.extract_strided_slice %509 {offsets = [0, 1], sizes = [8, 1], strides = [1, 1]} : vector<8x128xf32> to vector<8x1xf32>
    %512 = vector.extract_strided_slice %509 {offsets = [0, 2], sizes = [8, 1], strides = [1, 1]} : vector<8x128xf32> to vector<8x1xf32>
    %513 = vector.extract_strided_slice %509 {offsets = [0, 3], sizes = [8, 1], strides = [1, 1]} : vector<8x128xf32> to vector<8x1xf32>
    %514 = arith.mulf %511, %457 : vector<8x1xf32>
    %515 = arith.mulf %510, %512 : vector<8x1xf32>
    %516 = arith.addf %514, %515 : vector<8x1xf32>
    %517 = math.tanh %516 : vector<8x1xf32>
    %518 = arith.mulf %513, %517 : vector<8x1xf32>
    %c8_i32 = arith.constant 8 : i32
    %cst_86 = arith.constant 0.000000e+00 : f32
    %519 = vector.broadcast %cst_86 : f32 to vector<8x4xf32>
    %520 = tpu.iota {dimensions = array<i32: 1>} : vector<1x4xi32>
    %c0_i32_87 = arith.constant 0 : i32
    %521 = vector.broadcast %516 : vector<8x1xf32> to vector<8x128xf32>
    %522 = vector.broadcast %0 : vector<1x128xf32> to vector<8x128xf32>
    %523 = arith.mulf %521, %522 : vector<8x128xf32>
    %524 = vector.broadcast %2 : vector<1x128xf32> to vector<8x128xf32>
    %525 = arith.addf %523, %524 : vector<8x128xf32>
    %cst_88 = arith.constant dense<0.000000e+00> : vector<8x128xf32>
    %526 = tpu.matmul %502, %4, %cst_88 {dimension_numbers = #tpu.dot_dimension_numbers<[1], [0], [0], [1], [0, 0, 1, 1], [], []>} : vector<8x32xf32>, vector<32x128xf32>, vector<8x128xf32> -> vector<8x128xf32>
    %527 = vector.broadcast %5 : vector<1x128xf32> to vector<8x128xf32>
    %528 = arith.addf %526, %527 : vector<8x128xf32>
    %529 = vector.broadcast %518 : vector<8x1xf32> to vector<8x128xf32>
    %530 = vector.broadcast %7 : vector<1x128xf32> to vector<8x128xf32>
    %531 = arith.mulf %529, %530 : vector<8x128xf32>
    %532 = vector.broadcast %8 : vector<1x128xf32> to vector<8x128xf32>
    %533 = arith.addf %531, %532 : vector<8x128xf32>
    %cst_89 = arith.constant dense<0.000000e+00> : vector<8x128xf32>
    %534 = tpu.matmul %486, %1, %cst_89 {dimension_numbers = #tpu.dot_dimension_numbers<[1], [0], [0], [1], [0, 0, 1, 1], [], []>} : vector<8x32xf32>, vector<32x128xf32>, vector<8x128xf32> -> vector<8x128xf32>
    %535 = arith.addf %525, %534 : vector<8x128xf32>
    %536 = math.tanh %535 : vector<8x128xf32>
    %537 = vector.broadcast %17 : vector<1x128xf32> to vector<8x128xf32>
    %538 = arith.mulf %536, %537 : vector<8x128xf32>
    %539 = vector.broadcast %20 : vector<1x128xf32> to vector<8x128xf32>
    %540 = arith.addf %538, %539 : vector<8x128xf32>
    %541 = vector.extract_strided_slice %540 {offsets = [0, 0], sizes = [8, 32], strides = [1, 1]} : vector<8x128xf32> to vector<8x32xf32>
    %542 = vector.extract_strided_slice %540 {offsets = [0, 32], sizes = [8, 32], strides = [1, 1]} : vector<8x128xf32> to vector<8x32xf32>
    %543 = vector.extract_strided_slice %540 {offsets = [0, 64], sizes = [8, 32], strides = [1, 1]} : vector<8x128xf32> to vector<8x32xf32>
    %544 = vector.extract_strided_slice %540 {offsets = [0, 96], sizes = [8, 32], strides = [1, 1]} : vector<8x128xf32> to vector<8x32xf32>
    %545 = arith.mulf %542, %484 : vector<8x32xf32>
    %546 = arith.mulf %541, %543 : vector<8x32xf32>
    %547 = arith.addf %545, %546 : vector<8x32xf32>
    %548 = math.tanh %547 : vector<8x32xf32>
    %549 = arith.mulf %544, %548 : vector<8x32xf32>
    %cst_90 = arith.constant dense<0.000000e+00> : vector<8x128xf32>
    %550 = tpu.matmul %547, %3, %cst_90 {dimension_numbers = #tpu.dot_dimension_numbers<[1], [0], [0], [1], [0, 0, 1, 1], [], []>} : vector<8x32xf32>, vector<32x128xf32>, vector<8x128xf32> -> vector<8x128xf32>
    %551 = arith.addf %550, %528 : vector<8x128xf32>
    %552 = math.tanh %551 : vector<8x128xf32>
    %553 = vector.broadcast %17 : vector<1x128xf32> to vector<8x128xf32>
    %554 = arith.mulf %552, %553 : vector<8x128xf32>
    %555 = vector.broadcast %20 : vector<1x128xf32> to vector<8x128xf32>
    %556 = arith.addf %554, %555 : vector<8x128xf32>
    %557 = vector.extract_strided_slice %556 {offsets = [0, 0], sizes = [8, 32], strides = [1, 1]} : vector<8x128xf32> to vector<8x32xf32>
    %558 = vector.extract_strided_slice %556 {offsets = [0, 32], sizes = [8, 32], strides = [1, 1]} : vector<8x128xf32> to vector<8x32xf32>
    %559 = vector.extract_strided_slice %556 {offsets = [0, 64], sizes = [8, 32], strides = [1, 1]} : vector<8x128xf32> to vector<8x32xf32>
    %560 = vector.extract_strided_slice %556 {offsets = [0, 96], sizes = [8, 32], strides = [1, 1]} : vector<8x128xf32> to vector<8x32xf32>
    %561 = arith.mulf %558, %500 : vector<8x32xf32>
    %562 = arith.mulf %557, %559 : vector<8x32xf32>
    %563 = arith.addf %561, %562 : vector<8x32xf32>
    %564 = math.tanh %563 : vector<8x32xf32>
    %565 = arith.mulf %560, %564 : vector<8x32xf32>
    %cst_91 = arith.constant dense<0.000000e+00> : vector<8x128xf32>
    %566 = tpu.matmul %563, %6, %cst_91 {dimension_numbers = #tpu.dot_dimension_numbers<[1], [0], [0], [1], [0, 0, 1, 1], [], []>} : vector<8x32xf32>, vector<32x128xf32>, vector<8x128xf32> -> vector<8x128xf32>
    %567 = arith.addf %566, %533 : vector<8x128xf32>
    %568 = math.tanh %567 : vector<8x128xf32>
    %569 = vector.broadcast %26 : vector<1x128xf32> to vector<8x128xf32>
    %570 = arith.mulf %568, %569 : vector<8x128xf32>
    %571 = vector.broadcast %31 : vector<1x128xf32> to vector<8x128xf32>
    %572 = arith.addf %570, %571 : vector<8x128xf32>
    %573 = vector.extract_strided_slice %572 {offsets = [0, 0], sizes = [8, 1], strides = [1, 1]} : vector<8x128xf32> to vector<8x1xf32>
    %574 = vector.extract_strided_slice %572 {offsets = [0, 1], sizes = [8, 1], strides = [1, 1]} : vector<8x128xf32> to vector<8x1xf32>
    %575 = vector.extract_strided_slice %572 {offsets = [0, 2], sizes = [8, 1], strides = [1, 1]} : vector<8x128xf32> to vector<8x1xf32>
    %576 = vector.extract_strided_slice %572 {offsets = [0, 3], sizes = [8, 1], strides = [1, 1]} : vector<8x128xf32> to vector<8x1xf32>
    %577 = arith.mulf %574, %516 : vector<8x1xf32>
    %578 = arith.mulf %573, %575 : vector<8x1xf32>
    %579 = arith.addf %577, %578 : vector<8x1xf32>
    %580 = math.tanh %579 : vector<8x1xf32>
    %581 = arith.mulf %576, %580 : vector<8x1xf32>
    %582 = vector.broadcast %c0_i32_87 : i32 to vector<1x4xi32>
    %583 = arith.cmpi eq, %520, %582 : vector<1x4xi32>
    %cst_92 = arith.constant 0.000000e+00 : f32
    %584 = vector.shape_cast %583 : vector<1x4xi1> to vector<1x4xi1>
    %585 = vector.broadcast %584 : vector<1x4xi1> to vector<8x4xi1>
    %586 = vector.shape_cast %579 : vector<8x1xf32> to vector<8x1xf32>
    %587 = vector.broadcast %586 : vector<8x1xf32> to vector<8x4xf32>
    %588 = vector.broadcast %cst_92 : f32 to vector<8x4xf32>
    %589 = arith.select %585, %587, %588 : vector<8x4xi1>, vector<8x4xf32>
    %590 = arith.addf %519, %589 : vector<8x4xf32>
    %c1_i32_93 = arith.constant 1 : i32
    %591 = vector.broadcast %579 : vector<8x1xf32> to vector<8x128xf32>
    %592 = vector.broadcast %0 : vector<1x128xf32> to vector<8x128xf32>
    %593 = arith.mulf %591, %592 : vector<8x128xf32>
    %594 = vector.broadcast %2 : vector<1x128xf32> to vector<8x128xf32>
    %595 = arith.addf %593, %594 : vector<8x128xf32>
    %cst_94 = arith.constant dense<0.000000e+00> : vector<8x128xf32>
    %596 = tpu.matmul %565, %4, %cst_94 {dimension_numbers = #tpu.dot_dimension_numbers<[1], [0], [0], [1], [0, 0, 1, 1], [], []>} : vector<8x32xf32>, vector<32x128xf32>, vector<8x128xf32> -> vector<8x128xf32>
    %597 = vector.broadcast %5 : vector<1x128xf32> to vector<8x128xf32>
    %598 = arith.addf %596, %597 : vector<8x128xf32>
    %599 = vector.broadcast %581 : vector<8x1xf32> to vector<8x128xf32>
    %600 = vector.broadcast %7 : vector<1x128xf32> to vector<8x128xf32>
    %601 = arith.mulf %599, %600 : vector<8x128xf32>
    %602 = vector.broadcast %8 : vector<1x128xf32> to vector<8x128xf32>
    %603 = arith.addf %601, %602 : vector<8x128xf32>
    %cst_95 = arith.constant dense<0.000000e+00> : vector<8x128xf32>
    %604 = tpu.matmul %549, %1, %cst_95 {dimension_numbers = #tpu.dot_dimension_numbers<[1], [0], [0], [1], [0, 0, 1, 1], [], []>} : vector<8x32xf32>, vector<32x128xf32>, vector<8x128xf32> -> vector<8x128xf32>
    %605 = arith.addf %595, %604 : vector<8x128xf32>
    %606 = math.tanh %605 : vector<8x128xf32>
    %607 = vector.broadcast %17 : vector<1x128xf32> to vector<8x128xf32>
    %608 = arith.mulf %606, %607 : vector<8x128xf32>
    %609 = vector.broadcast %20 : vector<1x128xf32> to vector<8x128xf32>
    %610 = arith.addf %608, %609 : vector<8x128xf32>
    %611 = vector.extract_strided_slice %610 {offsets = [0, 0], sizes = [8, 32], strides = [1, 1]} : vector<8x128xf32> to vector<8x32xf32>
    %612 = vector.extract_strided_slice %610 {offsets = [0, 32], sizes = [8, 32], strides = [1, 1]} : vector<8x128xf32> to vector<8x32xf32>
    %613 = vector.extract_strided_slice %610 {offsets = [0, 64], sizes = [8, 32], strides = [1, 1]} : vector<8x128xf32> to vector<8x32xf32>
    %614 = vector.extract_strided_slice %610 {offsets = [0, 96], sizes = [8, 32], strides = [1, 1]} : vector<8x128xf32> to vector<8x32xf32>
    %615 = arith.mulf %612, %547 : vector<8x32xf32>
    %616 = arith.mulf %611, %613 : vector<8x32xf32>
    %617 = arith.addf %615, %616 : vector<8x32xf32>
    %618 = math.tanh %617 : vector<8x32xf32>
    %619 = arith.mulf %614, %618 : vector<8x32xf32>
    %cst_96 = arith.constant dense<0.000000e+00> : vector<8x128xf32>
    %620 = tpu.matmul %617, %3, %cst_96 {dimension_numbers = #tpu.dot_dimension_numbers<[1], [0], [0], [1], [0, 0, 1, 1], [], []>} : vector<8x32xf32>, vector<32x128xf32>, vector<8x128xf32> -> vector<8x128xf32>
    %621 = arith.addf %620, %598 : vector<8x128xf32>
    %622 = math.tanh %621 : vector<8x128xf32>
    %623 = vector.broadcast %17 : vector<1x128xf32> to vector<8x128xf32>
    %624 = arith.mulf %622, %623 : vector<8x128xf32>
    %625 = vector.broadcast %20 : vector<1x128xf32> to vector<8x128xf32>
    %626 = arith.addf %624, %625 : vector<8x128xf32>
    %627 = vector.extract_strided_slice %626 {offsets = [0, 0], sizes = [8, 32], strides = [1, 1]} : vector<8x128xf32> to vector<8x32xf32>
    %628 = vector.extract_strided_slice %626 {offsets = [0, 32], sizes = [8, 32], strides = [1, 1]} : vector<8x128xf32> to vector<8x32xf32>
    %629 = vector.extract_strided_slice %626 {offsets = [0, 64], sizes = [8, 32], strides = [1, 1]} : vector<8x128xf32> to vector<8x32xf32>
    %630 = vector.extract_strided_slice %626 {offsets = [0, 96], sizes = [8, 32], strides = [1, 1]} : vector<8x128xf32> to vector<8x32xf32>
    %631 = arith.mulf %628, %563 : vector<8x32xf32>
    %632 = arith.mulf %627, %629 : vector<8x32xf32>
    %633 = arith.addf %631, %632 : vector<8x32xf32>
    %634 = math.tanh %633 : vector<8x32xf32>
    %635 = arith.mulf %630, %634 : vector<8x32xf32>
    %cst_97 = arith.constant dense<0.000000e+00> : vector<8x128xf32>
    %636 = tpu.matmul %633, %6, %cst_97 {dimension_numbers = #tpu.dot_dimension_numbers<[1], [0], [0], [1], [0, 0, 1, 1], [], []>} : vector<8x32xf32>, vector<32x128xf32>, vector<8x128xf32> -> vector<8x128xf32>
    %637 = arith.addf %636, %603 : vector<8x128xf32>
    %638 = math.tanh %637 : vector<8x128xf32>
    %639 = vector.broadcast %26 : vector<1x128xf32> to vector<8x128xf32>
    %640 = arith.mulf %638, %639 : vector<8x128xf32>
    %641 = vector.broadcast %31 : vector<1x128xf32> to vector<8x128xf32>
    %642 = arith.addf %640, %641 : vector<8x128xf32>
    %643 = vector.extract_strided_slice %642 {offsets = [0, 0], sizes = [8, 1], strides = [1, 1]} : vector<8x128xf32> to vector<8x1xf32>
    %644 = vector.extract_strided_slice %642 {offsets = [0, 1], sizes = [8, 1], strides = [1, 1]} : vector<8x128xf32> to vector<8x1xf32>
    %645 = vector.extract_strided_slice %642 {offsets = [0, 2], sizes = [8, 1], strides = [1, 1]} : vector<8x128xf32> to vector<8x1xf32>
    %646 = vector.extract_strided_slice %642 {offsets = [0, 3], sizes = [8, 1], strides = [1, 1]} : vector<8x128xf32> to vector<8x1xf32>
    %647 = arith.mulf %644, %579 : vector<8x1xf32>
    %648 = arith.mulf %643, %645 : vector<8x1xf32>
    %649 = arith.addf %647, %648 : vector<8x1xf32>
    %650 = math.tanh %649 : vector<8x1xf32>
    %651 = arith.mulf %646, %650 : vector<8x1xf32>
    %652 = vector.broadcast %c1_i32_93 : i32 to vector<1x4xi32>
    %653 = arith.cmpi eq, %520, %652 : vector<1x4xi32>
    %cst_98 = arith.constant 0.000000e+00 : f32
    %654 = vector.shape_cast %653 : vector<1x4xi1> to vector<1x4xi1>
    %655 = vector.broadcast %654 : vector<1x4xi1> to vector<8x4xi1>
    %656 = vector.shape_cast %649 : vector<8x1xf32> to vector<8x1xf32>
    %657 = vector.broadcast %656 : vector<8x1xf32> to vector<8x4xf32>
    %658 = vector.broadcast %cst_98 : f32 to vector<8x4xf32>
    %659 = arith.select %655, %657, %658 : vector<8x4xi1>, vector<8x4xf32>
    %660 = arith.addf %590, %659 : vector<8x4xf32>
    %c2_i32_99 = arith.constant 2 : i32
    %661 = vector.broadcast %649 : vector<8x1xf32> to vector<8x128xf32>
    %662 = vector.broadcast %0 : vector<1x128xf32> to vector<8x128xf32>
    %663 = arith.mulf %661, %662 : vector<8x128xf32>
    %664 = vector.broadcast %2 : vector<1x128xf32> to vector<8x128xf32>
    %665 = arith.addf %663, %664 : vector<8x128xf32>
    %cst_100 = arith.constant dense<0.000000e+00> : vector<8x128xf32>
    %666 = tpu.matmul %635, %4, %cst_100 {dimension_numbers = #tpu.dot_dimension_numbers<[1], [0], [0], [1], [0, 0, 1, 1], [], []>} : vector<8x32xf32>, vector<32x128xf32>, vector<8x128xf32> -> vector<8x128xf32>
    %667 = vector.broadcast %5 : vector<1x128xf32> to vector<8x128xf32>
    %668 = arith.addf %666, %667 : vector<8x128xf32>
    %669 = vector.broadcast %651 : vector<8x1xf32> to vector<8x128xf32>
    %670 = vector.broadcast %7 : vector<1x128xf32> to vector<8x128xf32>
    %671 = arith.mulf %669, %670 : vector<8x128xf32>
    %672 = vector.broadcast %8 : vector<1x128xf32> to vector<8x128xf32>
    %673 = arith.addf %671, %672 : vector<8x128xf32>
    %cst_101 = arith.constant dense<0.000000e+00> : vector<8x128xf32>
    %674 = tpu.matmul %619, %1, %cst_101 {dimension_numbers = #tpu.dot_dimension_numbers<[1], [0], [0], [1], [0, 0, 1, 1], [], []>} : vector<8x32xf32>, vector<32x128xf32>, vector<8x128xf32> -> vector<8x128xf32>
    %675 = arith.addf %665, %674 : vector<8x128xf32>
    %676 = math.tanh %675 : vector<8x128xf32>
    %677 = vector.broadcast %17 : vector<1x128xf32> to vector<8x128xf32>
    %678 = arith.mulf %676, %677 : vector<8x128xf32>
    %679 = vector.broadcast %20 : vector<1x128xf32> to vector<8x128xf32>
    %680 = arith.addf %678, %679 : vector<8x128xf32>
    %681 = vector.extract_strided_slice %680 {offsets = [0, 0], sizes = [8, 32], strides = [1, 1]} : vector<8x128xf32> to vector<8x32xf32>
    %682 = vector.extract_strided_slice %680 {offsets = [0, 32], sizes = [8, 32], strides = [1, 1]} : vector<8x128xf32> to vector<8x32xf32>
    %683 = vector.extract_strided_slice %680 {offsets = [0, 64], sizes = [8, 32], strides = [1, 1]} : vector<8x128xf32> to vector<8x32xf32>
    %684 = vector.extract_strided_slice %680 {offsets = [0, 96], sizes = [8, 32], strides = [1, 1]} : vector<8x128xf32> to vector<8x32xf32>
    %685 = arith.mulf %682, %617 : vector<8x32xf32>
    %686 = arith.mulf %681, %683 : vector<8x32xf32>
    %687 = arith.addf %685, %686 : vector<8x32xf32>
    %688 = math.tanh %687 : vector<8x32xf32>
    %689 = arith.mulf %684, %688 : vector<8x32xf32>
    %cst_102 = arith.constant dense<0.000000e+00> : vector<8x128xf32>
    %690 = tpu.matmul %687, %3, %cst_102 {dimension_numbers = #tpu.dot_dimension_numbers<[1], [0], [0], [1], [0, 0, 1, 1], [], []>} : vector<8x32xf32>, vector<32x128xf32>, vector<8x128xf32> -> vector<8x128xf32>
    %691 = arith.addf %690, %668 : vector<8x128xf32>
    %692 = math.tanh %691 : vector<8x128xf32>
    %693 = vector.broadcast %17 : vector<1x128xf32> to vector<8x128xf32>
    %694 = arith.mulf %692, %693 : vector<8x128xf32>
    %695 = vector.broadcast %20 : vector<1x128xf32> to vector<8x128xf32>
    %696 = arith.addf %694, %695 : vector<8x128xf32>
    %697 = vector.extract_strided_slice %696 {offsets = [0, 0], sizes = [8, 32], strides = [1, 1]} : vector<8x128xf32> to vector<8x32xf32>
    %698 = vector.extract_strided_slice %696 {offsets = [0, 32], sizes = [8, 32], strides = [1, 1]} : vector<8x128xf32> to vector<8x32xf32>
    %699 = vector.extract_strided_slice %696 {offsets = [0, 64], sizes = [8, 32], strides = [1, 1]} : vector<8x128xf32> to vector<8x32xf32>
    %700 = vector.extract_strided_slice %696 {offsets = [0, 96], sizes = [8, 32], strides = [1, 1]} : vector<8x128xf32> to vector<8x32xf32>
    %701 = arith.mulf %698, %633 : vector<8x32xf32>
    %702 = arith.mulf %697, %699 : vector<8x32xf32>
    %703 = arith.addf %701, %702 : vector<8x32xf32>
    %704 = math.tanh %703 : vector<8x32xf32>
    %705 = arith.mulf %700, %704 : vector<8x32xf32>
    %cst_103 = arith.constant dense<0.000000e+00> : vector<8x128xf32>
    %706 = tpu.matmul %703, %6, %cst_103 {dimension_numbers = #tpu.dot_dimension_numbers<[1], [0], [0], [1], [0, 0, 1, 1], [], []>} : vector<8x32xf32>, vector<32x128xf32>, vector<8x128xf32> -> vector<8x128xf32>
    %707 = arith.addf %706, %673 : vector<8x128xf32>
    %708 = math.tanh %707 : vector<8x128xf32>
    %709 = vector.broadcast %26 : vector<1x128xf32> to vector<8x128xf32>
    %710 = arith.mulf %708, %709 : vector<8x128xf32>
    %711 = vector.broadcast %31 : vector<1x128xf32> to vector<8x128xf32>
    %712 = arith.addf %710, %711 : vector<8x128xf32>
    %713 = vector.extract_strided_slice %712 {offsets = [0, 0], sizes = [8, 1], strides = [1, 1]} : vector<8x128xf32> to vector<8x1xf32>
    %714 = vector.extract_strided_slice %712 {offsets = [0, 1], sizes = [8, 1], strides = [1, 1]} : vector<8x128xf32> to vector<8x1xf32>
    %715 = vector.extract_strided_slice %712 {offsets = [0, 2], sizes = [8, 1], strides = [1, 1]} : vector<8x128xf32> to vector<8x1xf32>
    %716 = vector.extract_strided_slice %712 {offsets = [0, 3], sizes = [8, 1], strides = [1, 1]} : vector<8x128xf32> to vector<8x1xf32>
    %717 = arith.mulf %714, %649 : vector<8x1xf32>
    %718 = arith.mulf %713, %715 : vector<8x1xf32>
    %719 = arith.addf %717, %718 : vector<8x1xf32>
    %720 = math.tanh %719 : vector<8x1xf32>
    %721 = arith.mulf %716, %720 : vector<8x1xf32>
    %722 = vector.broadcast %c2_i32_99 : i32 to vector<1x4xi32>
    %723 = arith.cmpi eq, %520, %722 : vector<1x4xi32>
    %cst_104 = arith.constant 0.000000e+00 : f32
    %724 = vector.shape_cast %723 : vector<1x4xi1> to vector<1x4xi1>
    %725 = vector.broadcast %724 : vector<1x4xi1> to vector<8x4xi1>
    %726 = vector.shape_cast %719 : vector<8x1xf32> to vector<8x1xf32>
    %727 = vector.broadcast %726 : vector<8x1xf32> to vector<8x4xf32>
    %728 = vector.broadcast %cst_104 : f32 to vector<8x4xf32>
    %729 = arith.select %725, %727, %728 : vector<8x4xi1>, vector<8x4xf32>
    %730 = arith.addf %660, %729 : vector<8x4xf32>
    %c3_i32_105 = arith.constant 3 : i32
    %731 = vector.broadcast %719 : vector<8x1xf32> to vector<8x128xf32>
    %732 = vector.broadcast %0 : vector<1x128xf32> to vector<8x128xf32>
    %733 = arith.mulf %731, %732 : vector<8x128xf32>
    %734 = vector.broadcast %2 : vector<1x128xf32> to vector<8x128xf32>
    %735 = arith.addf %733, %734 : vector<8x128xf32>
    %cst_106 = arith.constant dense<0.000000e+00> : vector<8x128xf32>
    %736 = tpu.matmul %705, %4, %cst_106 {dimension_numbers = #tpu.dot_dimension_numbers<[1], [0], [0], [1], [0, 0, 1, 1], [], []>} : vector<8x32xf32>, vector<32x128xf32>, vector<8x128xf32> -> vector<8x128xf32>
    %737 = vector.broadcast %5 : vector<1x128xf32> to vector<8x128xf32>
    %738 = arith.addf %736, %737 : vector<8x128xf32>
    %739 = vector.broadcast %721 : vector<8x1xf32> to vector<8x128xf32>
    %740 = vector.broadcast %7 : vector<1x128xf32> to vector<8x128xf32>
    %741 = arith.mulf %739, %740 : vector<8x128xf32>
    %742 = vector.broadcast %8 : vector<1x128xf32> to vector<8x128xf32>
    %743 = arith.addf %741, %742 : vector<8x128xf32>
    %cst_107 = arith.constant dense<0.000000e+00> : vector<8x128xf32>
    %744 = tpu.matmul %689, %1, %cst_107 {dimension_numbers = #tpu.dot_dimension_numbers<[1], [0], [0], [1], [0, 0, 1, 1], [], []>} : vector<8x32xf32>, vector<32x128xf32>, vector<8x128xf32> -> vector<8x128xf32>
    %745 = arith.addf %735, %744 : vector<8x128xf32>
    %746 = math.tanh %745 : vector<8x128xf32>
    %747 = vector.broadcast %17 : vector<1x128xf32> to vector<8x128xf32>
    %748 = arith.mulf %746, %747 : vector<8x128xf32>
    %749 = vector.broadcast %20 : vector<1x128xf32> to vector<8x128xf32>
    %750 = arith.addf %748, %749 : vector<8x128xf32>
    %751 = vector.extract_strided_slice %750 {offsets = [0, 0], sizes = [8, 32], strides = [1, 1]} : vector<8x128xf32> to vector<8x32xf32>
    %752 = vector.extract_strided_slice %750 {offsets = [0, 32], sizes = [8, 32], strides = [1, 1]} : vector<8x128xf32> to vector<8x32xf32>
    %753 = vector.extract_strided_slice %750 {offsets = [0, 64], sizes = [8, 32], strides = [1, 1]} : vector<8x128xf32> to vector<8x32xf32>
    %754 = vector.extract_strided_slice %750 {offsets = [0, 96], sizes = [8, 32], strides = [1, 1]} : vector<8x128xf32> to vector<8x32xf32>
    %755 = arith.mulf %752, %687 : vector<8x32xf32>
    %756 = arith.mulf %751, %753 : vector<8x32xf32>
    %757 = arith.addf %755, %756 : vector<8x32xf32>
    %758 = math.tanh %757 : vector<8x32xf32>
    %759 = arith.mulf %754, %758 : vector<8x32xf32>
    %cst_108 = arith.constant dense<0.000000e+00> : vector<8x128xf32>
    %760 = tpu.matmul %757, %3, %cst_108 {dimension_numbers = #tpu.dot_dimension_numbers<[1], [0], [0], [1], [0, 0, 1, 1], [], []>} : vector<8x32xf32>, vector<32x128xf32>, vector<8x128xf32> -> vector<8x128xf32>
    %761 = arith.addf %760, %738 : vector<8x128xf32>
    %762 = math.tanh %761 : vector<8x128xf32>
    %763 = vector.broadcast %17 : vector<1x128xf32> to vector<8x128xf32>
    %764 = arith.mulf %762, %763 : vector<8x128xf32>
    %765 = vector.broadcast %20 : vector<1x128xf32> to vector<8x128xf32>
    %766 = arith.addf %764, %765 : vector<8x128xf32>
    %767 = vector.extract_strided_slice %766 {offsets = [0, 0], sizes = [8, 32], strides = [1, 1]} : vector<8x128xf32> to vector<8x32xf32>
    %768 = vector.extract_strided_slice %766 {offsets = [0, 32], sizes = [8, 32], strides = [1, 1]} : vector<8x128xf32> to vector<8x32xf32>
    %769 = vector.extract_strided_slice %766 {offsets = [0, 64], sizes = [8, 32], strides = [1, 1]} : vector<8x128xf32> to vector<8x32xf32>
    %770 = vector.extract_strided_slice %766 {offsets = [0, 96], sizes = [8, 32], strides = [1, 1]} : vector<8x128xf32> to vector<8x32xf32>
    %771 = arith.mulf %768, %703 : vector<8x32xf32>
    %772 = arith.mulf %767, %769 : vector<8x32xf32>
    %773 = arith.addf %771, %772 : vector<8x32xf32>
    %774 = math.tanh %773 : vector<8x32xf32>
    %775 = arith.mulf %770, %774 : vector<8x32xf32>
    %cst_109 = arith.constant dense<0.000000e+00> : vector<8x128xf32>
    %776 = tpu.matmul %773, %6, %cst_109 {dimension_numbers = #tpu.dot_dimension_numbers<[1], [0], [0], [1], [0, 0, 1, 1], [], []>} : vector<8x32xf32>, vector<32x128xf32>, vector<8x128xf32> -> vector<8x128xf32>
    %777 = arith.addf %776, %743 : vector<8x128xf32>
    %778 = math.tanh %777 : vector<8x128xf32>
    %779 = vector.broadcast %26 : vector<1x128xf32> to vector<8x128xf32>
    %780 = arith.mulf %778, %779 : vector<8x128xf32>
    %781 = vector.broadcast %31 : vector<1x128xf32> to vector<8x128xf32>
    %782 = arith.addf %780, %781 : vector<8x128xf32>
    %783 = vector.extract_strided_slice %782 {offsets = [0, 0], sizes = [8, 1], strides = [1, 1]} : vector<8x128xf32> to vector<8x1xf32>
    %784 = vector.extract_strided_slice %782 {offsets = [0, 1], sizes = [8, 1], strides = [1, 1]} : vector<8x128xf32> to vector<8x1xf32>
    %785 = vector.extract_strided_slice %782 {offsets = [0, 2], sizes = [8, 1], strides = [1, 1]} : vector<8x128xf32> to vector<8x1xf32>
    %786 = vector.extract_strided_slice %782 {offsets = [0, 3], sizes = [8, 1], strides = [1, 1]} : vector<8x128xf32> to vector<8x1xf32>
    %787 = arith.mulf %784, %719 : vector<8x1xf32>
    %788 = arith.mulf %783, %785 : vector<8x1xf32>
    %789 = arith.addf %787, %788 : vector<8x1xf32>
    %790 = math.tanh %789 : vector<8x1xf32>
    %791 = arith.mulf %786, %790 : vector<8x1xf32>
    %792 = vector.broadcast %c3_i32_105 : i32 to vector<1x4xi32>
    %793 = arith.cmpi eq, %520, %792 : vector<1x4xi32>
    %cst_110 = arith.constant 0.000000e+00 : f32
    %794 = vector.shape_cast %793 : vector<1x4xi1> to vector<1x4xi1>
    %795 = vector.broadcast %794 : vector<1x4xi1> to vector<8x4xi1>
    %796 = vector.shape_cast %789 : vector<8x1xf32> to vector<8x1xf32>
    %797 = vector.broadcast %796 : vector<8x1xf32> to vector<8x4xf32>
    %798 = vector.broadcast %cst_110 : f32 to vector<8x4xf32>
    %799 = arith.select %795, %797, %798 : vector<8x4xi1>, vector<8x4xf32>
    %800 = arith.addf %730, %799 : vector<8x4xf32>
    %c4_i32_111 = arith.constant 4 : i32
    %c0_112 = arith.constant 0 : index
    %c0_113 = arith.constant 0 : index
    %801 = vector.load %arg10[%c0_112, %c0_113] : memref<8x4xf32, #tpu.memory_space<vmem>>, vector<8x4xf32>
    tpu.vector_store %arg10[%c0_112, %c0_113], %800 {strides = array<i32>} : memref<8x4xf32, #tpu.memory_space<vmem>>, vector<8x4xf32>,
    return
  }
}

</mosaic_0001>

<bundles_post_ra>
// kernel: tpu_custom_call.1
= control target key start
LH: loop header
LB: loop body
LE: loop exit
PB: predicated region body
PF: predicated region fallthrough
CT: control target
= control target key end

     0   :  { %15 = vsyncpa [#allocation4], 0  ;;  %s7140_s0 = inlined_call_operand.vmem [shape: f32[8,8,1], index: 0, kind: input, shape index: {}]   ;;  %s7141_s1 = inlined_call_operand.vmem [shape: f32[1,128], index: 1, kind: input, shape index: {}]   ;;  %s7142_s2 = inlined_call_operand.vmem [shape: f32[32,128], index: 2, kind: input, shape index: {}]   ;;  %s7143_s3 = inlined_call_operand.vmem [shape: f32[1,128], index: 3, kind: input, shape index: {}]   ;;  %s7144_s4 = inlined_call_operand.vmem [shape: f32[32,128], index: 4, kind: input, shape index: {}]   ;;  %s7145_s5 = inlined_call_operand.hbm [shape: f32[32,128], index: 5, kind: input, shape index: {}]   ;;  %s7146_s6 = inlined_call_operand.hbm [shape: f32[1,128], index: 6, kind: input, shape index: {}]   ;;  %s7147_s7 = inlined_call_operand.vmem [shape: f32[32,128], index: 7, kind: input, shape index: {}]   ;;  %s7148_s8 = inlined_call_operand.vmem [shape: f32[1,128], index: 8, kind: input, shape index: {}]   ;;  %s7149_s9 = inlined_call_operand.vmem [shape: f32[1,128], index: 9, kind: input, shape index: {}]   ;;  %s7150_s10 = inlined_call_operand.vmem [shape: f32[8,4], index: 10, kind: output, shape index: {}]  }
   0x1   :  { %16 = vsyncpa [#allocation6], 0  ;;  %s6021_s13 = smov [#allocation3]   ;;  %s5973_s17 = scalar_lea.hbm %s7145_s5, 512 }
   0x2   :  { %s32_s14 = sshll.u32 %s6021_s13, 4  ;;  %p5974_p0 = scmp.ne.s32.totalorder %s7145_s5, %s5973_s17  ;;  %s33_s14 = int_to_ptr.vmem [resolvable:$true] %s32_s14 }
   0x3   :  { %p5977_p1 = scmp.lt.u32.totalorder %s5973_s17, %s7145_s5 }
   0x5   :  { %p5979_p2 = pnand %p5977_p1, %p5974_p0 }
   0x7   :  { %5982 = shalt.err (!%p5979_p2)
}
   0x8   :  { %s5983_s22 = scalar_lea.vmem %s33_s14, 512  ;;  %p5988_p4 = scmp.lt.s32.totalorder %s33_s14, %s33_s14 }
   0x9   :  { %p5984_p3 = scmp.ne.s32.totalorder %s33_s14, %s5983_s22  ;;  %p5989_p5 = scmp.lt.s32.totalorder %s5983_s22, %s5983_s22 }
   0xb   :  { %p5990_p6 = por %p5989_p5, %p5988_p4 }
   0xd   :  { %p5991_p7 = pnand %p5990_p6, %p5984_p3 }
   0xf   :  { %5994 = shalt.err (!%p5991_p7)
}
  0x10   :  { %s6022_s23 = smov 128   ;;  %s6023_s24 = smov 8  }
  0x11   :  { %38 = dma.hbm_to_vmem [thread:$0]  %s7145_s5, 512, %s33_s14, [#allocation4], %s6022_s23, %s6022_s23, %s6023_s24  }
  0x12   :  { %s6024_s27 = smov [#allocation5]   ;;  %s5995_s11 = scalar_lea.hbm %s7146_s6, 16 }
  0x13   :  { %s45_s28 = sshll.u32 %s6024_s27, 4  ;;  %p5996_p8 = scmp.ne.s32.totalorder %s7146_s6, %s5995_s11  ;;  %s46_s28 = int_to_ptr.vmem [resolvable:$true] %s45_s28 }
  0x14   :  { %p5999_p9 = scmp.lt.u32.totalorder %s5995_s11, %s7146_s6 }
  0x16   :  { %p6001_p10 = pnand %p5999_p9, %p5996_p8 }
  0x18   :  { %6004 = shalt.err (!%p6001_p10)
}
  0x19   :  { %s6005_s17 = scalar_lea.vmem %s46_s28, 16  ;;  %s6009_s5 = scalar_lea.vmem %s46_s28, 32 }
  0x1a   :  { %p6006_p11 = scmp.ne.s32.totalorder %s46_s28, %s6005_s17  ;;  %p6010_p12 = scmp.lt.s32.totalorder %s46_s28, %s46_s28 }
  0x1b   :  { %p6011_p13 = scmp.lt.s32.totalorder %s6009_s5, %s6005_s17 }
  0x1d   :  { %p6012_p0 = por %p6011_p13, %p6010_p12 }
  0x1f   :  { %p6013_p1 = pnand %p6012_p0, %p6006_p11 }
  0x21   :  { %6016 = shalt.err (!%p6013_p1)
}
  0x22   :  { %48 = dma.hbm_to_vmem [thread:$0]  %s7146_s6, 16, %s46_s28, [#allocation6]  }
  0x23   :  { %6017 = dma.done.wait [#allocation4], 512  }
  0x24   :  { %6018 = vsyncadd [#allocation4], 4294966784 }
  0x25   :  { %6019 = dma.done.wait [#allocation6], 16  }
  0x26   :  { %6020 = vsyncadd [#allocation6], 4294967280  ;;  %v6025_v0 = vmov 0.0|0.0   ;;  %vm6026_vm0 = vmmov 0   ;;  %v6027_v1 = vmov 0.0   ;;  %v6028_v2 = vmov 0  }
  0x27   :  { %5481 = vmatprep.subr.bf16.mxu1 %v6025_v0  ;;  %4966 = vmatprep.mubr.msk.f32.mxu1 %vm6026_vm0, %v6027_v1  ;;  %v62_v3 = vld [vmem:[%s7142_s2] sm:$0xff]  ;;  %v63_v4 = vld [vmem:[%s7142_s2 + $0x8] sm:$0xff]  ;;  %v64_v5 = vld [vmem:[%s7142_s2 + $0x10] sm:$0xff]  ;;  %v82_v15 = vlaneseq  ;;  %v6029_v20 = vmov 0.5   ;;  %s6030_s11 = smov 64   ;;  %s6031_s6 = smov 32  }
  0x28   :  { %5816 = vset.pattern.permute.xlu0 %v6028_v2  ;;  %5475 = vmatprep.subr.bf16.mxu0 %v6025_v0  ;;  %v6134_v6 = vpack.c.bf16 %v63_v4, %v62_v3  ;;  %v65_v7 = vld [vmem:[%s7142_s2 + $0x18] sm:$0xff]  ;;  %v92_v8 = vld [vmem:[%s7140_s0] sm:$0xff]  ;;  %v72_v27 = vld [vmem:[#allocation3 + $0x8] sm:$0xff]  ;;  %vm183_vm4 = vcmask 261120   ;;  %s6033_s19 = smov 126   ;;  %s6034_s20 = smov 1  }
  0x29   :  { %4955 = vmatprep.mubr.msk.f32.mxu0 %vm6026_vm0, %v6027_v1  ;;  %5817 = vset.pattern.permute.xlu1 %v6028_v2  ;;  %v6143_v9 = vpack.c.bf16 %v65_v7, %v64_v5  ;;  %v6154_v11 = vld [vmem:[%s7141_s1] ss:$0 sm:$0xff]  ;;  %v6163_v19 = vand.u32 127, %v82_v15  ;;  %v73_v28 = vld [vmem:[#allocation3 + $0x10] sm:$0xff]  ;;  %v74_v30 = vld [vmem:[#allocation3 + $0x18] sm:$0xff]  ;;  %s6036_s21 = smov 2  }
  0x2a   :  { %102 = vperm.xlu0 %5816, %v92_v8   ;;  %5483 = vmatpush3.bf16.msra.mxu1 %v6134_v6  ;;  %v6160_v13 = vld [vmem:[%s7143_s3] ss:$0 sm:$0xff]  ;;  %v6182_v31 = vpack.c.bf16 %v74_v30, %v73_v28  ;;  %v68_v33 = vld [vmem:[%s7144_s4 + $0x8] sm:$0xff]  ;;  %v69_v36 = vld [vmem:[%s7144_s4 + $0x10] sm:$0xff]  ;;  %vm4648_vm9 = vcmask 31744  }
  0x2b   :  { %5484 = vmatprep.subr.bf16.mxu1 %v6025_v0  ;;  %vm84_vm1 = vcmp.ge.s32.totalorder %v6163_v19, 64  ;;  %vm85_vm2 = vcmp.lt.s32.totalorder %v6163_v19, 96  ;;  %v71_v26 = vld [vmem:[#allocation3] sm:$0xff]  ;;  %v70_v37 = vld [vmem:[%s7144_s4 + $0x18] sm:$0xff]  ;;  %v77_v55 = vld [vmem:[%s7147_s7 + $0x8] sm:$0xff]  ;;  %vm89_vm5 = vcmp.eq.s32.totalorder %v6163_v19, 2 }
  0x2c   :  { %vm86_vm3 = vmand %vm84_vm1, %vm85_vm2  ;;  %v6179_v29 = vpack.c.bf16 %v72_v27, %v71_v26  ;;  %v67_v32 = vld [vmem:[%s7144_s4] sm:$0xff]  ;;  %v6205_v39 = vpack.c.bf16 %v70_v37, %v69_v36  ;;  %s6032_s4 = smov 96   ;;  %v78_v56 = vld [vmem:[%s7147_s7 + $0x10] sm:$0xff]  ;;  %vm3897_vm6 = vcmp.eq.s32.totalorder %v6163_v19, 1  ;;  %vm3517_vm7 = vcmp.eq.s32.totalorder %v6163_v19, 0 }
  0x2d   :  { %v6168_v21 = vsel %vm86_vm3, 1.0, %v6029_v20  ;;  %v6171_v23 = vsel %vm86_vm3, 0.0, %v6029_v20  ;;  %v6192_v34 = vpack.c.bf16 %v68_v33, %v67_v32  ;;  %v6224_v44 = vld [vmem:[#allocation5] ss:$0 sm:$0xff]  ;;  %v79_v59 = vld [vmem:[%s7147_s7 + $0x18] sm:$0xff]  ;;  %v93_v4 = vld [vmem:[%s7140_s0 + $0x8] sm:$0xff] }
  0x2e   :  { %5486 = vmatpush3.bf16.msra.mxu1 %v6143_v9  ;;  %5477 = vmatpush3.bf16.msra.mxu0 %v6179_v29  ;;  %v76_v54 = vld [vmem:[%s7147_s7] sm:$0xff]  ;;  %v6249_v61 = vpack.c.bf16 %v79_v59, %v78_v56  ;;  %vm4638_vm8 = vcmp.eq.s32.totalorder %v6163_v19, 3 }
  0x2f   :  { %5493 = vmatprep.subr.bf16.mxu1 %v6025_v0  ;;  %5478 = vmatprep.subr.bf16.mxu0 %v6025_v0  ;;  %v6242_v58 = vpack.c.bf16 %v77_v55, %v76_v54  ;;  %v94_v55 = vld [vmem:[%s7140_s0 + $0x10] sm:$0xff] }
  0x31   :  { %4967 = vmatmul.mubr.f32.vlgmr.msra.gmra.mrb[0].mxu1 %v6027_v1 }
  0x32   :  { %4988 = vmatprep.mubr.msk.f32.mxu1 %vm6026_vm0, %v6027_v1  ;;  %5480 = vmatpush3.bf16.msra.mxu0 %v6182_v31 }
  0x33   :  { %5487 = vmatprep.subr.bf16.mxu0 %v6025_v0  ;;  %5495 = vmatpush3.bf16.msra.mxu1 %v6242_v58 }
  0x34   :  { %5496 = vmatprep.subr.bf16.mxu1 %v6025_v0 }
  0x35   :  { %4956 = vmatmul.mubr.f32.vlgmr.msra.gmra.mrb[0].mxu0 %v6027_v1 }
  0x36   :  { %5489 = vmatpush3.bf16.msra.mxu0 %v6192_v34  ;;  %4977 = vmatprep.mubr.msk.f32.mxu0 %vm6026_vm0, %v6027_v1 }
  0x37   :  { %5490 = vmatprep.subr.bf16.mxu0 %v6025_v0  ;;  %5498 = vmatpush3.bf16.msra.mxu1 %v6249_v61 }
  0x38   :  { %5505 = vmatprep.subr.bf16.mxu1 %v6025_v0 }
  0x3a   :  { %5492 = vmatpush3.bf16.msra.mxu0 %v6205_v39 }
  0x3b   :  { %5499 = vmatprep.subr.bf16.mxu0 %v6025_v0 }
  0xa9   :  { %v103_v10 = vpop.permute.xlu0 %102 }
  0xaa   :  { %v146_v12 = vmul.f32 %v6154_v11, %v103_v10 }
  0xac   :  { %v160_v14 = vadd.f32 %v6160_v13, %v146_v12 }
 0x104   :  { %v337_v16 = vpop.f32.mrb[0].mxu1 }
 0x105   :  { %v341_v17 = vadd.f32 %v337_v16, %v160_v14  ;;  %v4968_v18 = vpop.f32.mrb[1].mxu1 }
 0x107   :  { %5827 = vtanh.f32 %v341_v17 }
 0x111   :  { %v5828_v22 = vpop.eup %5827 }
 0x112   :  { %v343_v24 = vmul.f32 %v5828_v22, %v6168_v21 }
 0x114   :  { %v6175_v25 = vadd.f32 %v343_v24, %v6171_v23 }
 0x116   :  { %347 = vrot.lane.b32.xlu0 %v6175_v25, %s6030_s11  ;;  %v345_v40 = vmul.f32 0.0, %v6175_v25 }
 0x188   :  { %v348_v35 = vpop.permute.xlu0 %347 }
 0x189   :  { %v350_v38 = vmul.f32 %v348_v35, %v6175_v25 }
 0x18b   :  { %352 = vrot.lane.b32.xlu1 %v350_v38, %s6031_s6 }
 0x1fd   :  { %v353_v41 = vpop.permute.xlu1 %352 }
 0x1fe   :  { %v6213_v42 = vadd.f32 %v353_v41, %v345_v40 }
 0x200   :  { %363 = vrot.lane.b32.xlu1 %v6213_v42, %s6032_s4 }
 0x272   :  { %v364_v43 = vpop.permute.xlu1 %363 }
 0x273   :  { %4978 = vmatmul.mubr.msk.f32.vlgmr.msra.gmra.mrb[0].mxu0 %vm183_vm4, %v364_v43 }
 0x274   :  { %5501 = vmatpush3.bf16.msra.mxu0 %v6179_v29  ;;  %4999 = vmatprep.mubr.msk.f32.mxu0 %vm6026_vm0, %v6027_v1 }
 0x275   :  { %5502 = vmatprep.subr.bf16.mxu0 %v6025_v0 }
 0x278   :  { %5504 = vmatpush3.bf16.msra.mxu0 %v6182_v31 }
 0x279   :  { %5511 = vmatprep.subr.bf16.mxu0 %v6025_v0 }
 0x346   :  { %v433_v45 = vpop.f32.mrb[0].mxu0 }
 0x347   :  { %v5763_v46 = vadd.f32 %v6224_v44, %v433_v45  ;;  %v4979_v47 = vpop.f32.mrb[1].mxu0 }
 0x349   :  { %5829 = vtanh.f32 %v5763_v46 }
 0x34a   :  { %5831 = vtanh.f32 %v6213_v42 }
 0x353   :  { %v5830_v48 = vpop.eup %5829 }
 0x354   :  { %v438_v49 = vmul.f32 %v5830_v48, %v6168_v21  ;;  %v5832_v51 = vpop.eup %5831 }
 0x356   :  { %v439_v50 = vadd.f32 %v438_v49, %v6171_v23 }
 0x358   :  { %442 = vrot.lane.b32.xlu0 %v439_v50, %s6030_s11  ;;  %v440_v62 = vmul.f32 0.0, %v439_v50 }
 0x35c   :  { %358 = vrot.lane.b32.xlu0 %v5832_v51, %s6030_s11 }
 0x3ca   :  { %v443_v52 = vpop.permute.xlu0 %442 }
 0x3cb   :  { %v445_v53 = vmul.f32 %v443_v52, %v439_v50 }
 0x3cd   :  { %447 = vrot.lane.b32.xlu1 %v445_v53, %s6031_s6 }
 0x3ce   :  { %v359_v57 = vpop.permute.xlu0 %358 }
 0x3cf   :  { %v361_v60 = vmul.f32 %v359_v57, %v6175_v25 }
 0x3d1   :  { %637 = vrot.lane.b32.xlu0 %v361_v60, %s6031_s6 }
 0x43f   :  { %v448_v63 = vpop.permute.xlu1 %447 }
 0x440   :  { %v6255_v3 = vadd.f32 %v448_v63, %v440_v62 }
 0x442   :  { %5833 = vtanh.f32 %v6255_v3  ;;  %458 = vrot.lane.b32.xlu1 %v6255_v3, %s6032_s4 }
 0x443   :  { %v638_v8 = vpop.permute.xlu0 %637 }
 0x446   :  { %107 = vperm.xlu1 %5817, %v93_v4  }
 0x44c   :  { %v5834_v5 = vpop.eup %5833 }
 0x44d   :  { %453 = vrot.lane.b32.xlu1 %v5834_v5, %s6030_s11 }
 0x4b4   :  { %v459_v7 = vpop.permute.xlu1 %458 }
 0x4b5   :  { %4989 = vmatmul.mubr.msk.f32.vlgmr.msra.gmra.mrb[2].mxu1 %vm183_vm4, %v459_v7 }
 0x4b6   :  { %5507 = vmatpush3.bf16.msra.mxu1 %v6134_v6  ;;  %5010 = vmatprep.mubr.msk.f32.mxu1 %vm6026_vm0, %v6027_v1 }
 0x4b7   :  { %5508 = vmatprep.subr.bf16.mxu1 %v6025_v0 }
 0x4ba   :  { %5510 = vmatpush3.bf16.msra.mxu1 %v6143_v9 }
 0x4bb   :  { %5517 = vmatprep.subr.bf16.mxu1 %v6025_v0 }
 0x4bd   :  { %5011 = vmatmul.mubr.msk.f32.vlgmr.msra.gmra.mrb[4].mxu1 %vm183_vm4, %v638_v8 }
 0x4be   :  { %5519 = vmatpush3.bf16.msra.mxu1 %v6242_v58  ;;  %5032 = vmatprep.mubr.msk.f32.mxu1 %vm6026_vm0, %v6027_v1 }
 0x4bf   :  { %5520 = vmatprep.subr.bf16.mxu1 %v6025_v0 }
 0x4c2   :  { %5522 = vmatpush3.bf16.msra.mxu1 %v6249_v61 }
 0x4c3   :  { %5529 = vmatprep.subr.bf16.mxu1 %v6025_v0 }
 0x4c5   :  { %v108_v10 = vpop.permute.xlu1 %107 }
 0x4c6   :  { %v147_v17 = vmul.f32 %v6154_v11, %v108_v10 }
 0x4c8   :  { %v161_v22 = vadd.f32 %v6160_v13, %v147_v17 }
 0x4c9   :  { %v454_v12 = vpop.permute.xlu1 %453 }
 0x4ca   :  { %v456_v14 = vmul.f32 %v454_v12, %v439_v50 }
 0x4cc   :  { %555 = vrot.lane.b32.xlu1 %v456_v14, %s6031_s6 }
 0x53e   :  { %v556_v15 = vpop.permute.xlu1 %555 }
 0x53f   :  { %5000 = vmatmul.mubr.msk.f32.vlgmr.msra.gmra.mrb[2].mxu0 %vm183_vm4, %v556_v15 }
 0x540   :  { %5513 = vmatpush3.bf16.msra.mxu0 %v6192_v34  ;;  %5021 = vmatprep.mubr.msk.f32.mxu0 %vm6026_vm0, %v6027_v1 }
 0x541   :  { %5514 = vmatprep.subr.bf16.mxu0 %v6025_v0 }
 0x544   :  { %5516 = vmatpush3.bf16.msra.mxu0 %v6205_v39 }
 0x545   :  { %5523 = vmatprep.subr.bf16.mxu0 %v6025_v0 }
 0x588   :  { %v6286_v16 = vpop.f32.mrb[2].mxu1 }
 0x589   :  { %v4990_v18 = vpop.f32.mrb[3].mxu1 }
 0x590   :  { %v707_v24 = vpop.f32.mrb[4].mxu1 }
 0x591   :  { %v711_v25 = vadd.f32 %v707_v24, %v161_v22  ;;  %v5012_v26 = vpop.f32.mrb[5].mxu1 }
 0x593   :  { %5835 = vtanh.f32 %v711_v25 }
 0x59d   :  { %v5836_v27 = vpop.eup %5835 }
 0x59e   :  { %v713_v28 = vmul.f32 %v5836_v27, %v6168_v21 }
 0x5a0   :  { %v714_v30 = vadd.f32 %v713_v28, %v6171_v23 }
 0x5a2   :  { %717 = vrot.lane.b32.xlu0 %v714_v30, %s6030_s11  ;;  %v715_v35 = vmul.f32 %v714_v30, %v6213_v42 }
 0x614   :  { %v718_v32 = vpop.permute.xlu0 %717 }
 0x615   :  { %v720_v33 = vmul.f32 %v718_v32, %v714_v30 }
 0x617   :  { %722 = vrot.lane.b32.xlu0 %v720_v33, %s6031_s6 }
 0x689   :  { %v723_v36 = vpop.permute.xlu0 %722 }
 0x68a   :  { %v6295_v37 = vadd.f32 %v723_v36, %v715_v35 }
 0x68c   :  { %733 = vrot.lane.b32.xlu0 %v6295_v37, %s6032_s4 }
 0x6fe   :  { %v734_v38 = vpop.permute.xlu0 %733 }
 0x6ff   :  { %5022 = vmatmul.mubr.msk.f32.vlgmr.msra.gmra.mrb[2].mxu0 %vm183_vm4, %v734_v38 }
 0x700   :  { %5525 = vmatpush3.bf16.msra.mxu0 %v6179_v29  ;;  %5043 = vmatprep.mubr.msk.f32.mxu0 %vm6026_vm0, %v6027_v1 }
 0x701   :  { %5526 = vmatprep.subr.bf16.mxu0 %v6025_v0 }
 0x704   :  { %5528 = vmatpush3.bf16.msra.mxu0 %v6182_v31 }
 0x705   :  { %5535 = vmatprep.subr.bf16.mxu0 %v6025_v0 }
 0x7d2   :  { %v803_v40 = vpop.f32.mrb[2].mxu0 }
 0x7d3   :  { %v5764_v41 = vadd.f32 %v6224_v44, %v803_v40  ;;  %v5023_v42 = vpop.f32.mrb[3].mxu0 }
 0x7d5   :  { %5837 = vtanh.f32 %v5764_v41 }
 0x7d6   :  { %5839 = vtanh.f32 %v6295_v37 }
 0x7df   :  { %v5838_v43 = vpop.eup %5837 }
 0x7e0   :  { %v808_v45 = vmul.f32 %v5838_v43, %v6168_v21  ;;  %v5840_v47 = vpop.eup %5839 }
 0x7e2   :  { %v809_v46 = vadd.f32 %v808_v45, %v6171_v23 }
 0x7e4   :  { %812 = vrot.lane.b32.xlu1 %v809_v46, %s6030_s11  ;;  %v810_v52 = vmul.f32 %v809_v46, %v6255_v3 }
 0x7e8   :  { %728 = vrot.lane.b32.xlu1 %v5840_v47, %s6030_s11 }
 0x856   :  { %v813_v48 = vpop.permute.xlu1 %812 }
 0x857   :  { %v815_v49 = vmul.f32 %v813_v48, %v809_v46  ;;  %v95_v48 = vld [vmem:[%s7140_s0 + $0x18] sm:$0xff] }
 0x859   :  { %817 = vrot.lane.b32.xlu0 %v815_v49, %s6031_s6 }
 0x85a   :  { %v729_v50 = vpop.permute.xlu1 %728 }
 0x85b   :  { %v731_v51 = vmul.f32 %v729_v50, %v714_v30 }
 0x85d   :  { %1007 = vrot.lane.b32.xlu1 %v731_v51, %s6031_s6 }
 0x8cb   :  { %v818_v53 = vpop.permute.xlu0 %817 }
 0x8cc   :  { %v6315_v54 = vadd.f32 %v818_v53, %v810_v52 }
 0x8ce   :  { %5841 = vtanh.f32 %v6315_v54  ;;  %828 = vrot.lane.b32.xlu0 %v6315_v54, %s6032_s4 }
 0x8cf   :  { %v1008_v59 = vpop.permute.xlu1 %1007 }
 0x8d2   :  { %112 = vperm.xlu0 %5816, %v94_v55  }
 0x8d8   :  { %v5842_v56 = vpop.eup %5841 }
 0x8d9   :  { %823 = vrot.lane.b32.xlu0 %v5842_v56, %s6030_s11 }
 0x940   :  { %v829_v57 = vpop.permute.xlu0 %828 }
 0x941   :  { %5033 = vmatmul.mubr.msk.f32.vlgmr.msra.gmra.mrb[6].mxu1 %vm183_vm4, %v829_v57 }
 0x942   :  { %5531 = vmatpush3.bf16.msra.mxu1 %v6134_v6  ;;  %5054 = vmatprep.mubr.msk.f32.mxu1 %vm6026_vm0, %v6027_v1 }
 0x943   :  { %5532 = vmatprep.subr.bf16.mxu1 %v6025_v0 }
 0x946   :  { %5534 = vmatpush3.bf16.msra.mxu1 %v6143_v9 }
 0x947   :  { %5541 = vmatprep.subr.bf16.mxu1 %v6025_v0 }
 0x949   :  { %5055 = vmatmul.mubr.msk.f32.vlgmr.msra.gmra.mrb[8].mxu1 %vm183_vm4, %v1008_v59 }
 0x94a   :  { %5543 = vmatpush3.bf16.msra.mxu1 %v6242_v58  ;;  %5076 = vmatprep.mubr.msk.f32.mxu1 %vm6026_vm0, %v6027_v1 }
 0x94b   :  { %5544 = vmatprep.subr.bf16.mxu1 %v6025_v0 }
 0x94e   :  { %5546 = vmatpush3.bf16.msra.mxu1 %v6249_v61 }
 0x94f   :  { %5553 = vmatprep.subr.bf16.mxu1 %v6025_v0 }
 0x951   :  { %v113_v60 = vpop.permute.xlu0 %112 }
 0x952   :  { %v148_v7 = vmul.f32 %v6154_v11, %v113_v60 }
 0x954   :  { %v162_v8 = vadd.f32 %v6160_v13, %v148_v7 }
 0x955   :  { %v824_v62 = vpop.permute.xlu0 %823 }
 0x956   :  { %v826_v63 = vmul.f32 %v824_v62, %v809_v46 }
 0x958   :  { %925 = vrot.lane.b32.xlu0 %v826_v63, %s6031_s6 }
 0x9ca   :  { %v926_v3 = vpop.permute.xlu0 %925 }
 0x9cb   :  { %5044 = vmatmul.mubr.msk.f32.vlgmr.msra.gmra.mrb[4].mxu0 %vm183_vm4, %v926_v3 }
 0x9cc   :  { %5537 = vmatpush3.bf16.msra.mxu0 %v6192_v34  ;;  %5065 = vmatprep.mubr.msk.f32.mxu0 %vm6026_vm0, %v6027_v1 }
 0x9cd   :  { %5538 = vmatprep.subr.bf16.mxu0 %v6025_v0 }
 0x9d0   :  { %5540 = vmatpush3.bf16.msra.mxu0 %v6205_v39 }
 0x9d1   :  { %5547 = vmatprep.subr.bf16.mxu0 %v6025_v0 }
 0xa14   :  { %v6346_v4 = vpop.f32.mrb[6].mxu1 }
 0xa15   :  { %v5034_v5 = vpop.f32.mrb[7].mxu1 }
 0xa1c   :  { %v1077_v10 = vpop.f32.mrb[8].mxu1 }
 0xa1d   :  { %v1081_v12 = vadd.f32 %v1077_v10, %v162_v8  ;;  %v5056_v14 = vpop.f32.mrb[9].mxu1 }
 0xa1f   :  { %5843 = vtanh.f32 %v1081_v12 }
 0xa29   :  { %v5844_v15 = vpop.eup %5843 }
 0xa2a   :  { %v1083_v17 = vmul.f32 %v5844_v15, %v6168_v21 }
 0xa2c   :  { %v1084_v18 = vadd.f32 %v1083_v17, %v6171_v23 }
 0xa2e   :  { %1087 = vrot.lane.b32.xlu1 %v1084_v18, %s6030_s11  ;;  %v1085_v25 = vmul.f32 %v1084_v18, %v6295_v37 }
 0xaa0   :  { %v1088_v22 = vpop.permute.xlu1 %1087 }
 0xaa1   :  { %v1090_v24 = vmul.f32 %v1088_v22, %v1084_v18 }
 0xaa3   :  { %1092 = vrot.lane.b32.xlu1 %v1090_v24, %s6031_s6 }
 0xb15   :  { %v1093_v26 = vpop.permute.xlu1 %1092 }
 0xb16   :  { %v6355_v27 = vadd.f32 %v1093_v26, %v1085_v25 }
 0xb18   :  { %1103 = vrot.lane.b32.xlu1 %v6355_v27, %s6032_s4 }
 0xb8a   :  { %v1104_v28 = vpop.permute.xlu1 %1103 }
 0xb8b   :  { %5066 = vmatmul.mubr.msk.f32.vlgmr.msra.gmra.mrb[4].mxu0 %vm183_vm4, %v1104_v28 }
 0xb8c   :  { %5549 = vmatpush3.bf16.msra.mxu0 %v6179_v29  ;;  %5087 = vmatprep.mubr.msk.f32.mxu0 %vm6026_vm0, %v6027_v1 }
 0xb8d   :  { %5550 = vmatprep.subr.bf16.mxu0 %v6025_v0 }
 0xb90   :  { %5552 = vmatpush3.bf16.msra.mxu0 %v6182_v31 }
 0xb91   :  { %5559 = vmatprep.subr.bf16.mxu0 %v6025_v0 }
 0xc5e   :  { %v1173_v30 = vpop.f32.mrb[4].mxu0 }
 0xc5f   :  { %v5765_v32 = vadd.f32 %v6224_v44, %v1173_v30  ;;  %v5067_v33 = vpop.f32.mrb[5].mxu0 }
 0xc61   :  { %5845 = vtanh.f32 %v5765_v32 }
 0xc62   :  { %5847 = vtanh.f32 %v6355_v27 }
 0xc6b   :  { %v5846_v35 = vpop.eup %5845 }
 0xc6c   :  { %v1178_v36 = vmul.f32 %v5846_v35, %v6168_v21  ;;  %v5848_v38 = vpop.eup %5847 }
 0xc6e   :  { %v1179_v37 = vadd.f32 %v1178_v36, %v6171_v23 }
 0xc70   :  { %1182 = vrot.lane.b32.xlu0 %v1179_v37, %s6030_s11  ;;  %v1180_v45 = vmul.f32 %v1179_v37, %v6315_v54 }
 0xc74   :  { %1098 = vrot.lane.b32.xlu0 %v5848_v38, %s6030_s11 }
 0xce2   :  { %v1183_v40 = vpop.permute.xlu0 %1182 }
 0xce3   :  { %v1185_v41 = vmul.f32 %v1183_v40, %v1179_v37 }
 0xce5   :  { %1187 = vrot.lane.b32.xlu1 %v1185_v41, %s6031_s6  ;;  %v96_v41 = vld [vmem:[%s7140_s0 + $0x20] sm:$0xff] }
 0xce6   :  { %v1099_v42 = vpop.permute.xlu0 %1098 }
 0xce7   :  { %v1101_v43 = vmul.f32 %v1099_v42, %v1084_v18 }
 0xce9   :  { %1377 = vrot.lane.b32.xlu0 %v1101_v43, %s6031_s6 }
 0xd57   :  { %v1188_v46 = vpop.permute.xlu1 %1187 }
 0xd58   :  { %v6375_v47 = vadd.f32 %v1188_v46, %v1180_v45 }
 0xd5a   :  { %5849 = vtanh.f32 %v6375_v47  ;;  %1198 = vrot.lane.b32.xlu1 %v6375_v47, %s6032_s4 }
 0xd5b   :  { %v1378_v51 = vpop.permute.xlu0 %1377 }
 0xd5e   :  { %117 = vperm.xlu1 %5817, %v95_v48  }
 0xd64   :  { %v5850_v49 = vpop.eup %5849 }
 0xd65   :  { %1193 = vrot.lane.b32.xlu1 %v5850_v49, %s6030_s11 }
 0xdcc   :  { %v1199_v50 = vpop.permute.xlu1 %1198 }
 0xdcd   :  { %5077 = vmatmul.mubr.msk.f32.vlgmr.msra.gmra.mrb[10].mxu1 %vm183_vm4, %v1199_v50 }
 0xdce   :  { %5555 = vmatpush3.bf16.msra.mxu1 %v6134_v6  ;;  %5098 = vmatprep.mubr.msk.f32.mxu1 %vm6026_vm0, %v6027_v1 }
 0xdcf   :  { %5556 = vmatprep.subr.bf16.mxu1 %v6025_v0 }
 0xdd2   :  { %5558 = vmatpush3.bf16.msra.mxu1 %v6143_v9 }
 0xdd3   :  { %5565 = vmatprep.subr.bf16.mxu1 %v6025_v0 }
 0xdd5   :  { %5099 = vmatmul.mubr.msk.f32.vlgmr.msra.gmra.mrb[12].mxu1 %vm183_vm4, %v1378_v51 }
 0xdd6   :  { %5567 = vmatpush3.bf16.msra.mxu1 %v6242_v58  ;;  %5120 = vmatprep.mubr.msk.f32.mxu1 %vm6026_vm0, %v6027_v1 }
 0xdd7   :  { %5568 = vmatprep.subr.bf16.mxu1 %v6025_v0 }
 0xdda   :  { %5570 = vmatpush3.bf16.msra.mxu1 %v6249_v61 }
 0xddb   :  { %5577 = vmatprep.subr.bf16.mxu1 %v6025_v0 }
 0xddd   :  { %v118_v52 = vpop.permute.xlu1 %117 }
 0xdde   :  { %v149_v59 = vmul.f32 %v6154_v11, %v118_v52 }
 0xde0   :  { %v163_v60 = vadd.f32 %v6160_v13, %v149_v59 }
 0xde1   :  { %v1194_v53 = vpop.permute.xlu1 %1193 }
 0xde2   :  { %v1196_v54 = vmul.f32 %v1194_v53, %v1179_v37 }
 0xde4   :  { %1295 = vrot.lane.b32.xlu1 %v1196_v54, %s6031_s6 }
 0xe56   :  { %v1296_v55 = vpop.permute.xlu1 %1295 }
 0xe57   :  { %5088 = vmatmul.mubr.msk.f32.vlgmr.msra.gmra.mrb[6].mxu0 %vm183_vm4, %v1296_v55 }
 0xe58   :  { %5561 = vmatpush3.bf16.msra.mxu0 %v6192_v34  ;;  %5109 = vmatprep.mubr.msk.f32.mxu0 %vm6026_vm0, %v6027_v1 }
 0xe59   :  { %5562 = vmatprep.subr.bf16.mxu0 %v6025_v0 }
 0xe5c   :  { %5564 = vmatpush3.bf16.msra.mxu0 %v6205_v39 }
 0xe5d   :  { %5571 = vmatprep.subr.bf16.mxu0 %v6025_v0 }
 0xea0   :  { %v6406_v56 = vpop.f32.mrb[10].mxu1 }
 0xea1   :  { %v5078_v57 = vpop.f32.mrb[11].mxu1 }
 0xea8   :  { %v1447_v62 = vpop.f32.mrb[12].mxu1 }
 0xea9   :  { %v1451_v63 = vadd.f32 %v1447_v62, %v163_v60  ;;  %v5100_v3 = vpop.f32.mrb[13].mxu1 }
 0xeab   :  { %5851 = vtanh.f32 %v1451_v63 }
 0xeb5   :  { %v5852_v5 = vpop.eup %5851 }
 0xeb6   :  { %v1453_v7 = vmul.f32 %v5852_v5, %v6168_v21 }
 0xeb8   :  { %v1454_v8 = vadd.f32 %v1453_v7, %v6171_v23 }
 0xeba   :  { %1457 = vrot.lane.b32.xlu0 %v1454_v8, %s6030_s11  ;;  %v1455_v14 = vmul.f32 %v1454_v8, %v6355_v27 }
 0xf2c   :  { %v1458_v10 = vpop.permute.xlu0 %1457 }
 0xf2d   :  { %v1460_v12 = vmul.f32 %v1458_v10, %v1454_v8 }
 0xf2f   :  { %1462 = vrot.lane.b32.xlu0 %v1460_v12, %s6031_s6 }
 0xfa1   :  { %v1463_v15 = vpop.permute.xlu0 %1462 }
 0xfa2   :  { %v6415_v17 = vadd.f32 %v1463_v15, %v1455_v14 }
 0xfa4   :  { %1473 = vrot.lane.b32.xlu0 %v6415_v17, %s6032_s4 }
0x1016   :  { %v1474_v18 = vpop.permute.xlu0 %1473 }
0x1017   :  { %5110 = vmatmul.mubr.msk.f32.vlgmr.msra.gmra.mrb[6].mxu0 %vm183_vm4, %v1474_v18 }
0x1018   :  { %5573 = vmatpush3.bf16.msra.mxu0 %v6179_v29  ;;  %5131 = vmatprep.mubr.msk.f32.mxu0 %vm6026_vm0, %v6027_v1 }
0x1019   :  { %5574 = vmatprep.subr.bf16.mxu0 %v6025_v0 }
0x101c   :  { %5576 = vmatpush3.bf16.msra.mxu0 %v6182_v31 }
0x101d   :  { %5583 = vmatprep.subr.bf16.mxu0 %v6025_v0 }
0x10ea   :  { %v1543_v22 = vpop.f32.mrb[6].mxu0 }
0x10eb   :  { %v5766_v24 = vadd.f32 %v6224_v44, %v1543_v22  ;;  %v5111_v25 = vpop.f32.mrb[7].mxu0 }
0x10ed   :  { %5853 = vtanh.f32 %v5766_v24 }
0x10ee   :  { %5855 = vtanh.f32 %v6415_v17 }
0x10f7   :  { %v5854_v26 = vpop.eup %5853 }
0x10f8   :  { %v1548_v27 = vmul.f32 %v5854_v26, %v6168_v21  ;;  %v5856_v30 = vpop.eup %5855 }
0x10fa   :  { %v1549_v28 = vadd.f32 %v1548_v27, %v6171_v23 }
0x10fc   :  { %1552 = vrot.lane.b32.xlu1 %v1549_v28, %s6030_s11  ;;  %v1550_v37 = vmul.f32 %v1549_v28, %v6375_v47 }
0x1100   :  { %1468 = vrot.lane.b32.xlu1 %v5856_v30, %s6030_s11 }
0x116e   :  { %v1553_v32 = vpop.permute.xlu1 %1552 }
0x116f   :  { %v1555_v33 = vmul.f32 %v1553_v32, %v1549_v28 }
0x1171   :  { %1557 = vrot.lane.b32.xlu0 %v1555_v33, %s6031_s6 }
0x1172   :  { %v1469_v35 = vpop.permute.xlu1 %1468 }
0x1173   :  { %v1471_v36 = vmul.f32 %v1469_v35, %v1454_v8  ;;  %v97_v35 = vld [vmem:[%s7140_s0 + $0x28] sm:$0xff] }
0x1175   :  { %1747 = vrot.lane.b32.xlu1 %v1471_v36, %s6031_s6 }
0x11e3   :  { %v1558_v38 = vpop.permute.xlu0 %1557 }
0x11e4   :  { %v6435_v40 = vadd.f32 %v1558_v38, %v1550_v37 }
0x11e6   :  { %5857 = vtanh.f32 %v6435_v40  ;;  %1568 = vrot.lane.b32.xlu0 %v6435_v40, %s6032_s4 }
0x11e7   :  { %v1748_v45 = vpop.permute.xlu1 %1747 }
0x11ea   :  { %122 = vperm.xlu0 %5816, %v96_v41  }
0x11f0   :  { %v5858_v42 = vpop.eup %5857 }
0x11f1   :  { %1563 = vrot.lane.b32.xlu0 %v5858_v42, %s6030_s11 }
0x1258   :  { %v1569_v43 = vpop.permute.xlu0 %1568 }
0x1259   :  { %5121 = vmatmul.mubr.msk.f32.vlgmr.msra.gmra.mrb[14].mxu1 %vm183_vm4, %v1569_v43 }
0x125a   :  { %5579 = vmatpush3.bf16.msra.mxu1 %v6134_v6  ;;  %5142 = vmatprep.mubr.msk.f32.mxu1 %vm6026_vm0, %v6027_v1 }
0x125b   :  { %5580 = vmatprep.subr.bf16.mxu1 %v6025_v0 }
0x125e   :  { %5582 = vmatpush3.bf16.msra.mxu1 %v6143_v9 }
0x125f   :  { %5589 = vmatprep.subr.bf16.mxu1 %v6025_v0 }
0x1261   :  { %5143 = vmatmul.mubr.msk.f32.vlgmr.msra.gmra.mrb[16].mxu1 %vm183_vm4, %v1748_v45 }
0x1262   :  { %5591 = vmatpush3.bf16.msra.mxu1 %v6242_v58  ;;  %5164 = vmatprep.mubr.msk.f32.mxu1 %vm6026_vm0, %v6027_v1 }
0x1263   :  { %5592 = vmatprep.subr.bf16.mxu1 %v6025_v0 }
0x1266   :  { %5594 = vmatpush3.bf16.msra.mxu1 %v6249_v61 }
0x1267   :  { %5601 = vmatprep.subr.bf16.mxu1 %v6025_v0 }
0x1269   :  { %v123_v46 = vpop.permute.xlu0 %122 }
0x126a   :  { %v150_v52 = vmul.f32 %v6154_v11, %v123_v46 }
0x126c   :  { %v164_v53 = vadd.f32 %v6160_v13, %v150_v52 }
0x126d   :  { %v1564_v47 = vpop.permute.xlu0 %1563 }
0x126e   :  { %v1566_v48 = vmul.f32 %v1564_v47, %v1549_v28 }
0x1270   :  { %1665 = vrot.lane.b32.xlu0 %v1566_v48, %s6031_s6 }
0x12e2   :  { %v1666_v49 = vpop.permute.xlu0 %1665 }
0x12e3   :  { %5132 = vmatmul.mubr.msk.f32.vlgmr.msra.gmra.mrb[8].mxu0 %vm183_vm4, %v1666_v49 }
0x12e4   :  { %5585 = vmatpush3.bf16.msra.mxu0 %v6192_v34  ;;  %5153 = vmatprep.mubr.msk.f32.mxu0 %vm6026_vm0, %v6027_v1 }
0x12e5   :  { %5586 = vmatprep.subr.bf16.mxu0 %v6025_v0 }
0x12e8   :  { %5588 = vmatpush3.bf16.msra.mxu0 %v6205_v39 }
0x12e9   :  { %5595 = vmatprep.subr.bf16.mxu0 %v6025_v0 }
0x132c   :  { %v6466_v50 = vpop.f32.mrb[14].mxu1 }
0x132d   :  { %v5122_v51 = vpop.f32.mrb[15].mxu1 }
0x1334   :  { %v1817_v54 = vpop.f32.mrb[16].mxu1 }
0x1335   :  { %v1821_v55 = vadd.f32 %v1817_v54, %v164_v53  ;;  %v5144_v57 = vpop.f32.mrb[17].mxu1 }
0x1337   :  { %5859 = vtanh.f32 %v1821_v55 }
0x1341   :  { %v5860_v59 = vpop.eup %5859 }
0x1342   :  { %v1823_v60 = vmul.f32 %v5860_v59, %v6168_v21 }
0x1344   :  { %v1824_v62 = vadd.f32 %v1823_v60, %v6171_v23 }
0x1346   :  { %1827 = vrot.lane.b32.xlu1 %v1824_v62, %s6030_s11  ;;  %v1825_v5 = vmul.f32 %v1824_v62, %v6415_v17 }
0x13b8   :  { %v1828_v63 = vpop.permute.xlu1 %1827 }
0x13b9   :  { %v1830_v3 = vmul.f32 %v1828_v63, %v1824_v62 }
0x13bb   :  { %1832 = vrot.lane.b32.xlu1 %v1830_v3, %s6031_s6 }
0x142d   :  { %v1833_v7 = vpop.permute.xlu1 %1832 }
0x142e   :  { %v6475_v8 = vadd.f32 %v1833_v7, %v1825_v5 }
0x1430   :  { %1843 = vrot.lane.b32.xlu1 %v6475_v8, %s6032_s4 }
0x14a2   :  { %v1844_v10 = vpop.permute.xlu1 %1843 }
0x14a3   :  { %5154 = vmatmul.mubr.msk.f32.vlgmr.msra.gmra.mrb[8].mxu0 %vm183_vm4, %v1844_v10 }
0x14a4   :  { %5597 = vmatpush3.bf16.msra.mxu0 %v6179_v29  ;;  %5175 = vmatprep.mubr.msk.f32.mxu0 %vm6026_vm0, %v6027_v1 }
0x14a5   :  { %5598 = vmatprep.subr.bf16.mxu0 %v6025_v0 }
0x14a8   :  { %5600 = vmatpush3.bf16.msra.mxu0 %v6182_v31 }
0x14a9   :  { %5607 = vmatprep.subr.bf16.mxu0 %v6025_v0 }
0x1576   :  { %v1913_v12 = vpop.f32.mrb[8].mxu0 }
0x1577   :  { %v5767_v14 = vadd.f32 %v6224_v44, %v1913_v12  ;;  %v5155_v15 = vpop.f32.mrb[9].mxu0 }
0x1578   :  { %v6564_v15 = vld [vmem:[%s7149_s9] ss:$0 sm:$0xff] }
0x1579   :  { %5861 = vtanh.f32 %v5767_v14 }
0x157a   :  { %5863 = vtanh.f32 %v6475_v8 }
0x1583   :  { %v5862_v17 = vpop.eup %5861 }
0x1584   :  { %v1918_v18 = vmul.f32 %v5862_v17, %v6168_v21  ;;  %v5864_v24 = vpop.eup %5863 }
0x1586   :  { %v1919_v22 = vadd.f32 %v1918_v18, %v6171_v23 }
0x1588   :  { %1922 = vrot.lane.b32.xlu0 %v1919_v22, %s6030_s11  ;;  %v1920_v30 = vmul.f32 %v1919_v22, %v6435_v40 }
0x158c   :  { %1838 = vrot.lane.b32.xlu0 %v5864_v24, %s6030_s11  ;;  %v6572_v24 = vsel %vm89_vm5, 1.0, %v6029_v20 }
0x15fa   :  { %v1923_v25 = vpop.permute.xlu0 %1922 }
0x15fb   :  { %v1925_v26 = vmul.f32 %v1923_v25, %v1919_v22 }
0x15fd   :  { %1927 = vrot.lane.b32.xlu1 %v1925_v26, %s6031_s6 }
0x15fe   :  { %v1839_v27 = vpop.permute.xlu0 %1838 }
0x15ff   :  { %v1841_v28 = vmul.f32 %v1839_v27, %v1824_v62 }
0x1601   :  { %2117 = vrot.lane.b32.xlu0 %v1841_v28, %s6031_s6  ;;  %v6579_v28 = vsel %vm89_vm5, 0.0, %v6029_v20 }
0x166f   :  { %v1928_v32 = vpop.permute.xlu1 %1927 }
0x1670   :  { %v6495_v33 = vadd.f32 %v1928_v32, %v1920_v30 }
0x1672   :  { %5865 = vtanh.f32 %v6495_v33  ;;  %1938 = vrot.lane.b32.xlu1 %v6495_v33, %s6032_s4 }
0x1673   :  { %v2118_v38 = vpop.permute.xlu0 %2117 }
0x1676   :  { %127 = vperm.xlu1 %5817, %v97_v35  }
0x167c   :  { %v5866_v36 = vpop.eup %5865 }
0x167d   :  { %1933 = vrot.lane.b32.xlu1 %v5866_v36, %s6030_s11 }
0x16e4   :  { %v1939_v37 = vpop.permute.xlu1 %1938 }
0x16e5   :  { %5165 = vmatmul.mubr.msk.f32.vlgmr.msra.gmra.mrb[18].mxu1 %vm183_vm4, %v1939_v37 }
0x16e6   :  { %5603 = vmatpush3.bf16.msra.mxu1 %v6134_v6  ;;  %5186 = vmatprep.mubr.msk.f32.mxu1 %vm6026_vm0, %v6027_v1 }
0x16e7   :  { %5604 = vmatprep.subr.bf16.mxu1 %v6025_v0 }
0x16ea   :  { %5606 = vmatpush3.bf16.msra.mxu1 %v6143_v9 }
0x16eb   :  { %5613 = vmatprep.subr.bf16.mxu1 %v6025_v0 }
0x16ed   :  { %5187 = vmatmul.mubr.msk.f32.vlgmr.msra.gmra.mrb[20].mxu1 %vm183_vm4, %v2118_v38 }
0x16ee   :  { %5615 = vmatpush3.bf16.msra.mxu1 %v6242_v58  ;;  %5208 = vmatprep.mubr.msk.f32.mxu1 %vm6026_vm0, %v6027_v1 }
0x16ef   :  { %5616 = vmatprep.subr.bf16.mxu1 %v6025_v0 }
0x16f2   :  { %5618 = vmatpush3.bf16.msra.mxu1 %v6249_v61 }
0x16f3   :  { %5625 = vmatprep.subr.bf16.mxu1 %v6025_v0 }
0x16f5   :  { %v128_v40 = vpop.permute.xlu1 %127 }
0x16f6   :  { %v151_v47 = vmul.f32 %v6154_v11, %v128_v40 }
0x16f8   :  { %v165_v48 = vadd.f32 %v6160_v13, %v151_v47 }
0x16f9   :  { %v1934_v41 = vpop.permute.xlu1 %1933 }
0x16fa   :  { %v1936_v42 = vmul.f32 %v1934_v41, %v1919_v22 }
0x16fc   :  { %2035 = vrot.lane.b32.xlu1 %v1936_v42, %s6031_s6 }
0x176e   :  { %v2036_v43 = vpop.permute.xlu1 %2035 }
0x176f   :  { %5176 = vmatmul.mubr.msk.f32.vlgmr.msra.gmra.mrb[10].mxu0 %vm183_vm4, %v2036_v43  ;;  %v6035_v43 = vmov 3  }
0x1770   :  { %5609 = vmatpush3.bf16.msra.mxu0 %v6192_v34  ;;  %5197 = vmatprep.mubr.msk.f32.mxu0 %vm6026_vm0, %v6027_v1 }
0x1771   :  { %5610 = vmatprep.subr.bf16.mxu0 %v6025_v0  ;;  %5818 = vset.pattern.permute.xlu1 %v6035_v43 }
0x1774   :  { %5612 = vmatpush3.bf16.msra.mxu0 %v6205_v39 }
0x1775   :  { %5619 = vmatprep.subr.bf16.mxu0 %v6025_v0 }
0x17b8   :  { %v6526_v45 = vpop.f32.mrb[18].mxu1 }
0x17b9   :  { %v5166_v46 = vpop.f32.mrb[19].mxu1 }
0x17c0   :  { %v2187_v49 = vpop.f32.mrb[20].mxu1 }
0x17c1   :  { %v2191_v51 = vadd.f32 %v2187_v49, %v165_v48  ;;  %v5188_v52 = vpop.f32.mrb[21].mxu1  ;;  %v98_v48 = vld [vmem:[%s7140_s0 + $0x30] sm:$0xff] }
0x17c3   :  { %5867 = vtanh.f32 %v2191_v51 }
0x17cd   :  { %v5868_v53 = vpop.eup %5867 }
0x17ce   :  { %v2193_v54 = vmul.f32 %v5868_v53, %v6168_v21 }
0x17d0   :  { %v2194_v55 = vadd.f32 %v2193_v54, %v6171_v23 }
0x17d2   :  { %2197 = vrot.lane.b32.xlu0 %v2194_v55, %s6030_s11  ;;  %v2195_v60 = vmul.f32 %v2194_v55, %v6475_v8 }
0x1844   :  { %v2198_v57 = vpop.permute.xlu0 %2197 }
0x1845   :  { %v2200_v59 = vmul.f32 %v2198_v57, %v2194_v55 }
0x1847   :  { %2202 = vrot.lane.b32.xlu0 %v2200_v59, %s6031_s6  ;;  %v6623_v59 = vld [vmem:[%s7143_s3] ss:$0 sm:$0xff] }
0x18b9   :  { %v2203_v11 = vpop.permute.xlu0 %2202 }
0x18ba   :  { %v6535_v62 = vadd.f32 %v2203_v11, %v2195_v60 }
0x18bc   :  { %2213 = vrot.lane.b32.xlu0 %v6535_v62, %s6032_s4 }
0x192e   :  { %v2214_v13 = vpop.permute.xlu0 %2213 }
0x192f   :  { %5198 = vmatmul.mubr.msk.f32.vlgmr.msra.gmra.mrb[10].mxu0 %vm183_vm4, %v2214_v13 }
0x1930   :  { %5621 = vmatpush3.bf16.msra.mxu0 %v6179_v29  ;;  %5219 = vmatprep.mubr.msk.f32.mxu0 %vm6026_vm0, %v6027_v1 }
0x1931   :  { %5622 = vmatprep.subr.bf16.mxu0 %v6025_v0 }
0x1934   :  { %5624 = vmatpush3.bf16.msra.mxu0 %v6182_v31 }
0x1935   :  { %5631 = vmatprep.subr.bf16.mxu0 %v6025_v0 }
0x1a02   :  { %v2283_v63 = vpop.f32.mrb[10].mxu0 }
0x1a03   :  { %v5768_v3 = vadd.f32 %v6224_v44, %v2283_v63  ;;  %v5199_v5 = vpop.f32.mrb[11].mxu0  ;;  %v6558_v44 = vld [vmem:[%s7148_s8] ss:$0 sm:$0xff] }
0x1a04   :  { %v263_v14 = vmul.f32 0.0, %v6558_v44 }
0x1a05   :  { %5869 = vtanh.f32 %v5768_v3 }
0x1a06   :  { %5871 = vtanh.f32 %v6535_v62  ;;  %v270_v17 = vadd.f32 %v6564_v15, %v263_v14 }
0x1a08   :  { %v529_v18 = vadd.f32 %v6286_v16, %v270_v17 }
0x1a0a   :  { %5873 = vtanh.f32 %v529_v18 }
0x1a0f   :  { %v5870_v7 = vpop.eup %5869 }
0x1a10   :  { %v2288_v8 = vmul.f32 %v5870_v7, %v6168_v21  ;;  %v5872_v12 = vpop.eup %5871 }
0x1a12   :  { %v6550_v10 = vadd.f32 %v2288_v8, %v6171_v23 }
0x1a14   :  { %2292 = vrot.lane.b32.xlu1 %v6550_v10, %s6030_s11  ;;  %v5874_v22 = vpop.eup %5873  ;;  %v2290_v35 = vmul.f32 %v6550_v10, %v6495_v33 }
0x1a15   :  { %v533_v27 = vmul.f32 %v5874_v22, %v6572_v24 }
0x1a17   :  { %v534_v16 = vadd.f32 %v533_v27, %v6579_v28 }
0x1a18   :  { %2208 = vrot.lane.b32.xlu1 %v5872_v12, %s6030_s11 }
0x1a19   :  { %v535_v33 = vmul.f32 0.0, %v534_v16 }
0x1a86   :  { %v2293_v25 = vpop.permute.xlu1 %2292 }
0x1a87   :  { %v2295_v26 = vmul.f32 %v2293_v25, %v6550_v10 }
0x1a89   :  { %2297 = vrot.lane.b32.xlu0 %v2295_v26, %s6031_s6 }
0x1a8a   :  { %v2209_v30 = vpop.permute.xlu1 %2208 }
0x1a8b   :  { %v2211_v32 = vmul.f32 %v2209_v30, %v2194_v55  ;;  %v6617_v55 = vld [vmem:[%s7141_s1] ss:$0 sm:$0xff] }
0x1a8d   :  { %537 = vrot.lane.b32.xlu0 %v534_v16, %s6033_s19 }
0x1a91   :  { %2487 = vrot.lane.b32.xlu0 %v2211_v32, %s6031_s6 }
0x1afb   :  { %v2298_v36 = vpop.permute.xlu0 %2297 }
0x1afc   :  { %v6587_v37 = vadd.f32 %v2298_v36, %v2290_v35 }
0x1afe   :  { %2308 = vrot.lane.b32.xlu1 %v6587_v37, %s6032_s4 }
0x1aff   :  { %v538_v20 = vpop.permute.xlu0 %537 }
0x1b00   :  { %v540_v38 = vmul.f32 %v538_v20, %v534_v16 }
0x1b02   :  { %542 = vrot.lane.b32.xlu1 %v540_v38, %s6034_s20 }
0x1b03   :  { %v2488_v46 = vpop.permute.xlu0 %2487 }
0x1b70   :  { %v2309_v40 = vpop.permute.xlu1 %2308 }
0x1b71   :  { %5209 = vmatmul.mubr.msk.f32.vlgmr.msra.gmra.mrb[22].mxu1 %vm183_vm4, %v2309_v40 }
0x1b72   :  { %5627 = vmatpush3.bf16.msra.mxu1 %v6134_v6  ;;  %5230 = vmatprep.mubr.msk.f32.mxu1 %vm6026_vm0, %v6027_v1 }
0x1b73   :  { %5628 = vmatprep.subr.bf16.mxu1 %v6025_v0 }
0x1b74   :  { %v543_v41 = vpop.permute.xlu1 %542 }
0x1b75   :  { %v545_v42 = vadd.f32 %v543_v41, %v535_v33 }
0x1b76   :  { %5630 = vmatpush3.bf16.msra.mxu1 %v6143_v9 }
0x1b77   :  { %5875 = vtanh.f32 %v545_v42  ;;  %5637 = vmatprep.subr.bf16.mxu1 %v6025_v0 }
0x1b79   :  { %5231 = vmatmul.mubr.msk.f32.vlgmr.msra.gmra.mrb[24].mxu1 %vm183_vm4, %v2488_v46 }
0x1b7a   :  { %5639 = vmatpush3.bf16.msra.mxu1 %v6242_v58  ;;  %5252 = vmatprep.mubr.msk.f32.mxu1 %vm6026_vm0, %v6027_v1 }
0x1b7b   :  { %5640 = vmatprep.subr.bf16.mxu1 %v6025_v0 }
0x1b7e   :  { %5642 = vmatpush3.bf16.msra.mxu1 %v6249_v61 }
0x1b7f   :  { %5649 = vmatprep.subr.bf16.mxu1 %v6025_v0 }
0x1b81   :  { %v5876_v47 = vpop.eup %5875 }
0x1b82   :  { %548 = vrot.lane.b32.xlu0 %v5876_v47, %s6036_s21 }
0x1b86   :  { %132 = vperm.xlu0 %5816, %v98_v48  }
0x1b8a   :  { %5819 = vset.pattern.permute.xlu0 %v6035_v43 }
0x1bf4   :  { %v549_v49 = vpop.permute.xlu0 %548 }
0x1bf5   :  { %v551_v51 = vmul.f32 %v549_v49, %v534_v16 }
0x1bf7   :  { %631 = vperm.xlu1 %5818, %v551_v51  }
0x1c05   :  { %v133_v52 = vpop.permute.xlu0 %132 }
0x1c06   :  { %v152_v57 = vmul.f32 %v6617_v55, %v133_v52 }
0x1c08   :  { %v166_v60 = vadd.f32 %v6623_v59, %v152_v57 }
0x1c44   :  { %v6612_v53 = vpop.f32.mrb[22].mxu1 }
0x1c45   :  { %v5210_v54 = vpop.f32.mrb[23].mxu1 }
0x1c4c   :  { %v2557_v11 = vpop.f32.mrb[24].mxu1 }
0x1c4d   :  { %v2561_v13 = vadd.f32 %v2557_v11, %v166_v60  ;;  %v5232_v63 = vpop.f32.mrb[25].mxu1 }
0x1c4e   :  { %v6672_v63 = vld [vmem:[#allocation5] ss:$0 sm:$0xff] }
0x1c4f   :  { %5877 = vtanh.f32 %v2561_v13 }
0x1c50   :  { %5879 = vtanh.f32 %v6587_v37 }
0x1c59   :  { %v5878_v3 = vpop.eup %5877 }
0x1c5a   :  { %v2563_v5 = vmul.f32 %v5878_v3, %v6168_v21  ;;  %v5880_v8 = vpop.eup %5879 }
0x1c5c   :  { %v6629_v7 = vadd.f32 %v2563_v5, %v6171_v23 }
0x1c5e   :  { %2567 = vrot.lane.b32.xlu0 %v6629_v7, %s6030_s11 }
0x1c62   :  { %2303 = vrot.lane.b32.xlu0 %v5880_v8, %s6030_s11 }
0x1c76   :  { %v632_v12 = vpop.permute.xlu1 %631 }
0x1c77   :  { %v634_v14 = vmul.f32 %v6558_v44, %v632_v12 }
0x1c79   :  { %v635_v17 = vadd.f32 %v6564_v15, %v634_v14 }
0x1c7b   :  { %v899_v18 = vadd.f32 %v6346_v4, %v635_v17 }
0x1c7d   :  { %5881 = vtanh.f32 %v899_v18 }
0x1c87   :  { %v5882_v22 = vpop.eup %5881 }
0x1c88   :  { %v903_v25 = vmul.f32 %v5882_v22, %v6572_v24 }
0x1c8a   :  { %v904_v26 = vadd.f32 %v903_v25, %v6579_v28 }
0x1c8c   :  { %907 = vrot.lane.b32.xlu1 %v904_v26, %s6033_s19  ;;  %v905_v36 = vmul.f32 %v904_v26, %v545_v42 }
0x1cd0   :  { %v2568_v27 = vpop.permute.xlu0 %2567 }
0x1cd1   :  { %v2570_v32 = vmul.f32 %v2568_v27, %v6629_v7 }
0x1cd4   :  { %v2304_v35 = vpop.permute.xlu0 %2303 }
0x1cd5   :  { %v2306_v4 = vmul.f32 %v2304_v35, %v6550_v10  ;;  %v2565_v10 = vmul.f32 %v6629_v7, %v6535_v62 }
0x1cfe   :  { %v908_v16 = vpop.permute.xlu1 %907 }
0x1cff   :  { %v910_v30 = vmul.f32 %v908_v16, %v904_v26 }
0x1d01   :  { %912 = vrot.lane.b32.xlu1 %v910_v30, %s6034_s20 }
0x1d05   :  { %2572 = vrot.lane.b32.xlu1 %v2570_v32, %s6031_s6 }
0x1d09   :  { %2405 = vrot.lane.b32.xlu1 %v2306_v4, %s6031_s6 }
0x1d73   :  { %v913_v20 = vpop.permute.xlu1 %912 }
0x1d74   :  { %v915_v38 = vadd.f32 %v913_v20, %v905_v36 }
0x1d76   :  { %5883 = vtanh.f32 %v915_v38 }
0x1d77   :  { %v2573_v40 = vpop.permute.xlu1 %2572 }
0x1d78   :  { %v6655_v42 = vadd.f32 %v2573_v40, %v2565_v10 }
0x1d7b   :  { %v2406_v33 = vpop.permute.xlu1 %2405 }
0x1d7c   :  { %5220 = vmatmul.mubr.msk.f32.vlgmr.msra.gmra.mrb[12].mxu0 %vm183_vm4, %v2406_v33 }
0x1d7d   :  { %5633 = vmatpush3.bf16.msra.mxu0 %v6192_v34  ;;  %5241 = vmatprep.mubr.msk.f32.mxu0 %vm6026_vm0, %v6027_v1 }
0x1d7e   :  { %5634 = vmatprep.subr.bf16.mxu0 %v6025_v0 }
0x1d80   :  { %v5884_v41 = vpop.eup %5883 }
0x1d81   :  { %918 = vrot.lane.b32.xlu0 %v5884_v41, %s6036_s21  ;;  %5636 = vmatpush3.bf16.msra.mxu0 %v6205_v39 }
0x1d82   :  { %5643 = vmatprep.subr.bf16.mxu0 %v6025_v0 }
0x1d85   :  { %2583 = vrot.lane.b32.xlu0 %v6655_v42, %s6032_s4 }
0x1df3   :  { %v919_v46 = vpop.permute.xlu0 %918 }
0x1df4   :  { %v921_v47 = vmul.f32 %v919_v46, %v904_v26 }
0x1df6   :  { %1001 = vperm.xlu1 %5818, %v921_v47  }
0x1df7   :  { %v2584_v48 = vpop.permute.xlu0 %2583 }
0x1df8   :  { %5242 = vmatmul.mubr.msk.f32.vlgmr.msra.gmra.mrb[12].mxu0 %vm183_vm4, %v2584_v48 }
0x1df9   :  { %5645 = vmatpush3.bf16.msra.mxu0 %v6179_v29  ;;  %5263 = vmatprep.mubr.msk.f32.mxu0 %vm6026_vm0, %v6027_v1 }
0x1dfa   :  { %5646 = vmatprep.subr.bf16.mxu0 %v6025_v0 }
0x1dfd   :  { %5648 = vmatpush3.bf16.msra.mxu0 %v6182_v31 }
0x1dfe   :  { %5655 = vmatprep.subr.bf16.mxu0 %v6025_v0 }
0x1e75   :  { %v1002_v62 = vpop.permute.xlu1 %1001 }
0x1e76   :  { %v1004_v49 = vmul.f32 %v6558_v44, %v1002_v62 }
0x1e78   :  { %v1005_v51 = vadd.f32 %v6564_v15, %v1004_v49 }
0x1e7a   :  { %v1269_v52 = vadd.f32 %v6406_v56, %v1005_v51 }
0x1e7c   :  { %5885 = vtanh.f32 %v1269_v52 }
0x1e86   :  { %v5886_v54 = vpop.eup %5885 }
0x1e87   :  { %v1273_v57 = vmul.f32 %v5886_v54, %v6572_v24 }
0x1e89   :  { %v1274_v60 = vadd.f32 %v1273_v57, %v6579_v28 }
0x1e8b   :  { %1277 = vrot.lane.b32.xlu0 %v1274_v60, %s6033_s19  ;;  %v1275_v17 = vmul.f32 %v1274_v60, %v915_v38 }
0x1ecb   :  { %v2653_v11 = vpop.f32.mrb[12].mxu0 }
0x1ecc   :  { %v5243_v13 = vpop.f32.mrb[13].mxu0  ;;  %v5769_v3 = vadd.f32 %v6672_v63, %v2653_v11 }
0x1ece   :  { %5887 = vtanh.f32 %v5769_v3 }
0x1ecf   :  { %5889 = vtanh.f32 %v6655_v42 }
0x1ed8   :  { %v5888_v5 = vpop.eup %5887 }
0x1ed9   :  { %v2658_v56 = vmul.f32 %v5888_v5, %v6168_v21  ;;  %v5890_v27 = vpop.eup %5889 }
0x1edb   :  { %v6678_v14 = vadd.f32 %v2658_v56, %v6171_v23 }
0x1edd   :  { %v2660_v30 = vmul.f32 %v6678_v14, %v6587_v37 }
0x1efd   :  { %v1278_v8 = vpop.permute.xlu0 %1277 }
0x1efe   :  { %v1280_v12 = vmul.f32 %v1278_v8, %v1274_v60 }
0x1f00   :  { %1282 = vrot.lane.b32.xlu1 %v1280_v12, %s6034_s20 }
0x1f04   :  { %2662 = vrot.lane.b32.xlu1 %v6678_v14, %s6030_s11 }
0x1f72   :  { %v1283_v18 = vpop.permute.xlu1 %1282 }
0x1f73   :  { %v1285_v22 = vadd.f32 %v1283_v18, %v1275_v17 }
0x1f75   :  { %5891 = vtanh.f32 %v1285_v22 }
0x1f76   :  { %v2663_v25 = vpop.permute.xlu1 %2662 }
0x1f77   :  { %v2665_v26 = vmul.f32 %v2663_v25, %v6678_v14 }
0x1f79   :  { %2667 = vrot.lane.b32.xlu1 %v2665_v26, %s6031_s6 }
0x1f7d   :  { %2578 = vrot.lane.b32.xlu1 %v5890_v27, %s6030_s11 }
0x1f7f   :  { %v5892_v16 = vpop.eup %5891 }
0x1f80   :  { %1288 = vrot.lane.b32.xlu0 %v5892_v16, %s6036_s21 }
0x1feb   :  { %v2668_v32 = vpop.permute.xlu1 %2667 }
0x1fec   :  { %v6689_v35 = vadd.f32 %v2668_v32, %v2660_v30 }
0x1fee   :  { %2678 = vrot.lane.b32.xlu1 %v6689_v35, %s6032_s4 }
0x1fef   :  { %v2579_v20 = vpop.permute.xlu1 %2578 }
0x1ff0   :  { %v2581_v47 = vmul.f32 %v2579_v20, %v6629_v7 }
0x1ff2   :  { %v1289_v4 = vpop.permute.xlu0 %1288 }
0x1ff3   :  { %v1291_v36 = vmul.f32 %v1289_v4, %v1274_v60  ;;  %v99_v60 = vld [vmem:[%s7140_s0 + $0x38] sm:$0xff] }
0x1ff5   :  { %1371 = vperm.xlu0 %5819, %v1291_v36  }
0x1ff9   :  { %5820 = vset.pattern.permute.xlu0 %v6028_v2 }
0x2060   :  { %v2679_v38 = vpop.permute.xlu1 %2678 }
0x2061   :  { %5253 = vmatmul.mubr.msk.f32.vlgmr.msra.gmra.mrb[26].mxu1 %vm183_vm4, %v2679_v38 }
0x2062   :  { %5651 = vmatpush3.bf16.msra.mxu1 %v6134_v6  ;;  %5274 = vmatprep.mubr.msk.f32.mxu1 %vm6026_vm0, %v6027_v1 }
0x2063   :  { %5652 = vmatprep.subr.bf16.mxu1 %v6025_v0 }
0x2066   :  { %5654 = vmatpush3.bf16.msra.mxu1 %v6143_v9 }
0x2067   :  { %5661 = vmatprep.subr.bf16.mxu1 %v6025_v0 }
0x2074   :  { %v1372_v37 = vpop.permute.xlu0 %1371 }
0x2075   :  { %v1374_v40 = vmul.f32 %v6558_v44, %v1372_v37 }
0x2077   :  { %v1375_v2 = vadd.f32 %v6564_v15, %v1374_v40 }
0x2079   :  { %v1639_v33 = vadd.f32 %v6466_v50, %v1375_v2 }
0x207b   :  { %5893 = vtanh.f32 %v1639_v33 }
0x2085   :  { %v5894_v41 = vpop.eup %5893 }
0x2086   :  { %v1643_v10 = vmul.f32 %v5894_v41, %v6572_v24 }
0x2088   :  { %v1644_v46 = vadd.f32 %v1643_v10, %v6579_v28 }
0x208a   :  { %1647 = vrot.lane.b32.xlu0 %v1644_v46, %s6033_s19  ;;  %v1645_v51 = vmul.f32 %v1644_v46, %v1285_v22 }
0x208e   :  { %2857 = vrot.lane.b32.xlu0 %v2581_v47, %s6031_s6 }
0x20fc   :  { %v1648_v48 = vpop.permute.xlu0 %1647 }
0x20fd   :  { %v1650_v62 = vmul.f32 %v1648_v48, %v1644_v46 }
0x20ff   :  { %1652 = vrot.lane.b32.xlu1 %v1650_v62, %s6034_s20 }
0x2100   :  { %v2858_v49 = vpop.permute.xlu0 %2857 }
0x2101   :  { %5275 = vmatmul.mubr.msk.f32.vlgmr.msra.gmra.mrb[28].mxu1 %vm183_vm4, %v2858_v49 }
0x2102   :  { %5663 = vmatpush3.bf16.msra.mxu1 %v6242_v58  ;;  %5296 = vmatprep.mubr.msk.f32.mxu1 %vm6026_vm0, %v6027_v1 }
0x2103   :  { %5664 = vmatprep.subr.bf16.mxu1 %v6025_v0 }
0x2106   :  { %5666 = vmatpush3.bf16.msra.mxu1 %v6249_v61 }
0x2107   :  { %5673 = vmatprep.subr.bf16.mxu1 %v6025_v0 }
0x2134   :  { %v6717_v50 = vpop.f32.mrb[26].mxu1 }
0x2135   :  { %v5254_v7 = vpop.f32.mrb[27].mxu1 }
0x2171   :  { %v1653_v52 = vpop.permute.xlu1 %1652 }
0x2172   :  { %v1655_v54 = vadd.f32 %v1653_v52, %v1645_v51 }
0x2174   :  { %5895 = vtanh.f32 %v1655_v54 }
0x217e   :  { %v5896_v57 = vpop.eup %5895 }
0x217f   :  { %1658 = vrot.lane.b32.xlu0 %v5896_v57, %s6036_s21 }
0x2183   :  { %137 = vperm.xlu0 %5820, %v99_v60  }
0x2187   :  { %5821 = vset.pattern.permute.xlu0 %v6035_v43 }
0x21d4   :  { %v2927_v11 = vpop.f32.mrb[28].mxu1 }
0x21d5   :  { %v5276_v13 = vpop.f32.mrb[29].mxu1 }
0x21f1   :  { %v1659_v3 = vpop.permute.xlu0 %1658 }
0x21f2   :  { %v1661_v5 = vmul.f32 %v1659_v3, %v1644_v46 }
0x21f4   :  { %1741 = vperm.xlu1 %5818, %v1661_v5  }
0x2202   :  { %v138_v8 = vpop.permute.xlu0 %137 }
0x2203   :  { %v153_v12 = vmul.f32 %v6617_v55, %v138_v8 }
0x2205   :  { %v167_v56 = vadd.f32 %v6623_v59, %v153_v12 }
0x2207   :  { %v2931_v22 = vadd.f32 %v2927_v11, %v167_v56 }
0x2209   :  { %5897 = vtanh.f32 %v2931_v22 }
0x2213   :  { %v5898_v27 = vpop.eup %5897 }
0x2214   :  { %v2933_v4 = vmul.f32 %v5898_v27, %v6168_v21 }
0x2216   :  { %v6735_v36 = vadd.f32 %v2933_v4, %v6171_v23 }
0x2218   :  { %v2935_v47 = vmul.f32 %v6735_v36, %v6655_v42 }
0x2273   :  { %v1742_v17 = vpop.permute.xlu1 %1741 }
0x2274   :  { %v1744_v18 = vmul.f32 %v6558_v44, %v1742_v17 }
0x2276   :  { %v1745_v25 = vadd.f32 %v6564_v15, %v1744_v18 }
0x2278   :  { %v2009_v26 = vadd.f32 %v6526_v45, %v1745_v25 }
0x227a   :  { %5899 = vtanh.f32 %v2009_v26 }
0x227b   :  { %5901 = vtanh.f32 %v6689_v35 }
0x2284   :  { %v5900_v16 = vpop.eup %5899 }
0x2285   :  { %v2013_v30 = vmul.f32 %v5900_v16, %v6572_v24  ;;  %v5902_v45 = vpop.eup %5901 }
0x2287   :  { %v2014_v32 = vadd.f32 %v2013_v30, %v6579_v28 }
0x2289   :  { %2017 = vrot.lane.b32.xlu1 %v2014_v32, %s6033_s19  ;;  %v2015_v41 = vmul.f32 %v2014_v32, %v1655_v54 }
0x228d   :  { %2937 = vrot.lane.b32.xlu1 %v6735_v36, %s6030_s11 }
0x2291   :  { %2673 = vrot.lane.b32.xlu1 %v5902_v45, %s6030_s11 }
0x22fb   :  { %v2018_v20 = vpop.permute.xlu1 %2017 }
0x22fc   :  { %v2020_v38 = vmul.f32 %v2018_v20, %v2014_v32 }
0x22fe   :  { %2022 = vrot.lane.b32.xlu0 %v2020_v38, %s6034_s20 }
0x22ff   :  { %v2938_v37 = vpop.permute.xlu1 %2937 }
0x2300   :  { %v2940_v40 = vmul.f32 %v2938_v37, %v6735_v36 }
0x2302   :  { %2942 = vrot.lane.b32.xlu0 %v2940_v40, %s6031_s6 }
0x2303   :  { %v2674_v2 = vpop.permute.xlu1 %2673 }
0x2304   :  { %v2676_v33 = vmul.f32 %v2674_v2, %v6678_v14 }
0x2306   :  { %2775 = vrot.lane.b32.xlu1 %v2676_v33, %s6031_s6 }
0x2370   :  { %v2023_v10 = vpop.permute.xlu0 %2022 }
0x2371   :  { %v2025_v46 = vadd.f32 %v2023_v10, %v2015_v41 }
0x2373   :  { %5903 = vtanh.f32 %v2025_v46 }
0x2374   :  { %v2943_v48 = vpop.permute.xlu0 %2942 }
0x2375   :  { %v6747_v62 = vadd.f32 %v2943_v48, %v2935_v47 }
0x2377   :  { %2953 = vrot.lane.b32.xlu1 %v6747_v62, %s6032_s4 }
0x2378   :  { %v2776_v49 = vpop.permute.xlu1 %2775 }
0x2379   :  { %5264 = vmatmul.mubr.msk.f32.vlgmr.msra.gmra.mrb[14].mxu0 %vm183_vm4, %v2776_v49 }
0x237a   :  { %5657 = vmatpush3.bf16.msra.mxu0 %v6192_v34  ;;  %5285 = vmatprep.mubr.msk.f32.mxu0 %vm6026_vm0, %v6027_v1 }
0x237b   :  { %5658 = vmatprep.subr.bf16.mxu0 %v6025_v0 }
0x237d   :  { %v5904_v14 = vpop.eup %5903 }
0x237e   :  { %2028 = vrot.lane.b32.xlu0 %v5904_v14, %s6036_s21  ;;  %5660 = vmatpush3.bf16.msra.mxu0 %v6205_v39 }
0x237f   :  { %5667 = vmatprep.subr.bf16.mxu0 %v6025_v0 }
0x23e9   :  { %v2954_v42 = vpop.permute.xlu1 %2953 }
0x23ea   :  { %5286 = vmatmul.mubr.msk.f32.vlgmr.msra.gmra.mrb[14].mxu0 %vm183_vm4, %v2954_v42 }
0x23eb   :  { %5669 = vmatpush3.bf16.msra.mxu0 %v6179_v29  ;;  %5307 = vmatprep.mubr.msk.f32.mxu0 %vm6026_vm0, %v6027_v1 }
0x23ec   :  { %5670 = vmatprep.subr.bf16.mxu0 %v6025_v0 }
0x23ef   :  { %5672 = vmatpush3.bf16.msra.mxu0 %v6182_v31 }
0x23f0   :  { %v2029_v7 = vpop.permute.xlu0 %2028  ;;  %5679 = vmatprep.subr.bf16.mxu0 %v6025_v0 }
0x23f1   :  { %v2031_v51 = vmul.f32 %v2029_v7, %v2014_v32 }
0x23f3   :  { %2111 = vperm.xlu0 %5821, %v2031_v51  }
0x2472   :  { %v2112_v52 = vpop.permute.xlu0 %2111 }
0x2473   :  { %v2114_v54 = vmul.f32 %v6558_v44, %v2112_v52 }
0x2475   :  { %v2115_v57 = vadd.f32 %v6564_v15, %v2114_v54 }
0x2477   :  { %v2379_v60 = vadd.f32 %v6612_v53, %v2115_v57 }
0x2479   :  { %5905 = vtanh.f32 %v2379_v60 }
0x2483   :  { %v5906_v11 = vpop.eup %5905 }
0x2484   :  { %v2383_v13 = vmul.f32 %v5906_v11, %v6572_v24 }
0x2486   :  { %v2384_v3 = vadd.f32 %v2383_v13, %v6579_v28 }
0x2488   :  { %2387 = vrot.lane.b32.xlu1 %v2384_v3, %s6033_s19  ;;  %v2385_v25 = vmul.f32 %v2384_v3, %v2025_v46 }
0x24bd   :  { %v3023_v5 = vpop.f32.mrb[14].mxu0 }
0x24be   :  { %v5287_v8 = vpop.f32.mrb[15].mxu0  ;;  %v5770_v12 = vadd.f32 %v6672_v63, %v3023_v5 }
0x24c0   :  { %5907 = vtanh.f32 %v5770_v12 }
0x24ca   :  { %v5908_v56 = vpop.eup %5907 }
0x24cb   :  { %v3028_v22 = vmul.f32 %v5908_v56, %v6168_v21 }
0x24cd   :  { %v6776_v53 = vadd.f32 %v3028_v22, %v6171_v23 }
0x24cf   :  { %v3030_v38 = vmul.f32 %v6776_v53, %v6689_v35 }
0x24fa   :  { %v2388_v17 = vpop.permute.xlu1 %2387 }
0x24fb   :  { %v2390_v18 = vmul.f32 %v2388_v17, %v2384_v3 }
0x24fd   :  { %2392 = vrot.lane.b32.xlu1 %v2390_v18, %s6034_s20 }
0x2501   :  { %3032 = vrot.lane.b32.xlu1 %v6776_v53, %s6030_s11 }
0x256f   :  { %v2393_v26 = vpop.permute.xlu1 %2392 }
0x2570   :  { %v2395_v27 = vadd.f32 %v2393_v26, %v2385_v25  ;;  %v6037_v26 = vmov 1  }
0x2572   :  { %5909 = vtanh.f32 %v2395_v27 }
0x2573   :  { %v3033_v16 = vpop.permute.xlu1 %3032 }
0x2574   :  { %v3035_v30 = vmul.f32 %v3033_v16, %v6776_v53 }
0x2576   :  { %3037 = vrot.lane.b32.xlu1 %v3035_v30, %s6031_s6 }
0x257c   :  { %v5910_v32 = vpop.eup %5909 }
0x257d   :  { %2398 = vrot.lane.b32.xlu0 %v5910_v32, %s6036_s21 }
0x25e8   :  { %v3038_v20 = vpop.permute.xlu1 %3037 }
0x25e9   :  { %v6785_v37 = vadd.f32 %v3038_v20, %v3030_v38 }
0x25ef   :  { %v2399_v4 = vpop.permute.xlu0 %2398 }
0x25f0   :  { %v2401_v45 = vmul.f32 %v2399_v4, %v2384_v3 }
0x25f2   :  { %2481 = vperm.xlu0 %5821, %v2401_v45  }
0x25f6   :  { %3048 = vrot.lane.b32.xlu0 %v6785_v37, %s6032_s4 }
0x2671   :  { %v2482_v40 = vpop.permute.xlu0 %2481 }
0x2672   :  { %v2484_v2 = vmul.f32 %v6558_v44, %v2482_v40 }
0x2674   :  { %v2485_v33 = vadd.f32 %v6564_v15, %v2484_v2 }
0x2675   :  { %v3049_v41 = vpop.permute.xlu0 %3048 }
0x2676   :  { %v2749_v10 = vadd.f32 %v6717_v50, %v2485_v33  ;;  %5297 = vmatmul.mubr.msk.f32.vlgmr.msra.gmra.mrb[30].mxu1 %vm183_vm4, %v3049_v41 }
0x2677   :  { %5675 = vmatpush3.bf16.msra.mxu1 %v6134_v6  ;;  %5318 = vmatprep.mubr.msk.f32.mxu1 %vm6026_vm0, %v6027_v1 }
0x2678   :  { %5911 = vtanh.f32 %v2749_v10  ;;  %5676 = vmatprep.subr.bf16.mxu1 %v6025_v0 }
0x2679   :  { %5913 = vtanh.f32 %v6747_v62 }
0x267b   :  { %5678 = vmatpush3.bf16.msra.mxu1 %v6143_v9 }
0x267c   :  { %5685 = vmatprep.subr.bf16.mxu1 %v6025_v0 }
0x2682   :  { %v5912_v35 = vpop.eup %5911 }
0x2683   :  { %v2753_v46 = vmul.f32 %v5912_v35, %v6572_v24  ;;  %v5914_v49 = vpop.eup %5913 }
0x2685   :  { %v2754_v47 = vadd.f32 %v2753_v46, %v6579_v28 }
0x2687   :  { %2757 = vrot.lane.b32.xlu1 %v2754_v47, %s6033_s19  ;;  %v2755_v7 = vmul.f32 %v2754_v47, %v2395_v27 }
0x26f9   :  { %v2758_v50 = vpop.permute.xlu1 %2757 }
0x26fa   :  { %v2760_v48 = vmul.f32 %v2758_v50, %v2754_v47 }
0x26fc   :  { %2762 = vrot.lane.b32.xlu0 %v2760_v48, %s6034_s20 }
0x2700   :  { %2948 = vrot.lane.b32.xlu0 %v5914_v49, %s6030_s11 }
0x2749   :  { %v3118_v14 = vpop.f32.mrb[30].mxu1 }
0x274a   :  { %v5298_v42 = vpop.f32.mrb[31].mxu1 }
0x276e   :  { %v2763_v51 = vpop.permute.xlu0 %2762 }
0x276f   :  { %v2765_v52 = vadd.f32 %v2763_v51, %v2755_v7 }
0x2771   :  { %5915 = vtanh.f32 %v2765_v52 }
0x2772   :  { %v2949_v54 = vpop.permute.xlu0 %2948 }
0x2773   :  { %v2951_v57 = vmul.f32 %v2949_v54, %v6735_v36 }
0x2775   :  { %3232 = vrot.lane.b32.xlu0 %v2951_v57, %s6031_s6 }
0x277b   :  { %v5916_v60 = vpop.eup %5915 }
0x277c   :  { %2768 = vrot.lane.b32.xlu1 %v5916_v60, %s6036_s21 }
0x27e7   :  { %v3233_v11 = vpop.permute.xlu0 %3232 }
0x27e8   :  { %5319 = vmatmul.mubr.msk.f32.vlgmr.msra.gmra.mrb[32].mxu1 %vm183_vm4, %v3233_v11 }
0x27e9   :  { %5687 = vmatpush3.bf16.msra.mxu1 %v6242_v58  ;;  %5340 = vmatprep.mubr.msk.f32.mxu1 %vm6026_vm0, %v6027_v1 }
0x27ea   :  { %5688 = vmatprep.subr.bf16.mxu1 %v6025_v0 }
0x27ed   :  { %5690 = vmatpush3.bf16.msra.mxu1 %v6249_v61 }
0x27ee   :  { %v2769_v13 = vpop.permute.xlu1 %2768  ;;  %5697 = vmatprep.subr.bf16.mxu1 %v6025_v0 }
0x27ef   :  { %v2771_v36 = vmul.f32 %v2769_v13, %v2754_v47 }
0x27f1   :  { %2851 = vperm.xlu1 %5818, %v2771_v36  }
0x27f5   :  { %5822 = vset.pattern.permute.xlu1 %v6037_v26 }
0x2870   :  { %v2852_v3 = vpop.permute.xlu1 %2851 }
0x2871   :  { %v2854_v5 = vmul.f32 %v6558_v44, %v2852_v3 }
0x2873   :  { %v2855_v8 = vadd.f32 %v6564_v15, %v2854_v5 }
0x2875   :  { %v3119_v12 = vadd.f32 %v3118_v14, %v2855_v8 }
0x2877   :  { %5917 = vtanh.f32 %v3119_v12 }
0x2878   :  { %5919 = vtanh.f32 %v6785_v37 }
0x2881   :  { %v5918_v56 = vpop.eup %5917 }
0x2882   :  { %v3123_v17 = vmul.f32 %v5918_v56, %v6572_v24  ;;  %v5920_v45 = vpop.eup %5919 }
0x2884   :  { %v6819_v18 = vadd.f32 %v3123_v17, %v6579_v28 }
0x2886   :  { %3127 = vrot.lane.b32.xlu1 %v6819_v18, %s6033_s19  ;;  %v3125_v30 = vmul.f32 %v6819_v18, %v2765_v52 }
0x28bb   :  { %v3302_v22 = vpop.f32.mrb[32].mxu1 }
0x28bc   :  { %v5320_v25 = vpop.f32.mrb[33].mxu1 }
0x28f8   :  { %v3128_v27 = vpop.permute.xlu1 %3127 }
0x28f9   :  { %v3130_v16 = vmul.f32 %v3128_v27, %v6819_v18 }
0x28fb   :  { %3132 = vrot.lane.b32.xlu0 %v3130_v16, %s6034_s20 }
0x296d   :  { %v3133_v32 = vpop.permute.xlu0 %3132 }
0x296e   :  { %v6828_v4 = vadd.f32 %v3133_v32, %v3125_v30 }
0x2970   :  { %3144 = vperm.xlu1 %5822, %v6828_v4  }
0x2974   :  { %3043 = vrot.lane.b32.xlu1 %v5920_v45, %s6030_s11 }
0x29ef   :  { %v3145_v20 = vpop.permute.xlu1 %3144 }
0x29f0   :  { %v3147_v38 = vmul.f32 %v6617_v55, %v3145_v20 }
0x29f2   :  { %v3148_v40 = vadd.f32 %v6623_v59, %v3147_v38 }
0x29f3   :  { %v3044_v2 = vpop.permute.xlu1 %3043 }
0x29f4   :  { %v3306_v33 = vadd.f32 %v3302_v22, %v3148_v40  ;;  %v3046_v41 = vmul.f32 %v3044_v2, %v6776_v53 }
0x29f6   :  { %5921 = vtanh.f32 %v3306_v33  ;;  %3150 = vrot.lane.b32.xlu1 %v3046_v41, %s6031_s6 }
0x2a00   :  { %v5922_v10 = vpop.eup %5921 }
0x2a01   :  { %v3308_v35 = vmul.f32 %v5922_v10, %v6168_v21 }
0x2a03   :  { %v3309_v46 = vadd.f32 %v3308_v35, %v6171_v23 }
0x2a05   :  { %3312 = vrot.lane.b32.xlu0 %v3309_v46, %s6030_s11  ;;  %v3310_v48 = vmul.f32 %v3309_v46, %v6747_v62 }
0x2a68   :  { %v3151_v47 = vpop.permute.xlu1 %3150 }
0x2a69   :  { %5308 = vmatmul.mubr.msk.f32.vlgmr.msra.gmra.mrb[16].mxu0 %vm183_vm4, %v3151_v47 }
0x2a6a   :  { %5681 = vmatpush3.bf16.msra.mxu0 %v6192_v34  ;;  %5329 = vmatprep.mubr.msk.f32.mxu0 %vm6026_vm0, %v6027_v1 }
0x2a6b   :  { %5682 = vmatprep.subr.bf16.mxu0 %v6025_v0 }
0x2a6e   :  { %5684 = vmatpush3.bf16.msra.mxu0 %v6205_v39 }
0x2a6f   :  { %5691 = vmatprep.subr.bf16.mxu0 %v6025_v0 }
0x2a77   :  { %v3313_v53 = vpop.permute.xlu0 %3312 }
0x2a78   :  { %v3315_v50 = vmul.f32 %v3313_v53, %v3309_v46 }
0x2a7a   :  { %3317 = vrot.lane.b32.xlu0 %v3315_v50, %s6031_s6 }
0x2aec   :  { %v3318_v49 = vpop.permute.xlu0 %3317 }
0x2aed   :  { %v6848_v14 = vadd.f32 %v3318_v49, %v3310_v48 }
0x2aef   :  { %3328 = vrot.lane.b32.xlu0 %v6848_v14, %s6032_s4 }
0x2b61   :  { %v3329_v42 = vpop.permute.xlu0 %3328 }
0x2b62   :  { %5330 = vmatmul.mubr.msk.f32.vlgmr.msra.gmra.mrb[16].mxu0 %vm183_vm4, %v3329_v42 }
0x2b63   :  { %5693 = vmatpush3.bf16.msra.mxu0 %v6179_v29  ;;  %5351 = vmatprep.mubr.msk.f32.mxu0 %vm6026_vm0, %v6027_v1 }
0x2b64   :  { %5694 = vmatprep.subr.bf16.mxu0 %v6025_v0 }
0x2b67   :  { %5696 = vmatpush3.bf16.msra.mxu0 %v6182_v31 }
0x2b68   :  { %5703 = vmatprep.subr.bf16.mxu0 %v6025_v0 }
0x2c35   :  { %v3398_v62 = vpop.f32.mrb[16].mxu0 }
0x2c36   :  { %v5771_v7 = vadd.f32 %v6672_v63, %v3398_v62  ;;  %v5331_v51 = vpop.f32.mrb[17].mxu0 }
0x2c38   :  { %5923 = vtanh.f32 %v5771_v7 }
0x2c39   :  { %5925 = vtanh.f32 %v6828_v4 }
0x2c3a   :  { %5927 = vtanh.f32 %v6848_v14 }
0x2c42   :  { %v5924_v52 = vpop.eup %5923 }
0x2c43   :  { %v3403_v54 = vmul.f32 %v5924_v52, %v6168_v21  ;;  %v5926_v13 = vpop.eup %5925 }
0x2c44   :  { %v5928_v56 = vpop.eup %5927 }
0x2c45   :  { %v6862_v57 = vadd.f32 %v3403_v54, %v6171_v23 }
0x2c47   :  { %3407 = vrot.lane.b32.xlu1 %v6862_v57, %s6030_s11  ;;  %v3405_v36 = vmul.f32 %v6862_v57, %v6785_v37 }
0x2cb9   :  { %v3408_v60 = vpop.permute.xlu1 %3407 }
0x2cba   :  { %v3410_v11 = vmul.f32 %v3408_v60, %v6862_v57 }
0x2cbc   :  { %3412 = vrot.lane.b32.xlu0 %v3410_v11, %s6031_s6 }
0x2cc0   :  { %3138 = vrot.lane.b32.xlu0 %v5926_v13, %s6036_s21 }
0x2d2e   :  { %v3413_v3 = vpop.permute.xlu0 %3412 }
0x2d2f   :  { %v6873_v5 = vadd.f32 %v3413_v3, %v3405_v36 }
0x2d31   :  { %3423 = vrot.lane.b32.xlu1 %v6873_v5, %s6032_s4 }
0x2d32   :  { %v3139_v8 = vpop.permute.xlu0 %3138 }
0x2d33   :  { %v3141_v12 = vmul.f32 %v3139_v8, %v6819_v18 }
0x2d35   :  { %3226 = vperm.xlu0 %5821, %v3141_v12   ;;  %3323 = vrot.lane.b32.xlu1 %v5928_v56, %s6030_s11 }
0x2d39   :  { %5823 = vset.pattern.permute.xlu0 %v6037_v26 }
0x2da3   :  { %v3424_v17 = vpop.permute.xlu1 %3423 }
0x2da4   :  { %5341 = vmatmul.mubr.msk.f32.vlgmr.msra.gmra.mrb[34].mxu1 %vm183_vm4, %v3424_v17 }
0x2da5   :  { %5699 = vmatpush3.bf16.msra.mxu1 %v6134_v6  ;;  %5362 = vmatprep.mubr.msk.f32.mxu1 %vm6026_vm0, %v6027_v1 }
0x2da6   :  { %5700 = vmatprep.subr.bf16.mxu1 %v6025_v0 }
0x2da7   :  { %v3324_v37 = vpop.permute.xlu1 %3323 }
0x2da8   :  { %v3326_v22 = vmul.f32 %v3324_v37, %v3309_v46 }
0x2da9   :  { %5702 = vmatpush3.bf16.msra.mxu1 %v6143_v9 }
0x2daa   :  { %3612 = vrot.lane.b32.xlu1 %v3326_v22, %s6031_s6  ;;  %5709 = vmatprep.subr.bf16.mxu1 %v6025_v0 }
0x2db4   :  { %v3227_v25 = vpop.permute.xlu0 %3226 }
0x2db5   :  { %v3229_v27 = vmul.f32 %v6558_v44, %v3227_v25 }
0x2db7   :  { %v3230_v16 = vadd.f32 %v6564_v15, %v3229_v27 }
0x2e1c   :  { %v3613_v18 = vpop.permute.xlu1 %3612 }
0x2e1d   :  { %5363 = vmatmul.mubr.msk.f32.vlgmr.msra.gmra.mrb[36].mxu1 %vm183_vm4, %v3613_v18 }
0x2e1e   :  { %5711 = vmatpush3.bf16.msra.mxu1 %v6242_v58  ;;  %5384 = vmatprep.mubr.msk.f32.mxu1 %vm6026_vm0, %v6027_v1 }
0x2e1f   :  { %5712 = vmatprep.subr.bf16.mxu1 %v6025_v0 }
0x2e22   :  { %5714 = vmatpush3.bf16.msra.mxu1 %v6249_v61 }
0x2e23   :  { %5721 = vmatprep.subr.bf16.mxu1 %v6025_v0 }
0x2e77   :  { %v3493_v30 = vpop.f32.mrb[34].mxu1 }
0x2e78   :  { %v3494_v32 = vadd.f32 %v3493_v30, %v3230_v16  ;;  %v5342_v45 = vpop.f32.mrb[35].mxu1 }
0x2e7a   :  { %5929 = vtanh.f32 %v3494_v32 }
0x2e84   :  { %v5930_v20 = vpop.eup %5929 }
0x2e85   :  { %v3498_v38 = vmul.f32 %v5930_v20, %v6572_v24 }
0x2e87   :  { %v6899_v40 = vadd.f32 %v3498_v38, %v6579_v28 }
0x2e89   :  { %3502 = vrot.lane.b32.xlu0 %v6899_v40, %s6033_s19  ;;  %v3500_v15 = vmul.f32 %v6899_v40, %v6828_v4 }
0x2ef0   :  { %v3682_v2 = vpop.f32.mrb[36].mxu1 }
0x2ef1   :  { %v5364_v33 = vpop.f32.mrb[37].mxu1 }
0x2efb   :  { %v3503_v41 = vpop.permute.xlu0 %3502 }
0x2efc   :  { %v3505_v44 = vmul.f32 %v3503_v41, %v6899_v40  ;;  %v6987_v41 = vld [vmem:[%s7149_s9] ss:$0 sm:$0xff] }
0x2efe   :  { %3507 = vrot.lane.b32.xlu1 %v3505_v44, %s6034_s20 }
0x2f70   :  { %v3508_v10 = vpop.permute.xlu1 %3507 }
0x2f71   :  { %v6907_v35 = vadd.f32 %v3508_v10, %v3500_v15 }
0x2f73   :  { %3522 = vperm.xlu0 %5823, %v6907_v35  }
0x2f77   :  { %5824 = vset.pattern.permute.xlu0 %v6035_v43 }
0x2ff2   :  { %v6911_v46 = vpop.permute.xlu0 %3522 }
0x2ff3   :  { %v3527_v47 = vmul.f32 %v6617_v55, %v6911_v46 }
0x2ff5   :  { %v3528_v53 = vadd.f32 %v6623_v59, %v3527_v47 }
0x2ff7   :  { %v3686_v50 = vadd.f32 %v3682_v2, %v3528_v53  ;;  %v6981_v2 = vld [vmem:[%s7148_s8] ss:$0 sm:$0xff] }
0x2ff9   :  { %5931 = vtanh.f32 %v3686_v50 }
0x2ffa   :  { %5933 = vtanh.f32 %v6873_v5 }
0x3003   :  { %v5932_v48 = vpop.eup %5931 }
0x3004   :  { %v3688_v4 = vmul.f32 %v5932_v48, %v6168_v21  ;;  %v5934_v42 = vpop.eup %5933 }
0x3006   :  { %v3689_v49 = vadd.f32 %v3688_v4, %v6171_v23 }
0x3008   :  { %3692 = vrot.lane.b32.xlu1 %v3689_v49, %s6030_s11  ;;  %v3690_v54 = vmul.f32 %v3689_v49, %v6848_v14 }
0x300c   :  { %3418 = vrot.lane.b32.xlu1 %v5934_v42, %s6030_s11 }
0x307a   :  { %v3693_v62 = vpop.permute.xlu1 %3692 }
0x307b   :  { %v3695_v7 = vmul.f32 %v3693_v62, %v3689_v49 }
0x307d   :  { %3697 = vrot.lane.b32.xlu0 %v3695_v7, %s6031_s6 }
0x307e   :  { %v3419_v51 = vpop.permute.xlu1 %3418 }
0x307f   :  { %v3421_v52 = vmul.f32 %v3419_v51, %v6862_v57 }
0x3081   :  { %3530 = vrot.lane.b32.xlu1 %v3421_v52, %s6031_s6 }
0x30ef   :  { %v3698_v60 = vpop.permute.xlu0 %3697 }
0x30f0   :  { %v6925_v11 = vadd.f32 %v3698_v60, %v3690_v54 }
0x30f2   :  { %3708 = vrot.lane.b32.xlu0 %v6925_v11, %s6032_s4 }
0x30f3   :  { %v3531_v13 = vpop.permute.xlu1 %3530 }
0x30f4   :  { %5352 = vmatmul.mubr.msk.f32.vlgmr.msra.gmra.mrb[18].mxu0 %vm183_vm4, %v3531_v13 }
0x30f5   :  { %5705 = vmatpush3.bf16.msra.mxu0 %v6192_v34  ;;  %5373 = vmatprep.mubr.msk.f32.mxu0 %vm6026_vm0, %v6027_v1 }
0x30f6   :  { %5706 = vmatprep.subr.bf16.mxu0 %v6025_v0 }
0x30f9   :  { %5708 = vmatpush3.bf16.msra.mxu0 %v6205_v39 }
0x30fa   :  { %5715 = vmatprep.subr.bf16.mxu0 %v6025_v0 }
0x3164   :  { %v3709_v14 = vpop.permute.xlu0 %3708 }
0x3165   :  { %5374 = vmatmul.mubr.msk.f32.vlgmr.msra.gmra.mrb[18].mxu0 %vm183_vm4, %v3709_v14 }
0x3166   :  { %5717 = vmatpush3.bf16.msra.mxu0 %v6179_v29  ;;  %5395 = vmatprep.mubr.msk.f32.mxu0 %vm6026_vm0, %v6027_v1 }
0x3167   :  { %5718 = vmatprep.subr.bf16.mxu0 %v6025_v0 }
0x316a   :  { %5720 = vmatpush3.bf16.msra.mxu0 %v6182_v31 }
0x316b   :  { %5727 = vmatprep.subr.bf16.mxu0 %v6025_v0 }
0x3238   :  { %v3778_v57 = vpop.f32.mrb[18].mxu0 }
0x3239   :  { %v5772_v36 = vadd.f32 %v6672_v63, %v3778_v57  ;;  %v5375_v3 = vpop.f32.mrb[19].mxu0 }
0x323b   :  { %5935 = vtanh.f32 %v5772_v36 }
0x323c   :  { %5937 = vtanh.f32 %v6907_v35 }
0x323d   :  { %5939 = vtanh.f32 %v6925_v11 }
0x3245   :  { %v5936_v8 = vpop.eup %5935 }
0x3246   :  { %v3783_v12 = vmul.f32 %v5936_v8, %v6168_v21  ;;  %v5938_v22 = vpop.eup %5937 }
0x3247   :  { %v5940_v32 = vpop.eup %5939 }
0x3248   :  { %v6946_v56 = vadd.f32 %v3783_v12, %v6171_v23 }
0x324a   :  { %3787 = vrot.lane.b32.xlu1 %v6946_v56, %s6030_s11  ;;  %v3785_v18 = vmul.f32 %v6946_v56, %v6873_v5 }
0x32bc   :  { %v3788_v17 = vpop.permute.xlu1 %3787 }
0x32bd   :  { %v3790_v37 = vmul.f32 %v3788_v17, %v6946_v56 }
0x32bf   :  { %3792 = vrot.lane.b32.xlu0 %v3790_v37, %s6031_s6 }
0x32c3   :  { %3513 = vrot.lane.b32.xlu0 %v5938_v22, %s6036_s21 }
0x3331   :  { %v3793_v25 = vpop.permute.xlu0 %3792 }
0x3332   :  { %v6957_v27 = vadd.f32 %v3793_v25, %v3785_v18 }
0x3334   :  { %3803 = vrot.lane.b32.xlu1 %v6957_v27, %s6032_s4 }
0x3335   :  { %v3514_v16 = vpop.permute.xlu0 %3513 }
0x3336   :  { %v3516_v30 = vmul.f32 %v3514_v16, %v6899_v40 }
0x3338   :  { %3606 = vperm.xlu0 %5824, %v3516_v30   ;;  %3703 = vrot.lane.b32.xlu1 %v5940_v32, %s6030_s11 }
0x33a6   :  { %v3804_v45 = vpop.permute.xlu1 %3803 }
0x33a7   :  { %5385 = vmatmul.mubr.msk.f32.vlgmr.msra.gmra.mrb[38].mxu1 %vm183_vm4, %v3804_v45 }
0x33a8   :  { %5723 = vmatpush3.bf16.msra.mxu1 %v6134_v6  ;;  %5406 = vmatprep.mubr.msk.f32.mxu1 %vm6026_vm0, %v6027_v1 }
0x33a9   :  { %5724 = vmatprep.subr.bf16.mxu1 %v6025_v0 }
0x33aa   :  { %v3704_v5 = vpop.permute.xlu1 %3703 }
0x33ab   :  { %v3706_v20 = vmul.f32 %v3704_v5, %v3689_v49 }
0x33ac   :  { %5726 = vmatpush3.bf16.msra.mxu1 %v6143_v9 }
0x33ad   :  { %3992 = vrot.lane.b32.xlu1 %v3706_v20, %s6031_s6  ;;  %5733 = vmatprep.subr.bf16.mxu1 %v6025_v0 }
0x33b7   :  { %v3607_v40 = vpop.permute.xlu0 %3606 }
0x33b8   :  { %v3609_v33 = vmul.f32 %v6981_v2, %v3607_v40 }
0x33ba   :  { %v3610_v44 = vadd.f32 %v6987_v41, %v3609_v33 }
0x341f   :  { %v3993_v38 = vpop.permute.xlu1 %3992 }
0x3420   :  { %5407 = vmatmul.mubr.msk.f32.vlgmr.msra.gmra.mrb[40].mxu1 %vm183_vm4, %v3993_v38 }
0x3421   :  { %5735 = vmatpush3.bf16.msra.mxu1 %v6242_v58  ;;  %5428 = vmatprep.mubr.msk.f32.mxu1 %vm6026_vm0, %v6027_v1 }
0x3422   :  { %5736 = vmatprep.subr.bf16.mxu1 %v6025_v0 }
0x3425   :  { %5738 = vmatpush3.bf16.msra.mxu1 %v6249_v61 }
0x3426   :  { %5745 = vmatprep.subr.bf16.mxu1 %v6025_v0 }
0x347a   :  { %v3873_v15 = vpop.f32.mrb[38].mxu1 }
0x347b   :  { %v3874_v10 = vadd.f32 %v3873_v15, %v3610_v44  ;;  %v5386_v47 = vpop.f32.mrb[39].mxu1 }
0x347d   :  { %5941 = vtanh.f32 %v3874_v10 }
0x347e   :  { %5943 = vtanh.f32 %v6957_v27 }
0x3487   :  { %v5942_v53 = vpop.eup %5941 }
0x3488   :  { %v3878_v50 = vmul.f32 %v5942_v53, %v6572_v24  ;;  %v5944_v54 = vpop.eup %5943 }
0x348a   :  { %v6992_v48 = vadd.f32 %v3878_v50, %v6579_v28 }
0x348c   :  { %3882 = vrot.lane.b32.xlu1 %v6992_v48, %s6033_s19  ;;  %v3880_v7 = vmul.f32 %v6992_v48, %v6907_v35 }
0x34f3   :  { %v4062_v4 = vpop.f32.mrb[40].mxu1 }
0x34f4   :  { %v5408_v49 = vpop.f32.mrb[41].mxu1 }
0x34fe   :  { %v3883_v42 = vpop.permute.xlu1 %3882 }
0x34ff   :  { %v3885_v62 = vmul.f32 %v3883_v42, %v6992_v48 }
0x3501   :  { %3887 = vrot.lane.b32.xlu0 %v3885_v62, %s6034_s20 }
0x3573   :  { %v3888_v51 = vpop.permute.xlu0 %3887 }
0x3574   :  { %v7001_v52 = vadd.f32 %v3888_v51, %v3880_v7 }
0x3576   :  { %3902 = vperm.xlu1 %5822, %v7001_v52  }
0x357a   :  { %3798 = vrot.lane.b32.xlu1 %v5944_v54, %s6030_s11 }
0x357b   :  { %5826 = vset.pattern.permute.xlu1 %v6035_v43 }
0x35f5   :  { %v7006_v60 = vpop.permute.xlu1 %3902 }
0x35f6   :  { %v3907_v13 = vmul.f32 %v6617_v55, %v7006_v60 }
0x35f8   :  { %v3908_v14 = vadd.f32 %v6623_v59, %v3907_v13 }
0x35f9   :  { %v3799_v57 = vpop.permute.xlu1 %3798 }
0x35fa   :  { %v4066_v36 = vadd.f32 %v4062_v4, %v3908_v14  ;;  %v3801_v35 = vmul.f32 %v3799_v57, %v6946_v56  ;;  %v5970_v14 = vld [vmem:[%s7141_s1] ss:$0 sm:$0xff] }
0x35fc   :  { %5945 = vtanh.f32 %v4066_v36  ;;  %3910 = vrot.lane.b32.xlu1 %v3801_v35, %s6031_s6  ;;  %v5971_v36 = vld [vmem:[%s7143_s3] ss:$0 sm:$0xff] }
0x3606   :  { %v5946_v3 = vpop.eup %5945 }
0x3607   :  { %v4068_v8 = vmul.f32 %v5946_v3, %v6168_v21 }
0x3609   :  { %v4069_v12 = vadd.f32 %v4068_v8, %v6171_v23 }
0x360b   :  { %4072 = vrot.lane.b32.xlu0 %v4069_v12, %s6030_s11  ;;  %v4070_v56 = vmul.f32 %v4069_v12, %v6925_v11 }
0x366e   :  { %v3911_v43 = vpop.permute.xlu1 %3910 }
0x366f   :  { %5396 = vmatmul.mubr.msk.f32.vlgmr.msra.gmra.mrb[20].mxu0 %vm183_vm4, %v3911_v43 }
0x3670   :  { %5729 = vmatpush3.bf16.msra.mxu0 %v6192_v34  ;;  %5417 = vmatprep.mubr.msk.f32.mxu0 %vm6026_vm0, %v6027_v1 }
0x3671   :  { %5730 = vmatprep.subr.bf16.mxu0 %v6025_v0 }
0x3674   :  { %5732 = vmatpush3.bf16.msra.mxu0 %v6205_v39 }
0x3675   :  { %5739 = vmatprep.subr.bf16.mxu0 %v6025_v0 }
0x367d   :  { %v4073_v55 = vpop.permute.xlu0 %4072 }
0x367e   :  { %v4075_v59 = vmul.f32 %v4073_v55, %v4069_v12 }
0x3680   :  { %4077 = vrot.lane.b32.xlu0 %v4075_v59, %s6031_s6 }
0x36f2   :  { %v4078_v17 = vpop.permute.xlu0 %4077 }
0x36f3   :  { %v7025_v37 = vadd.f32 %v4078_v17, %v4070_v56 }
0x36f5   :  { %4088 = vrot.lane.b32.xlu0 %v7025_v37, %s6032_s4 }
0x3767   :  { %v4089_v22 = vpop.permute.xlu0 %4088 }
0x3768   :  { %5418 = vmatmul.mubr.msk.f32.vlgmr.msra.gmra.mrb[20].mxu0 %vm183_vm4, %v4089_v22 }
0x3769   :  { %5741 = vmatpush3.bf16.msra.mxu0 %v6179_v29  ;;  %5439 = vmatprep.mubr.msk.f32.mxu0 %vm6026_vm0, %v6027_v1 }
0x376a   :  { %5742 = vmatprep.subr.bf16.mxu0 %v6025_v0 }
0x376d   :  { %5744 = vmatpush3.bf16.msra.mxu0 %v6182_v31 }
0x376e   :  { %5751 = vmatprep.subr.bf16.mxu0 %v6025_v0 }
0x383b   :  { %v4158_v11 = vpop.f32.mrb[20].mxu0 }
0x383c   :  { %v5773_v18 = vadd.f32 %v6672_v63, %v4158_v11  ;;  %v5419_v25 = vpop.f32.mrb[21].mxu0 }
0x383e   :  { %5947 = vtanh.f32 %v5773_v18 }
0x383f   :  { %5949 = vtanh.f32 %v7001_v52 }
0x3840   :  { %5951 = vtanh.f32 %v7025_v37 }
0x3848   :  { %v5948_v16 = vpop.eup %5947 }
0x3849   :  { %v4163_v30 = vmul.f32 %v5948_v16, %v6168_v21  ;;  %v5950_v45 = vpop.eup %5949 }
0x384a   :  { %v5952_v33 = vpop.eup %5951 }
0x384b   :  { %v7039_v32 = vadd.f32 %v4163_v30, %v6171_v23  ;;  %v5972_v30 = vld [vmem:[#allocation5] ss:$0 sm:$0xff] }
0x384d   :  { %4167 = vrot.lane.b32.xlu1 %v7039_v32, %s6030_s11  ;;  %v4165_v63 = vmul.f32 %v7039_v32, %v6957_v27 }
0x38bf   :  { %v4168_v29 = vpop.permute.xlu1 %4167 }
0x38c0   :  { %v4170_v31 = vmul.f32 %v4168_v29, %v7039_v32 }
0x38c2   :  { %4172 = vrot.lane.b32.xlu0 %v4170_v31, %s6031_s6 }
0x38c6   :  { %3893 = vrot.lane.b32.xlu0 %v5950_v45, %s6036_s21 }
0x3934   :  { %v4173_v5 = vpop.permute.xlu0 %4172 }
0x3935   :  { %v7050_v20 = vadd.f32 %v4173_v5, %v4165_v63 }
0x3937   :  { %4183 = vrot.lane.b32.xlu1 %v7050_v20, %s6032_s4 }
0x3938   :  { %v3894_v38 = vpop.permute.xlu0 %3893 }
0x3939   :  { %v3896_v40 = vmul.f32 %v3894_v38, %v6992_v48 }
0x393b   :  { %3986 = vperm.xlu0 %5824, %v3896_v40   ;;  %4083 = vrot.lane.b32.xlu1 %v5952_v33, %s6030_s11 }
0x393f   :  { %5825 = vset.pattern.permute.xlu0 %v6037_v26 }
0x39a9   :  { %v4184_v44 = vpop.permute.xlu1 %4183 }
0x39aa   :  { %5429 = vmatmul.mubr.msk.f32.vlgmr.msra.gmra.mrb[42].mxu1 %vm183_vm4, %v4184_v44 }
0x39ab   :  { %5747 = vmatpush3.bf16.msra.mxu1 %v6134_v6  ;;  %5450 = vmatprep.mubr.msk.f32.mxu1 %vm6026_vm0, %v6027_v1 }
0x39ac   :  { %5748 = vmatprep.subr.bf16.mxu1 %v6025_v0 }
0x39ad   :  { %v4084_v27 = vpop.permute.xlu1 %4083 }
0x39ae   :  { %v4086_v15 = vmul.f32 %v4084_v27, %v4069_v12 }
0x39af   :  { %5750 = vmatpush3.bf16.msra.mxu1 %v6143_v9 }
0x39b0   :  { %4371 = vrot.lane.b32.xlu1 %v4086_v15, %s6031_s6  ;;  %5757 = vmatprep.subr.bf16.mxu1 %v6025_v0 }
0x39ba   :  { %v3987_v6 = vpop.permute.xlu0 %3986 }
0x39bb   :  { %v3989_v26 = vmul.f32 %v6981_v2, %v3987_v6 }
0x39bd   :  { %v3990_v9 = vadd.f32 %v6987_v41, %v3989_v26 }
0x3a22   :  { %v4372_v10 = vpop.permute.xlu1 %4371 }
0x3a23   :  { %5451 = vmatmul.mubr.msk.f32.vlgmr.msra.gmra.mrb[44].mxu1 %vm183_vm4, %v4372_v10 }
0x3a24   :  { %5759 = vmatpush3.bf16.msra.mxu1 %v6242_v58  ;;  %5472 = vmatprep.mubr.msk.f32.mxu1 %vm6026_vm0, %v6027_v1 }
0x3a25   :  { %5760 = vmatprep.subr.bf16.mxu1 %v6025_v0 }
0x3a28   :  { %5762 = vmatpush3.bf16.msra.mxu1 %v6249_v61 }
0x3a7d   :  { %v4253_v47 = vpop.f32.mrb[42].mxu1 }
0x3a7e   :  { %v4254_v53 = vadd.f32 %v4253_v47, %v3990_v9  ;;  %v5430_v50 = vpop.f32.mrb[43].mxu1 }
0x3a80   :  { %5953 = vtanh.f32 %v4254_v53 }
0x3a8a   :  { %v5954_v48 = vpop.eup %5953 }
0x3a8b   :  { %v4258_v4 = vmul.f32 %v5954_v48, %v6572_v24 }
0x3a8d   :  { %v7075_v58 = vadd.f32 %v4258_v4, %v6579_v28 }
0x3a8f   :  { %4262 = vrot.lane.b32.xlu0 %v7075_v58, %s6033_s19  ;;  %v4260_v7 = vmul.f32 %v7075_v58, %v7001_v52 }
0x3af6   :  { %v4441_v49 = vpop.f32.mrb[44].mxu1 }
0x3af7   :  { %v5452_v61 = vpop.f32.mrb[45].mxu1 }
0x3b01   :  { %v4263_v42 = vpop.permute.xlu0 %4262 }
0x3b02   :  { %v4265_v62 = vmul.f32 %v4263_v42, %v7075_v58 }
0x3b04   :  { %4267 = vrot.lane.b32.xlu1 %v4265_v62, %s6034_s20 }
0x3b76   :  { %v4268_v51 = vpop.permute.xlu1 %4267 }
0x3b77   :  { %v7083_v54 = vadd.f32 %v4268_v51, %v4260_v7 }
0x3b79   :  { %4281 = vperm.xlu0 %5825, %v7083_v54  }
0x3bf8   :  { %v7086_v13 = vpop.permute.xlu0 %4281 }
0x3bf9   :  { %v4286_v57 = vmul.f32 %v5970_v14, %v7086_v13 }
0x3bfb   :  { %v4287_v35 = vadd.f32 %v5971_v36, %v4286_v57 }
0x3bfd   :  { %v4445_v3 = vadd.f32 %v4441_v49, %v4287_v35 }
0x3bff   :  { %5955 = vtanh.f32 %v4445_v3 }
0x3c00   :  { %5957 = vtanh.f32 %v7050_v20 }
0x3c09   :  { %v5956_v52 = vpop.eup %5955 }
0x3c0a   :  { %v4447_v8 = vmul.f32 %v5956_v52, %v6168_v21  ;;  %v5958_v43 = vpop.eup %5957 }
0x3c0c   :  { %v4448_v12 = vadd.f32 %v4447_v8, %v6171_v23 }
0x3c0e   :  { %4451 = vrot.lane.b32.xlu1 %v4448_v12, %s6030_s11  ;;  %v4449_v22 = vmul.f32 %v4448_v12, %v7025_v37 }
0x3c12   :  { %4178 = vrot.lane.b32.xlu1 %v5958_v43, %s6030_s11 }
0x3c80   :  { %v4452_v55 = vpop.permute.xlu1 %4451 }
0x3c81   :  { %v4454_v59 = vmul.f32 %v4452_v55, %v4448_v12 }
0x3c83   :  { %4456 = vrot.lane.b32.xlu0 %v4454_v59, %s6031_s6 }
0x3c84   :  { %v4179_v56 = vpop.permute.xlu1 %4178 }
0x3c85   :  { %v4181_v17 = vmul.f32 %v4179_v56, %v7039_v32 }
0x3c87   :  { %4289 = vrot.lane.b32.xlu1 %v4181_v17, %s6031_s6 }
0x3cf5   :  { %v4457_v11 = vpop.permute.xlu0 %4456 }
0x3cf6   :  { %v4459_v18 = vadd.f32 %v4457_v11, %v4449_v22 }
0x3cf8   :  { %4461 = vrot.lane.b32.xlu0 %v4459_v18, %s6032_s4 }
0x3cf9   :  { %v4290_v25 = vpop.permute.xlu1 %4289 }
0x3cfa   :  { %5440 = vmatmul.mubr.msk.f32.vlgmr.msra.gmra.mrb[22].mxu0 %vm183_vm4, %v4290_v25 }
0x3cfb   :  { %5753 = vmatpush3.bf16.msra.mxu0 %v6192_v34  ;;  %5461 = vmatprep.mubr.msk.f32.mxu0 %vm6026_vm0, %v6027_v1 }
0x3cfc   :  { %5754 = vmatprep.subr.bf16.mxu0 %v6025_v0 }
0x3cff   :  { %5756 = vmatpush3.bf16.msra.mxu0 %v6205_v39 }
0x3d6a   :  { %v4462_v16 = vpop.permute.xlu0 %4461 }
0x3d6b   :  { %5462 = vmatmul.mubr.msk.f32.vlgmr.msra.gmra.mrb[22].mxu0 %vm183_vm4, %v4462_v16 }
0x3e3e   :  { %v4531_v37 = vpop.f32.mrb[22].mxu0 }
0x3e3f   :  { %v5774_v32 = vadd.f32 %v5972_v30, %v4531_v37  ;;  %v5463_v29 = vpop.f32.mrb[23].mxu0 }
0x3e41   :  { %5959 = vtanh.f32 %v5774_v32 }
0x3e42   :  { %5961 = vtanh.f32 %v7083_v54 }
0x3e4b   :  { %v5960_v31 = vpop.eup %5959 }
0x3e4c   :  { %v4536_v45 = vmul.f32 %v5960_v31, %v6168_v21  ;;  %v5962_v39 = vpop.eup %5961 }
0x3e4e   :  { %v4537_v34 = vadd.f32 %v4536_v45, %v6171_v23 }
0x3e50   :  { %4540 = vrot.lane.b32.xlu1 %v4537_v34, %s6030_s11  ;;  %v4538_v63 = vmul.f32 %v4537_v34, %v7050_v20 }
0x3ec2   :  { %v4541_v0 = vpop.permute.xlu1 %4540 }
0x3ec3   :  { %v4543_v1 = vmul.f32 %v4541_v0, %v4537_v34 }
0x3ec5   :  { %4545 = vrot.lane.b32.xlu0 %v4543_v1, %s6031_s6 }
0x3ec9   :  { %4273 = vrot.lane.b32.xlu0 %v5962_v39, %s6036_s21 }
0x3f37   :  { %v4546_v5 = vpop.permute.xlu0 %4545 }
0x3f38   :  { %v4548_v38 = vadd.f32 %v4546_v5, %v4538_v63 }
0x3f3a   :  { %4550 = vrot.lane.b32.xlu1 %v4548_v38, %s6032_s4 }
0x3f3b   :  { %v4274_v21 = vpop.permute.xlu0 %4273 }
0x3f3c   :  { %v4276_v23 = vmul.f32 %v4274_v21, %v7075_v58 }
0x3f3e   :  { %4365 = vperm.xlu1 %5826, %v4276_v23  }
0x3fac   :  { %v4551_v40 = vpop.permute.xlu1 %4550 }
0x3fad   :  { %5473 = vmatmul.mubr.msk.f32.vlgmr.msra.gmra.mrb[46].mxu1 %vm183_vm4, %v4551_v40 }
0x3fbd   :  { %v4366_v33 = vpop.permute.xlu1 %4365 }
0x3fbe   :  { %v4368_v44 = vmul.f32 %v6981_v2, %v4366_v33 }
0x3fc0   :  { %v4369_v27 = vadd.f32 %v6987_v41, %v4368_v44  ;;  %v3905_v41 = vsel %vm3897_vm6, %v7006_v60, 0.0 }
0x4080   :  { %v4620_v15 = vpop.f32.mrb[46].mxu1 }
0x4081   :  { %v4621_v10 = vadd.f32 %v4620_v15, %v4369_v27  ;;  %v5474_v6 = vpop.f32.mrb[47].mxu1 }
0x4083   :  { %5963 = vtanh.f32 %v4621_v10 }
0x408d   :  { %v5964_v20 = vpop.eup %5963 }
0x408e   :  { %v4625_v26 = vmul.f32 %v5964_v20, %v6572_v24  ;;  %v3525_v24 = vsel %vm3517_vm7, %v6911_v46, 0.0 }
0x408f   :  { %v3906_v4 = vadd.f32 %v3905_v41, %v3525_v24 }
0x4090   :  { %v4626_v9 = vadd.f32 %v4625_v26, %v6579_v28  ;;  %v4284_v28 = vsel %vm89_vm5, %v7086_v13, 0.0 }
0x4091   :  { %v4285_v58 = vadd.f32 %v4284_v28, %v3906_v4 }
0x4092   :  { %4629 = vrot.lane.b32.xlu0 %v4626_v9, %s6033_s19  ;;  %v4627_v50 = vmul.f32 %v4626_v9, %v7083_v54 }
0x4104   :  { %v4630_v47 = vpop.permute.xlu0 %4629 }
0x4105   :  { %v4632_v53 = vmul.f32 %v4630_v47, %v4626_v9 }
0x4107   :  { %4634 = vrot.lane.b32.xlu1 %v4632_v53, %s6034_s20 }
0x4179   :  { %v4635_v2 = vpop.permute.xlu1 %4634 }
0x417a   :  { %v4637_v48 = vadd.f32 %v4635_v2, %v4627_v50 }
0x417c   :  { %4643 = vperm.xlu0 %5825, %v4637_v48  }
0x41fb   :  { %v4644_v49 = vpop.permute.xlu0 %4643 }
0x41fc   :  { %v4646_v61 = vsel %vm4638_vm8, %v4644_v49, 0.0 }
0x41fd   :  { %v4647_v42 = vadd.f32 %v4646_v61, %v4285_v58 }
0x41ff   :  { %4649 = vst.msk [vmem:[%s7150_s10] sm:$0xff] %vm4648_vm9, %v4647_v42 }
0x4200   :  { %4654 = vsyncpa [#allocation4], 1 }
0x4201   :  { %4655 = vsyncpa [#allocation6], 1 }

</bundles_post_ra>
